<compile_context>
chip_gen: v7x
topology: tpu7x:2x2x1
jax: 0.10.0
libtpu: 0.0.40
codegen_flags: <defaults>
</compile_context>

<pallas_src>
import functools

import jax
import jax.numpy as jnp
from jax import lax
from jax.experimental import pallas as pl
from jax.experimental.pallas import tpu as pltpu

# ---------------- synthetic config (small) ----------------
N_DISCRETE = 125            # tokenizer codebook size
VOCAB = N_DISCRETE + 3      # = 128  (codebook + bos/eos/pad) -> lane dense
BOS_ID = N_DISCRETE         # 125
EOS_ID = N_DISCRETE + 1     # 126
PAD_TOKEN_ID = N_DISCRETE + 2  # 127
PAD_ID = -1
IGNORE_ID = -100

HIDDEN = 128
N_HEADS = 4
HEAD_DIM = HIDDEN // N_HEADS
FFN = 256
N_LAYERS = 2
MAX_POS = 64


# ============================================================
# in-kernel helpers
# ============================================================
def _ln(x, g, b, eps=1e-5):
    """LayerNorm on a (T, H) tile; g/b are (1, H). f32 throughout."""
    mu = jnp.mean(x, axis=-1, keepdims=True)
    var = jnp.mean(jnp.square(x - mu), axis=-1, keepdims=True)
    return (x - mu) * lax.rsqrt(var + eps) * g + b


# ============================================================
# fused forward kernel: grid = (batch, layer)
# ============================================================
def _fused_forward_kernel(x_ref, mask_ref, lbl_ref,
                          ln1_g_ref, ln1_b_ref, wqkv_ref, bqkv_ref,
                          wo_ref, bo_ref, ln2_g_ref, ln2_b_ref,
                          w1_ref, b1_ref, w2_ref, b2_ref,
                          lnf_g_ref, lnf_b_ref, whd_ref, bhd_ref,
                          out_ref, res_ref,
                          *, n_heads, head_dim, scale, n_layers):
    """One transformer layer for one batch element; head+loss on the last step.

    x_ref:    (Tp, H)   embedded tokens (consumed only at layer 0)
    mask_ref: (1, Tp)   1.0 for valid keys, 0.0 for padded keys
    lbl_ref:  (Tp, 1)   next-token labels (IGNORE_ID ignored), last step only
    res_ref:  (Tp, H)   f32 residual stream, resident in VMEM across layers
    out_ref:  (1, 2)    [sum_nll, n_valid] for this batch, written on last step
    """
    layer = pl.program_id(1)

    # ---- layer 0: load embedded tokens into the resident residual stream ----
    @pl.when(layer == 0)
    def _():
        res_ref[...] = x_ref[...].astype(jnp.float32)

    x = res_ref[...]
    Tp, H = x.shape

    # ---- LN1 + fused QKV projection (bf16 MXU operands, f32 accumulate) ----
    h = _ln(x, ln1_g_ref[...], ln1_b_ref[...])
    qkv = jnp.dot(h.astype(jnp.bfloat16), wqkv_ref[...],
                  preferred_element_type=jnp.float32) + bqkv_ref[...]

    # ---- causal multi-head attention with key-padding mask ----
    row = lax.broadcasted_iota(jnp.int32, (Tp, Tp), 0)
    col = lax.broadcasted_iota(jnp.int32, (Tp, Tp), 1)
    keyok = mask_ref[...] > 0.0                       # (1, Tp), broadcasts
    allow = jnp.logical_and(col <= row, keyok)        # (Tp, Tp)

    head_outs = []
    for hd in range(n_heads):
        lo = hd * head_dim
        q = qkv[:, lo:lo + head_dim].astype(jnp.bfloat16)
        k = qkv[:, H + lo:H + lo + head_dim].astype(jnp.bfloat16)
        v = qkv[:, 2 * H + lo:2 * H + lo + head_dim].astype(jnp.bfloat16)
        s = lax.dot_general(q, k, (((1,), (1,)), ((), ())),
                            preferred_element_type=jnp.float32) * scale
        # mask in f32 BEFORE any bf16 cast (-1e30 would overflow bf16)
        s = jnp.where(allow, s, jnp.float32(-1e30))
        m = jnp.max(s, axis=-1, keepdims=True)
        p = jnp.exp(s - m)                            # unnormalized probs, f32
        denom = jnp.sum(p, axis=-1, keepdims=True)
        ho = jnp.dot(p.astype(jnp.bfloat16), v,
                     preferred_element_type=jnp.float32)
        # deferred softmax normalization: scale (Tp, Dh), not (Tp, Tp)
        head_outs.append(ho * pl.reciprocal(denom, approx=True))

    concat = jnp.concatenate(head_outs, axis=-1)      # (Tp, H), lane dense
    attn = jnp.dot(concat.astype(jnp.bfloat16), wo_ref[...],
                   preferred_element_type=jnp.float32)
    x = x + attn + bo_ref[...]                        # residual + out-proj bias

    # ---- LN2 + ReLU MLP + residual ----
    h2 = _ln(x, ln2_g_ref[...], ln2_b_ref[...])
    ff = jnp.dot(h2.astype(jnp.bfloat16), w1_ref[...],
                 preferred_element_type=jnp.float32) + b1_ref[...]
    ff = jnp.maximum(ff, 0.0)                         # OPT uses ReLU
    x = x + jnp.dot(ff.astype(jnp.bfloat16), w2_ref[...],
                    preferred_element_type=jnp.float32) + b2_ref[...]
    res_ref[...] = x

    # ---- last layer: final LN + LM head + masked cross-entropy partials ----
    @pl.when(layer == n_layers - 1)
    def _():
        hf = _ln(x, lnf_g_ref[...], lnf_b_ref[...])
        logits = jnp.dot(hf.astype(jnp.bfloat16), whd_ref[...],
                         preferred_element_type=jnp.float32) + bhd_ref[...]
        labels = lbl_ref[...]                         # (Tp, 1) int32
        m = jnp.max(logits, axis=-1, keepdims=True)
        lse = jnp.log(jnp.sum(jnp.exp(logits - m), axis=-1, keepdims=True)) + m
        colv = lax.broadcasted_iota(jnp.int32, logits.shape, 1)
        onehot = (colv == labels).astype(jnp.float32)
        picked = jnp.sum(onehot * logits, axis=-1, keepdims=True)
        valid = (labels != IGNORE_ID).astype(jnp.float32)
        nll = jnp.sum((lse - picked) * valid)
        cnt = jnp.sum(valid)
        lane = lax.broadcasted_iota(jnp.int32, (1, 2), 1)
        out_ref[...] = jnp.where(lane == 0, nll, cnt)


def fused_forward(x, mask3, lbl3, pp):
    """x: (B, Tp, H) f32, mask3: (B, 1, Tp), lbl3: (B, Tp, 1) -> scalar loss."""
    B, Tp, H = x.shape
    NL = pp["wqkv"].shape[0]
    scale = 1.0 / (HEAD_DIM ** 0.5)
    per_b = lambda b, l: (b, 0, 0)    # per-batch blocks (constant over layers)
    per_l = lambda b, l: (l, 0, 0)    # stacked per-layer weights
    cst = lambda b, l: (0, 0)         # head weights: single DMA total

    kernel = functools.partial(_fused_forward_kernel, n_heads=N_HEADS,
                               head_dim=HEAD_DIM, scale=scale, n_layers=NL)
    out = pl.pallas_call(
        kernel,
        out_shape=jax.ShapeDtypeStruct((B, 1, 2), jnp.float32),
        grid=(B, NL),
        in_specs=[
            pl.BlockSpec((None, Tp, H), per_b),        # embedded tokens
            pl.BlockSpec((None, 1, Tp), per_b),        # key-padding mask
            pl.BlockSpec((None, Tp, 1), per_b),        # labels
            pl.BlockSpec((None, 1, H), per_l),         # ln1 gamma
            pl.BlockSpec((None, 1, H), per_l),         # ln1 beta
            pl.BlockSpec((None, H, 3 * H), per_l),     # wqkv (bf16)
            pl.BlockSpec((None, 1, 3 * H), per_l),     # bqkv
            pl.BlockSpec((None, H, H), per_l),         # wo (bf16)
            pl.BlockSpec((None, 1, H), per_l),         # bo
            pl.BlockSpec((None, 1, H), per_l),         # ln2 gamma
            pl.BlockSpec((None, 1, H), per_l),         # ln2 beta
            pl.BlockSpec((None, H, FFN), per_l),       # w1 (bf16)
            pl.BlockSpec((None, 1, FFN), per_l),       # b1
            pl.BlockSpec((None, FFN, H), per_l),       # w2 (bf16)
            pl.BlockSpec((None, 1, H), per_l),         # b2
            pl.BlockSpec((1, H), cst),                 # final LN gamma
            pl.BlockSpec((1, H), cst),                 # final LN beta
            pl.BlockSpec((H, VOCAB), cst),             # LM head (bf16)
            pl.BlockSpec((1, VOCAB), cst),             # LM bias
        ],
        out_specs=pl.BlockSpec((None, 1, 2), per_b),
        scratch_shapes=[pltpu.VMEM((Tp, H), jnp.float32)],   # residual stream
        compiler_params=pltpu.CompilerParams(
            dimension_semantics=("parallel", "arbitrary")),
    )(x, mask3, lbl3,
      pp["ln1_g"], pp["ln1_b"], pp["wqkv"], pp["bqkv"], pp["wo"], pp["bo"],
      pp["ln2_g"], pp["ln2_b"], pp["w1"], pp["b1"], pp["w2"], pp["b2"],
      pp["lnf_g"], pp["lnf_b"], pp["lm_head"], pp["lm_bias"])
    # loss_wrapper adds 0 * sum(param**2): numerically a no-op, omitted.
    return jnp.sum(out[:, 0, 0]) / jnp.maximum(jnp.sum(out[:, 0, 1]), 1.0)


# ============================================================
# Plain-JAX glue (tokenizer / train_aug / embedding / wiring)
# ============================================================
def train_aug_vertices(vertices):
    # Only the vertices output of train_aug is consumed by train_one_step.
    v_mask = vertices == float(PAD_ID)
    v = jnp.where(v_mask, 100.0, vertices)
    min_y = jnp.min(v[:, :, 1], axis=1)
    diff = -0.95 - min_y
    v = v.at[:, :, 1].add(diff[:, None])
    v = jnp.where(v_mask, -1.0, v)
    return v


def tokenize(vertices, faces):
    """MeshTokenizer.tokenize: mesh -> (input_ids, attention_mask)."""
    B = vertices.shape[0]
    face_mask = jnp.all(faces != PAD_ID, axis=-1)                      # (B, Nf)
    idx = jnp.where(face_mask[..., None], faces, 0).astype(jnp.int32)  # (B, Nf, 3)
    face_coords = jax.vmap(lambda v, f: v[f])(vertices, idx)           # (B, Nf, 3, 3)
    t = (face_coords + 1.0) / 2.0 * N_DISCRETE - 0.5
    disc = jnp.clip(jnp.round(t).astype(jnp.int32), 0, N_DISCRETE - 1)
    disc = jnp.where(face_mask[:, :, None, None], disc, PAD_ID)
    input_ids = disc.reshape(B, -1)
    attention_mask = (input_ids != PAD_ID).astype(jnp.float32)
    ph_ids = jnp.full((B, 1), PAD_ID, dtype=input_ids.dtype)
    ph_msk = jnp.ones((B, 1), dtype=jnp.float32)
    input_ids = jnp.concatenate([ph_ids, input_ids, ph_ids], axis=1)
    attention_mask = jnp.concatenate([ph_msk, ph_msk, attention_mask], axis=1)
    return input_ids, attention_mask


def _prepare_inputs(vertices, faces):
    """train_aug + tokenize + bos/eos/pad handling + next-token labels + padding."""
    vertices = train_aug_vertices(vertices)
    input_ids, attention_mask = tokenize(vertices, faces)
    B, T = input_ids.shape

    input_ids = jnp.where(input_ids == PAD_ID, PAD_TOKEN_ID, input_ids)
    input_ids = input_ids.at[:, 0].set(BOS_ID)
    eos_pos = (jnp.sum(attention_mask, axis=1) - 1.0).astype(jnp.int32)
    input_ids = input_ids.at[jnp.arange(B), eos_pos].set(EOS_ID)

    target = jnp.where(attention_mask == 0.0, IGNORE_ID, input_ids)
    # position t predicts target[t+1]; last position dropped (== logits[:, :-1])
    labels = jnp.concatenate(
        [target[:, 1:], jnp.full((B, 1), IGNORE_ID, target.dtype)], axis=1)

    # pad token axis to a multiple of 8 sublanes; padded rows are masked keys
    # and IGNORE labels so the loss is unchanged.
    Tp = ((T + 7) // 8) * 8
    pad = Tp - T
    input_ids_p = jnp.pad(input_ids, ((0, 0), (0, pad)),
                          constant_values=PAD_TOKEN_ID)
    key_mask_p = jnp.pad(attention_mask, ((0, 0), (0, pad)),
                         constant_values=0.0)
    labels_p = jnp.pad(labels, ((0, 0), (0, pad)), constant_values=IGNORE_ID)
    return input_ids_p.astype(jnp.int32), key_mask_p, labels_p.astype(jnp.int32)


def meshxl_train_one_step(packed, vertices, faces):
    """MeshXL.forward(is_eval=False) == train_one_step -> gen_loss (scalar)."""
    input_ids_p, key_mask_p, labels_p = _prepare_inputs(vertices, faces)
    B, Tp = input_ids_p.shape
    assert Tp <= MAX_POS
    x = packed["tok_emb"][input_ids_p] + packed["pos_emb"][:Tp][None]
    mask3 = key_mask_p.reshape(B, 1, Tp)
    lbl3 = labels_p.reshape(B, Tp, 1).astype(jnp.int32)
    return fused_forward(x, mask3, lbl3, packed)


# ============================================================
# parameter packing for the fused kernel (stacked per-layer, bf16 weights)
# ============================================================
def pack_params(params):
    L = params["layers"]
    stk = lambda k: jnp.stack([lyr[k] for lyr in L])
    return dict(
        tok_emb=params["tok_emb"], pos_emb=params["pos_emb"],
        ln1_g=stk("ln1_g"), ln1_b=stk("ln1_b"),
        wqkv=stk("wqkv").astype(jnp.bfloat16), bqkv=stk("bqkv"),
        wo=stk("wo").astype(jnp.bfloat16), bo=stk("bo"),
        ln2_g=stk("ln2_g"), ln2_b=stk("ln2_b"),
        w1=stk("w1").astype(jnp.bfloat16), b1=stk("b1"),
        w2=stk("w2").astype(jnp.bfloat16), b2=stk("b2"),
        lnf_g=params["lnf_g"], lnf_b=params["lnf_b"],
        lm_head=params["lm_head"].astype(jnp.bfloat16),
        lm_bias=params["lm_bias"],
    )


# ---------------- pure-JAX reference (correctness check, f32) ----------------
def _ln_jnp(x, g, b, eps=1e-5):
    mu = jnp.mean(x, axis=-1, keepdims=True)
    var = jnp.mean(jnp.square(x - mu), axis=-1, keepdims=True)
    return (x - mu) * lax.rsqrt(var + eps) * g + b


def meshxl_train_one_step_reference(params, vertices, faces):
    input_ids_p, key_mask_p, labels_p = _prepare_inputs(vertices, faces)
    B, Tp = input_ids_p.shape
    H = HIDDEN
    x = params["tok_emb"][input_ids_p] + params["pos_emb"][:Tp][None]
    causal = jnp.tril(jnp.ones((Tp, Tp), dtype=bool))
    allow = causal[None] & (key_mask_p[:, None, :] > 0)          # (B, Tp, Tp)
    for layer in params["layers"]:
        h = _ln_jnp(x, layer["ln1_g"], layer["ln1_b"])
        qkv = h @ layer["wqkv"] + layer["bqkv"]
        q, k, v = qkv[..., :H], qkv[..., H:2 * H], qkv[..., 2 * H:]
        sh = lambda t: t.reshape(B, Tp, N_HEADS, HEAD_DIM).transpose(0, 2, 1, 3)
        q, k, v = sh(q), sh(k), sh(v)
        s = jnp.einsum("bhqd,bhkd->bhqk", q, k) / (HEAD_DIM ** 0.5)
        s = jnp.where(allow[:, None], s, -1e30)
        p = jax.nn.softmax(s, axis=-1)
        o = jnp.einsum("bhqk,bhkd->bhqd", p, v).transpose(0, 2, 1, 3).reshape(B, Tp, H)
        x = x + o @ layer["wo"] + layer["bo"]
        h = _ln_jnp(x, layer["ln2_g"], layer["ln2_b"])
        x = x + jnp.maximum(h @ layer["w1"] + layer["b1"], 0.0) @ layer["w2"] + layer["b2"]
    h = _ln_jnp(x, params["lnf_g"], params["lnf_b"])
    logits = h @ params["lm_head"] + params["lm_bias"]
    lse = jax.nn.logsumexp(logits, axis=-1)
    picked = jnp.take_along_axis(
        logits, jnp.maximum(labels_p, 0)[..., None], axis=-1)[..., 0]
    valid = (labels_p != IGNORE_ID).astype(jnp.float32)
    return jnp.sum((lse - picked) * valid) / jnp.maximum(jnp.sum(valid), 1.0)


# ============================================================
# Deterministic parameter init (synthetic weights, no checkpoint)
# ============================================================
def init_params(key):
    keys = iter(jax.random.split(key, 64))

    def nrm(shape, scale=0.02):
        return jax.random.normal(next(keys), shape, jnp.float32) * scale

    params = dict(
        tok_emb=nrm((VOCAB, HIDDEN)),
        pos_emb=nrm((MAX_POS, HIDDEN)),
        lnf_g=jnp.ones((1, HIDDEN), jnp.float32),
        lnf_b=jnp.zeros((1, HIDDEN), jnp.float32),
        lm_head=nrm((HIDDEN, VOCAB)),
        lm_bias=jnp.zeros((1, VOCAB), jnp.float32),
        layers=[],
    )
    for _ in range(N_LAYERS):
        params["layers"].append(dict(
            ln1_g=jnp.ones((1, HIDDEN), jnp.float32),
            ln1_b=jnp.zeros((1, HIDDEN), jnp.float32),
            wqkv=nrm((HIDDEN, 3 * HIDDEN)),        # fused [Wq | Wk | Wv]
            bqkv=jnp.zeros((1, 3 * HIDDEN), jnp.float32),
            wo=nrm((HIDDEN, HIDDEN)), bo=jnp.zeros((1, HIDDEN), jnp.float32),
            ln2_g=jnp.ones((1, HIDDEN), jnp.float32),
            ln2_b=jnp.zeros((1, HIDDEN), jnp.float32),
            w1=nrm((HIDDEN, FFN)), b1=jnp.zeros((1, FFN), jnp.float32),
            w2=nrm((FFN, HIDDEN)), b2=jnp.zeros((1, HIDDEN), jnp.float32),
        ))
    return params


if __name__ == "__main__":
    key = jax.random.PRNGKey(0)
    kp, kv = jax.random.split(key)
    params = init_params(kp)
    packed = pack_params(params)

    # Small mesh: batch=2, 8 vertices, 4 faces (batch 1 has 1 padded face).
    B, Nv, Nf = 2, 8, 4
    vertices = jax.random.uniform(kv, (B, Nv, 3), jnp.float32,
                                  minval=-0.9, maxval=0.9)
    vertices = vertices.at[1, 6:].set(-1.0)   # padded vertices in batch 1
    faces = jnp.array(
        [[[0, 1, 2], [1, 2, 3], [2, 3, 4], [4, 5, 6]],
         [[0, 1, 2], [1, 2, 3], [2, 3, 4], [-1, -1, -1]]],
        dtype=jnp.int32)

    loss = jax.jit(meshxl_train_one_step)(packed, vertices, faces)
    jax.block_until_ready(loss)
    assert bool(jnp.isfinite(loss)), "loss is not finite"

    loss_ref = jax.jit(meshxl_train_one_step_reference)(params, vertices, faces)
    jax.block_until_ready(loss_ref)
    assert bool(jnp.allclose(loss, loss_ref, rtol=5e-2, atol=5e-2)), (loss, loss_ref)

    print("KERNEL_OK")
</pallas_src>

<mosaic_0001>
module attributes {stable_mosaic.version = 11 : i64} {
  func.func @_fused_forward_kernel(%arg0: i32, %arg1: i32, %arg2: memref<1x40x128xf32, #tpu.memory_space<vmem>>, %arg3: memref<1x1x40xf32, #tpu.memory_space<vmem>>, %arg4: memref<1x40x1xi32, #tpu.memory_space<vmem>>, %arg5: memref<1x1x128xf32, #tpu.memory_space<vmem>>, %arg6: memref<1x1x128xf32, #tpu.memory_space<vmem>>, %arg7: memref<1x128x384xbf16, #tpu.memory_space<vmem>>, %arg8: memref<1x1x384xf32, #tpu.memory_space<vmem>>, %arg9: memref<1x128x128xbf16, #tpu.memory_space<vmem>>, %arg10: memref<1x1x128xf32, #tpu.memory_space<vmem>>, %arg11: memref<1x1x128xf32, #tpu.memory_space<vmem>>, %arg12: memref<1x1x128xf32, #tpu.memory_space<vmem>>, %arg13: memref<1x128x256xbf16, #tpu.memory_space<vmem>>, %arg14: memref<1x1x256xf32, #tpu.memory_space<vmem>>, %arg15: memref<1x256x128xbf16, #tpu.memory_space<vmem>>, %arg16: memref<1x1x128xf32, #tpu.memory_space<vmem>>, %arg17: memref<1x128xf32, #tpu.memory_space<vmem>>, %arg18: memref<1x128xf32, #tpu.memory_space<vmem>>, %arg19: memref<128x128xbf16, #tpu.memory_space<vmem>>, %arg20: memref<1x128xf32, #tpu.memory_space<vmem>>, %arg21: memref<1x1x2xf32, #tpu.memory_space<vmem>>, %arg22: memref<40x128xf32, #tpu.memory_space<vmem>>) attributes {dimension_semantics = [#tpu.dimension_semantics<parallel>, #tpu.dimension_semantics<arbitrary>], iteration_bounds = array<i64: 2, 2>, scalar_prefetch = 0 : i64, scratch_operands = 1 : i64, tpu.core_type = #tpu.core_type<tc>, window_params = [{transform_indices = @transform_0, window_bounds = array<i64: 1, 40, 128>}, {transform_indices = @transform_1, window_bounds = array<i64: 1, 1, 40>}, {transform_indices = @transform_2, window_bounds = array<i64: 1, 40, 1>}, {transform_indices = @transform_3, window_bounds = array<i64: 1, 1, 128>}, {transform_indices = @transform_4, window_bounds = array<i64: 1, 1, 128>}, {transform_indices = @transform_5, window_bounds = array<i64: 1, 128, 384>}, {transform_indices = @transform_6, window_bounds = array<i64: 1, 1, 384>}, {transform_indices = @transform_7, window_bounds = array<i64: 1, 128, 128>}, {transform_indices = @transform_8, window_bounds = array<i64: 1, 1, 128>}, {transform_indices = @transform_9, window_bounds = array<i64: 1, 1, 128>}, {transform_indices = @transform_10, window_bounds = array<i64: 1, 1, 128>}, {transform_indices = @transform_11, window_bounds = array<i64: 1, 128, 256>}, {transform_indices = @transform_12, window_bounds = array<i64: 1, 1, 256>}, {transform_indices = @transform_13, window_bounds = array<i64: 1, 256, 128>}, {transform_indices = @transform_14, window_bounds = array<i64: 1, 1, 128>}, {pipeline_mode = #tpu.pipeline_mode<synchronous>, transform_indices = @transform_15, window_bounds = array<i64: 1, 128>}, {pipeline_mode = #tpu.pipeline_mode<synchronous>, transform_indices = @transform_16, window_bounds = array<i64: 1, 128>}, {pipeline_mode = #tpu.pipeline_mode<synchronous>, transform_indices = @transform_17, window_bounds = array<i64: 128, 128>}, {pipeline_mode = #tpu.pipeline_mode<synchronous>, transform_indices = @transform_18, window_bounds = array<i64: 1, 128>}, {transform_indices = @transform_19, window_bounds = array<i64: 1, 1, 2>}]} {
    %c0_i32 = arith.constant 0 : i32
    %0 = arith.cmpi eq, %arg1, %c0_i32 : i32
    %1 = arith.extui %0 : i1 to i32
    %c0_i32_0 = arith.constant 0 : i32
    %2 = arith.cmpi ne, %1, %c0_i32_0 : i32
    scf.if %2 {
      %c0_83 = arith.constant 0 : index
      %c0_84 = arith.constant 0 : index
      %c0_85 = arith.constant 0 : index
      %198 = vector.load %arg2[%c0_83, %c0_84, %c0_85] : memref<1x40x128xf32, #tpu.memory_space<vmem>>, vector<1x40x128xf32>
      %199 = vector.shape_cast %198 : vector<1x40x128xf32> to vector<40x128xf32>
      %c0_86 = arith.constant 0 : index
      %c0_87 = arith.constant 0 : index
      %200 = vector.load %arg22[%c0_86, %c0_87] : memref<40x128xf32, #tpu.memory_space<vmem>>, vector<40x128xf32>
      tpu.vector_store %arg22[%c0_86, %c0_87], %199 {strides = array<i32>} : memref<40x128xf32, #tpu.memory_space<vmem>>, vector<40x128xf32>,
    } else {
    }
    %c0 = arith.constant 0 : index
    %c0_1 = arith.constant 0 : index
    %3 = vector.load %arg22[%c0, %c0_1] : memref<40x128xf32, #tpu.memory_space<vmem>>, vector<40x128xf32>
    %c0_2 = arith.constant 0 : index
    %c0_3 = arith.constant 0 : index
    %c0_4 = arith.constant 0 : index
    %4 = vector.load %arg5[%c0_2, %c0_3, %c0_4] : memref<1x1x128xf32, #tpu.memory_space<vmem>>, vector<1x1x128xf32>
    %5 = vector.shape_cast %4 : vector<1x1x128xf32> to vector<1x128xf32>
    %c0_5 = arith.constant 0 : index
    %c0_6 = arith.constant 0 : index
    %c0_7 = arith.constant 0 : index
    %6 = vector.load %arg6[%c0_5, %c0_6, %c0_7] : memref<1x1x128xf32, #tpu.memory_space<vmem>>, vector<1x1x128xf32>
    %7 = vector.shape_cast %6 : vector<1x1x128xf32> to vector<1x128xf32>
    %cst = arith.constant dense<0.000000e+00> : vector<40xf32>
    %8 = vector.multi_reduction <add>, %3, %cst [1] : vector<40x128xf32> to vector<40xf32>
    %9 = vector.shape_cast %8 : vector<40xf32> to vector<40x1xf32>
    %cst_8 = arith.constant 1.280000e+02 : f32
    %10 = vector.broadcast %cst_8 : f32 to vector<40x1xf32>
    %11 = arith.divf %9, %10 : vector<40x1xf32>
    %12 = vector.broadcast %11 : vector<40x1xf32> to vector<40x128xf32>
    %13 = arith.subf %3, %12 : vector<40x128xf32>
    %14 = arith.mulf %13, %13 : vector<40x128xf32>
    %cst_9 = arith.constant dense<0.000000e+00> : vector<40xf32>
    %15 = vector.multi_reduction <add>, %14, %cst_9 [1] : vector<40x128xf32> to vector<40xf32>
    %16 = vector.shape_cast %15 : vector<40xf32> to vector<40x1xf32>
    %cst_10 = arith.constant 1.280000e+02 : f32
    %17 = vector.broadcast %cst_10 : f32 to vector<40x1xf32>
    %18 = arith.divf %16, %17 : vector<40x1xf32>
    %19 = vector.broadcast %11 : vector<40x1xf32> to vector<40x128xf32>
    %20 = arith.subf %3, %19 : vector<40x128xf32>
    %cst_11 = arith.constant 9.99999974E-6 : f32
    %21 = vector.broadcast %cst_11 : f32 to vector<40x1xf32>
    %22 = arith.addf %18, %21 : vector<40x1xf32>
    %23 = math.rsqrt %22 : vector<40x1xf32>
    %24 = vector.broadcast %23 : vector<40x1xf32> to vector<40x128xf32>
    %25 = arith.mulf %20, %24 : vector<40x128xf32>
    %26 = vector.broadcast %5 : vector<1x128xf32> to vector<40x128xf32>
    %27 = arith.mulf %25, %26 : vector<40x128xf32>
    %28 = vector.broadcast %7 : vector<1x128xf32> to vector<40x128xf32>
    %29 = arith.addf %27, %28 : vector<40x128xf32>
    %30 = arith.truncf %29 : vector<40x128xf32> to vector<40x128xbf16>
    %c0_12 = arith.constant 0 : index
    %c0_13 = arith.constant 0 : index
    %c0_14 = arith.constant 0 : index
    %31 = vector.load %arg7[%c0_12, %c0_13, %c0_14] : memref<1x128x384xbf16, #tpu.memory_space<vmem>>, vector<1x128x384xbf16>
    %32 = vector.shape_cast %31 : vector<1x128x384xbf16> to vector<128x384xbf16>
    %cst_15 = arith.constant dense<0.000000e+00> : vector<40x384xf32>
    %33 = tpu.matmul %30, %32, %cst_15 {dimension_numbers = #tpu.dot_dimension_numbers<[1], [0], [0], [1], [0, 0, 1, 1], [], []>} : vector<40x128xbf16>, vector<128x384xbf16>, vector<40x384xf32> -> vector<40x384xf32>
    %c0_16 = arith.constant 0 : index
    %c0_17 = arith.constant 0 : index
    %c0_18 = arith.constant 0 : index
    %34 = vector.load %arg8[%c0_16, %c0_17, %c0_18] : memref<1x1x384xf32, #tpu.memory_space<vmem>>, vector<1x1x384xf32>
    %35 = vector.shape_cast %34 : vector<1x1x384xf32> to vector<1x384xf32>
    %36 = vector.broadcast %35 : vector<1x384xf32> to vector<40x384xf32>
    %37 = arith.addf %33, %36 : vector<40x384xf32>
    %38 = tpu.iota {dimensions = array<i32: 0>} : vector<40x40xi32>
    %39 = tpu.iota {dimensions = array<i32: 1>} : vector<40x40xi32>
    %c0_19 = arith.constant 0 : index
    %c0_20 = arith.constant 0 : index
    %c0_21 = arith.constant 0 : index
    %40 = vector.load %arg3[%c0_19, %c0_20, %c0_21] : memref<1x1x40xf32, #tpu.memory_space<vmem>>, vector<1x1x40xf32>
    %41 = vector.shape_cast %40 : vector<1x1x40xf32> to vector<1x40xf32>
    %cst_22 = arith.constant 0.000000e+00 : f32
    %42 = vector.broadcast %cst_22 : f32 to vector<1x40xf32>
    %43 = arith.cmpf ogt, %41, %42 : vector<1x40xf32>
    %44 = arith.cmpi sle, %39, %38 : vector<40x40xi32>
    %45 = vector.broadcast %43 : vector<1x40xi1> to vector<40x40xi1>
    %46 = arith.andi %44, %45 : vector<40x40xi1>
    %47 = vector.extract_strided_slice %37 {offsets = [0, 0], sizes = [40, 32], strides = [1, 1]} : vector<40x384xf32> to vector<40x32xf32>
    %48 = arith.truncf %47 : vector<40x32xf32> to vector<40x32xbf16>
    %49 = vector.extract_strided_slice %37 {offsets = [0, 128], sizes = [40, 32], strides = [1, 1]} : vector<40x384xf32> to vector<40x32xf32>
    %50 = arith.truncf %49 : vector<40x32xf32> to vector<40x32xbf16>
    %51 = vector.extract_strided_slice %37 {offsets = [0, 256], sizes = [40, 32], strides = [1, 1]} : vector<40x384xf32> to vector<40x32xf32>
    %52 = arith.truncf %51 : vector<40x32xf32> to vector<40x32xbf16>
    %cst_23 = arith.constant dense<0.000000e+00> : vector<40x40xf32>
    %53 = tpu.matmul %48, %50, %cst_23 {dimension_numbers = #tpu.dot_dimension_numbers<[1], [1], [0], [0], [0, 0, 1, 0], [], []>} : vector<40x32xbf16>, vector<40x32xbf16>, vector<40x40xf32> -> vector<40x40xf32>
    %cst_24 = arith.constant 0.176776692 : f32
    %54 = vector.broadcast %cst_24 : f32 to vector<40x40xf32>
    %55 = arith.mulf %53, %54 : vector<40x40xf32>
    %cst_25 = arith.constant -1.000000e+30 : f32
    %56 = vector.broadcast %cst_25 : f32 to vector<40x40xf32>
    %57 = arith.select %46, %55, %56 : vector<40x40xi1>, vector<40x40xf32>
    %cst_26 = arith.constant dense<0xFF800000> : vector<40xf32>
    %58 = vector.multi_reduction <maximumf>, %57, %cst_26 [1] : vector<40x40xf32> to vector<40xf32>
    %59 = vector.shape_cast %58 : vector<40xf32> to vector<40x1xf32>
    %60 = vector.broadcast %59 : vector<40x1xf32> to vector<40x40xf32>
    %61 = arith.subf %57, %60 : vector<40x40xf32>
    %62 = math.exp %61 : vector<40x40xf32>
    %cst_27 = arith.constant dense<0.000000e+00> : vector<40xf32>
    %63 = vector.multi_reduction <add>, %62, %cst_27 [1] : vector<40x40xf32> to vector<40xf32>
    %64 = vector.shape_cast %63 : vector<40xf32> to vector<40x1xf32>
    %65 = arith.truncf %62 : vector<40x40xf32> to vector<40x40xbf16>
    %cst_28 = arith.constant dense<0.000000e+00> : vector<40x32xf32>
    %66 = tpu.matmul %65, %52, %cst_28 {dimension_numbers = #tpu.dot_dimension_numbers<[1], [0], [0], [1], [0, 0, 1, 1], [], []>} : vector<40x40xbf16>, vector<40x32xbf16>, vector<40x32xf32> -> vector<40x32xf32>
    %67 = tpu.reciprocal %64 {approx = true} : vector<40x1xf32> -> vector<40x1xf32>
    %68 = vector.broadcast %67 : vector<40x1xf32> to vector<40x32xf32>
    %69 = arith.mulf %66, %68 : vector<40x32xf32>
    %70 = vector.extract_strided_slice %37 {offsets = [0, 32], sizes = [40, 32], strides = [1, 1]} : vector<40x384xf32> to vector<40x32xf32>
    %71 = arith.truncf %70 : vector<40x32xf32> to vector<40x32xbf16>
    %72 = vector.extract_strided_slice %37 {offsets = [0, 160], sizes = [40, 32], strides = [1, 1]} : vector<40x384xf32> to vector<40x32xf32>
    %73 = arith.truncf %72 : vector<40x32xf32> to vector<40x32xbf16>
    %74 = vector.extract_strided_slice %37 {offsets = [0, 288], sizes = [40, 32], strides = [1, 1]} : vector<40x384xf32> to vector<40x32xf32>
    %75 = arith.truncf %74 : vector<40x32xf32> to vector<40x32xbf16>
    %cst_29 = arith.constant dense<0.000000e+00> : vector<40x40xf32>
    %76 = tpu.matmul %71, %73, %cst_29 {dimension_numbers = #tpu.dot_dimension_numbers<[1], [1], [0], [0], [0, 0, 1, 0], [], []>} : vector<40x32xbf16>, vector<40x32xbf16>, vector<40x40xf32> -> vector<40x40xf32>
    %cst_30 = arith.constant 0.176776692 : f32
    %77 = vector.broadcast %cst_30 : f32 to vector<40x40xf32>
    %78 = arith.mulf %76, %77 : vector<40x40xf32>
    %cst_31 = arith.constant -1.000000e+30 : f32
    %79 = vector.broadcast %cst_31 : f32 to vector<40x40xf32>
    %80 = arith.select %46, %78, %79 : vector<40x40xi1>, vector<40x40xf32>
    %cst_32 = arith.constant dense<0xFF800000> : vector<40xf32>
    %81 = vector.multi_reduction <maximumf>, %80, %cst_32 [1] : vector<40x40xf32> to vector<40xf32>
    %82 = vector.shape_cast %81 : vector<40xf32> to vector<40x1xf32>
    %83 = vector.broadcast %82 : vector<40x1xf32> to vector<40x40xf32>
    %84 = arith.subf %80, %83 : vector<40x40xf32>
    %85 = math.exp %84 : vector<40x40xf32>
    %cst_33 = arith.constant dense<0.000000e+00> : vector<40xf32>
    %86 = vector.multi_reduction <add>, %85, %cst_33 [1] : vector<40x40xf32> to vector<40xf32>
    %87 = vector.shape_cast %86 : vector<40xf32> to vector<40x1xf32>
    %88 = arith.truncf %85 : vector<40x40xf32> to vector<40x40xbf16>
    %cst_34 = arith.constant dense<0.000000e+00> : vector<40x32xf32>
    %89 = tpu.matmul %88, %75, %cst_34 {dimension_numbers = #tpu.dot_dimension_numbers<[1], [0], [0], [1], [0, 0, 1, 1], [], []>} : vector<40x40xbf16>, vector<40x32xbf16>, vector<40x32xf32> -> vector<40x32xf32>
    %90 = tpu.reciprocal %87 {approx = true} : vector<40x1xf32> -> vector<40x1xf32>
    %91 = vector.broadcast %90 : vector<40x1xf32> to vector<40x32xf32>
    %92 = arith.mulf %89, %91 : vector<40x32xf32>
    %93 = vector.extract_strided_slice %37 {offsets = [0, 64], sizes = [40, 32], strides = [1, 1]} : vector<40x384xf32> to vector<40x32xf32>
    %94 = arith.truncf %93 : vector<40x32xf32> to vector<40x32xbf16>
    %95 = vector.extract_strided_slice %37 {offsets = [0, 192], sizes = [40, 32], strides = [1, 1]} : vector<40x384xf32> to vector<40x32xf32>
    %96 = arith.truncf %95 : vector<40x32xf32> to vector<40x32xbf16>
    %97 = vector.extract_strided_slice %37 {offsets = [0, 320], sizes = [40, 32], strides = [1, 1]} : vector<40x384xf32> to vector<40x32xf32>
    %98 = arith.truncf %97 : vector<40x32xf32> to vector<40x32xbf16>
    %cst_35 = arith.constant dense<0.000000e+00> : vector<40x40xf32>
    %99 = tpu.matmul %94, %96, %cst_35 {dimension_numbers = #tpu.dot_dimension_numbers<[1], [1], [0], [0], [0, 0, 1, 0], [], []>} : vector<40x32xbf16>, vector<40x32xbf16>, vector<40x40xf32> -> vector<40x40xf32>
    %cst_36 = arith.constant 0.176776692 : f32
    %100 = vector.broadcast %cst_36 : f32 to vector<40x40xf32>
    %101 = arith.mulf %99, %100 : vector<40x40xf32>
    %cst_37 = arith.constant -1.000000e+30 : f32
    %102 = vector.broadcast %cst_37 : f32 to vector<40x40xf32>
    %103 = arith.select %46, %101, %102 : vector<40x40xi1>, vector<40x40xf32>
    %cst_38 = arith.constant dense<0xFF800000> : vector<40xf32>
    %104 = vector.multi_reduction <maximumf>, %103, %cst_38 [1] : vector<40x40xf32> to vector<40xf32>
    %105 = vector.shape_cast %104 : vector<40xf32> to vector<40x1xf32>
    %106 = vector.broadcast %105 : vector<40x1xf32> to vector<40x40xf32>
    %107 = arith.subf %103, %106 : vector<40x40xf32>
    %108 = math.exp %107 : vector<40x40xf32>
    %cst_39 = arith.constant dense<0.000000e+00> : vector<40xf32>
    %109 = vector.multi_reduction <add>, %108, %cst_39 [1] : vector<40x40xf32> to vector<40xf32>
    %110 = vector.shape_cast %109 : vector<40xf32> to vector<40x1xf32>
    %111 = arith.truncf %108 : vector<40x40xf32> to vector<40x40xbf16>
    %cst_40 = arith.constant dense<0.000000e+00> : vector<40x32xf32>
    %112 = tpu.matmul %111, %98, %cst_40 {dimension_numbers = #tpu.dot_dimension_numbers<[1], [0], [0], [1], [0, 0, 1, 1], [], []>} : vector<40x40xbf16>, vector<40x32xbf16>, vector<40x32xf32> -> vector<40x32xf32>
    %113 = tpu.reciprocal %110 {approx = true} : vector<40x1xf32> -> vector<40x1xf32>
    %114 = vector.broadcast %113 : vector<40x1xf32> to vector<40x32xf32>
    %115 = arith.mulf %112, %114 : vector<40x32xf32>
    %116 = vector.extract_strided_slice %37 {offsets = [0, 96], sizes = [40, 32], strides = [1, 1]} : vector<40x384xf32> to vector<40x32xf32>
    %117 = arith.truncf %116 : vector<40x32xf32> to vector<40x32xbf16>
    %118 = vector.extract_strided_slice %37 {offsets = [0, 224], sizes = [40, 32], strides = [1, 1]} : vector<40x384xf32> to vector<40x32xf32>
    %119 = arith.truncf %118 : vector<40x32xf32> to vector<40x32xbf16>
    %120 = vector.extract_strided_slice %37 {offsets = [0, 352], sizes = [40, 32], strides = [1, 1]} : vector<40x384xf32> to vector<40x32xf32>
    %121 = arith.truncf %120 : vector<40x32xf32> to vector<40x32xbf16>
    %cst_41 = arith.constant dense<0.000000e+00> : vector<40x40xf32>
    %122 = tpu.matmul %117, %119, %cst_41 {dimension_numbers = #tpu.dot_dimension_numbers<[1], [1], [0], [0], [0, 0, 1, 0], [], []>} : vector<40x32xbf16>, vector<40x32xbf16>, vector<40x40xf32> -> vector<40x40xf32>
    %cst_42 = arith.constant 0.176776692 : f32
    %123 = vector.broadcast %cst_42 : f32 to vector<40x40xf32>
    %124 = arith.mulf %122, %123 : vector<40x40xf32>
    %cst_43 = arith.constant -1.000000e+30 : f32
    %125 = vector.broadcast %cst_43 : f32 to vector<40x40xf32>
    %126 = arith.select %46, %124, %125 : vector<40x40xi1>, vector<40x40xf32>
    %cst_44 = arith.constant dense<0xFF800000> : vector<40xf32>
    %127 = vector.multi_reduction <maximumf>, %126, %cst_44 [1] : vector<40x40xf32> to vector<40xf32>
    %128 = vector.shape_cast %127 : vector<40xf32> to vector<40x1xf32>
    %129 = vector.broadcast %128 : vector<40x1xf32> to vector<40x40xf32>
    %130 = arith.subf %126, %129 : vector<40x40xf32>
    %131 = math.exp %130 : vector<40x40xf32>
    %cst_45 = arith.constant dense<0.000000e+00> : vector<40xf32>
    %132 = vector.multi_reduction <add>, %131, %cst_45 [1] : vector<40x40xf32> to vector<40xf32>
    %133 = vector.shape_cast %132 : vector<40xf32> to vector<40x1xf32>
    %134 = arith.truncf %131 : vector<40x40xf32> to vector<40x40xbf16>
    %cst_46 = arith.constant dense<0.000000e+00> : vector<40x32xf32>
    %135 = tpu.matmul %134, %121, %cst_46 {dimension_numbers = #tpu.dot_dimension_numbers<[1], [0], [0], [1], [0, 0, 1, 1], [], []>} : vector<40x40xbf16>, vector<40x32xbf16>, vector<40x32xf32> -> vector<40x32xf32>
    %136 = tpu.reciprocal %133 {approx = true} : vector<40x1xf32> -> vector<40x1xf32>
    %137 = vector.broadcast %136 : vector<40x1xf32> to vector<40x32xf32>
    %138 = arith.mulf %135, %137 : vector<40x32xf32>
    %139 = tpu.concatenate %69, %92, %115, %138 in 1 : vector<40x32xf32>, vector<40x32xf32>, vector<40x32xf32>, vector<40x32xf32> -> vector<40x128xf32>
    %140 = arith.truncf %139 : vector<40x128xf32> to vector<40x128xbf16>
    %c0_47 = arith.constant 0 : index
    %c0_48 = arith.constant 0 : index
    %c0_49 = arith.constant 0 : index
    %141 = vector.load %arg9[%c0_47, %c0_48, %c0_49] : memref<1x128x128xbf16, #tpu.memory_space<vmem>>, vector<1x128x128xbf16>
    %142 = vector.shape_cast %141 : vector<1x128x128xbf16> to vector<128x128xbf16>
    %cst_50 = arith.constant dense<0.000000e+00> : vector<40x128xf32>
    %143 = tpu.matmul %140, %142, %cst_50 {dimension_numbers = #tpu.dot_dimension_numbers<[1], [0], [0], [1], [0, 0, 1, 1], [], []>} : vector<40x128xbf16>, vector<128x128xbf16>, vector<40x128xf32> -> vector<40x128xf32>
    %144 = arith.addf %3, %143 : vector<40x128xf32>
    %c0_51 = arith.constant 0 : index
    %c0_52 = arith.constant 0 : index
    %c0_53 = arith.constant 0 : index
    %145 = vector.load %arg10[%c0_51, %c0_52, %c0_53] : memref<1x1x128xf32, #tpu.memory_space<vmem>>, vector<1x1x128xf32>
    %146 = vector.shape_cast %145 : vector<1x1x128xf32> to vector<1x128xf32>
    %147 = vector.broadcast %146 : vector<1x128xf32> to vector<40x128xf32>
    %148 = arith.addf %144, %147 : vector<40x128xf32>
    %c0_54 = arith.constant 0 : index
    %c0_55 = arith.constant 0 : index
    %c0_56 = arith.constant 0 : index
    %149 = vector.load %arg11[%c0_54, %c0_55, %c0_56] : memref<1x1x128xf32, #tpu.memory_space<vmem>>, vector<1x1x128xf32>
    %150 = vector.shape_cast %149 : vector<1x1x128xf32> to vector<1x128xf32>
    %c0_57 = arith.constant 0 : index
    %c0_58 = arith.constant 0 : index
    %c0_59 = arith.constant 0 : index
    %151 = vector.load %arg12[%c0_57, %c0_58, %c0_59] : memref<1x1x128xf32, #tpu.memory_space<vmem>>, vector<1x1x128xf32>
    %152 = vector.shape_cast %151 : vector<1x1x128xf32> to vector<1x128xf32>
    %cst_60 = arith.constant dense<0.000000e+00> : vector<40xf32>
    %153 = vector.multi_reduction <add>, %148, %cst_60 [1] : vector<40x128xf32> to vector<40xf32>
    %154 = vector.shape_cast %153 : vector<40xf32> to vector<40x1xf32>
    %cst_61 = arith.constant 1.280000e+02 : f32
    %155 = vector.broadcast %cst_61 : f32 to vector<40x1xf32>
    %156 = arith.divf %154, %155 : vector<40x1xf32>
    %157 = vector.broadcast %156 : vector<40x1xf32> to vector<40x128xf32>
    %158 = arith.subf %148, %157 : vector<40x128xf32>
    %159 = arith.mulf %158, %158 : vector<40x128xf32>
    %cst_62 = arith.constant dense<0.000000e+00> : vector<40xf32>
    %160 = vector.multi_reduction <add>, %159, %cst_62 [1] : vector<40x128xf32> to vector<40xf32>
    %161 = vector.shape_cast %160 : vector<40xf32> to vector<40x1xf32>
    %cst_63 = arith.constant 1.280000e+02 : f32
    %162 = vector.broadcast %cst_63 : f32 to vector<40x1xf32>
    %163 = arith.divf %161, %162 : vector<40x1xf32>
    %164 = vector.broadcast %156 : vector<40x1xf32> to vector<40x128xf32>
    %165 = arith.subf %148, %164 : vector<40x128xf32>
    %cst_64 = arith.constant 9.99999974E-6 : f32
    %166 = vector.broadcast %cst_64 : f32 to vector<40x1xf32>
    %167 = arith.addf %163, %166 : vector<40x1xf32>
    %168 = math.rsqrt %167 : vector<40x1xf32>
    %169 = vector.broadcast %168 : vector<40x1xf32> to vector<40x128xf32>
    %170 = arith.mulf %165, %169 : vector<40x128xf32>
    %171 = vector.broadcast %150 : vector<1x128xf32> to vector<40x128xf32>
    %172 = arith.mulf %170, %171 : vector<40x128xf32>
    %173 = vector.broadcast %152 : vector<1x128xf32> to vector<40x128xf32>
    %174 = arith.addf %172, %173 : vector<40x128xf32>
    %175 = arith.truncf %174 : vector<40x128xf32> to vector<40x128xbf16>
    %c0_65 = arith.constant 0 : index
    %c0_66 = arith.constant 0 : index
    %c0_67 = arith.constant 0 : index
    %176 = vector.load %arg13[%c0_65, %c0_66, %c0_67] : memref<1x128x256xbf16, #tpu.memory_space<vmem>>, vector<1x128x256xbf16>
    %177 = vector.shape_cast %176 : vector<1x128x256xbf16> to vector<128x256xbf16>
    %cst_68 = arith.constant dense<0.000000e+00> : vector<40x256xf32>
    %178 = tpu.matmul %175, %177, %cst_68 {dimension_numbers = #tpu.dot_dimension_numbers<[1], [0], [0], [1], [0, 0, 1, 1], [], []>} : vector<40x128xbf16>, vector<128x256xbf16>, vector<40x256xf32> -> vector<40x256xf32>
    %c0_69 = arith.constant 0 : index
    %c0_70 = arith.constant 0 : index
    %c0_71 = arith.constant 0 : index
    %179 = vector.load %arg14[%c0_69, %c0_70, %c0_71] : memref<1x1x256xf32, #tpu.memory_space<vmem>>, vector<1x1x256xf32>
    %180 = vector.shape_cast %179 : vector<1x1x256xf32> to vector<1x256xf32>
    %181 = vector.broadcast %180 : vector<1x256xf32> to vector<40x256xf32>
    %182 = arith.addf %178, %181 : vector<40x256xf32>
    %cst_72 = arith.constant 0.000000e+00 : f32
    %183 = vector.broadcast %cst_72 : f32 to vector<40x256xf32>
    %184 = arith.maximumf %182, %183 : vector<40x256xf32>
    %185 = arith.truncf %184 : vector<40x256xf32> to vector<40x256xbf16>
    %c0_73 = arith.constant 0 : index
    %c0_74 = arith.constant 0 : index
    %c0_75 = arith.constant 0 : index
    %186 = vector.load %arg15[%c0_73, %c0_74, %c0_75] : memref<1x256x128xbf16, #tpu.memory_space<vmem>>, vector<1x256x128xbf16>
    %187 = vector.shape_cast %186 : vector<1x256x128xbf16> to vector<256x128xbf16>
    %cst_76 = arith.constant dense<0.000000e+00> : vector<40x128xf32>
    %188 = tpu.matmul %185, %187, %cst_76 {dimension_numbers = #tpu.dot_dimension_numbers<[1], [0], [0], [1], [0, 0, 1, 1], [], []>} : vector<40x256xbf16>, vector<256x128xbf16>, vector<40x128xf32> -> vector<40x128xf32>
    %189 = arith.addf %148, %188 : vector<40x128xf32>
    %c0_77 = arith.constant 0 : index
    %c0_78 = arith.constant 0 : index
    %c0_79 = arith.constant 0 : index
    %190 = vector.load %arg16[%c0_77, %c0_78, %c0_79] : memref<1x1x128xf32, #tpu.memory_space<vmem>>, vector<1x1x128xf32>
    %191 = vector.shape_cast %190 : vector<1x1x128xf32> to vector<1x128xf32>
    %192 = vector.broadcast %191 : vector<1x128xf32> to vector<40x128xf32>
    %193 = arith.addf %189, %192 : vector<40x128xf32>
    %c0_80 = arith.constant 0 : index
    %c0_81 = arith.constant 0 : index
    %194 = vector.load %arg22[%c0_80, %c0_81] : memref<40x128xf32, #tpu.memory_space<vmem>>, vector<40x128xf32>
    tpu.vector_store %arg22[%c0_80, %c0_81], %193 {strides = array<i32>} : memref<40x128xf32, #tpu.memory_space<vmem>>, vector<40x128xf32>,
    %c1_i32 = arith.constant 1 : i32
    %195 = arith.cmpi eq, %arg1, %c1_i32 : i32
    %196 = arith.extui %195 : i1 to i32
    %c0_i32_82 = arith.constant 0 : i32
    %197 = arith.cmpi ne, %196, %c0_i32_82 : i32
    scf.if %197 {
      %c0_83 = arith.constant 0 : index
      %c0_84 = arith.constant 0 : index
      %198 = vector.load %arg17[%c0_83, %c0_84] : memref<1x128xf32, #tpu.memory_space<vmem>>, vector<1x128xf32>
      %c0_85 = arith.constant 0 : index
      %c0_86 = arith.constant 0 : index
      %199 = vector.load %arg18[%c0_85, %c0_86] : memref<1x128xf32, #tpu.memory_space<vmem>>, vector<1x128xf32>
      %cst_87 = arith.constant dense<0.000000e+00> : vector<40xf32>
      %200 = vector.multi_reduction <add>, %193, %cst_87 [1] : vector<40x128xf32> to vector<40xf32>
      %201 = vector.shape_cast %200 : vector<40xf32> to vector<40x1xf32>
      %cst_88 = arith.constant 1.280000e+02 : f32
      %202 = vector.broadcast %cst_88 : f32 to vector<40x1xf32>
      %203 = arith.divf %201, %202 : vector<40x1xf32>
      %204 = vector.broadcast %203 : vector<40x1xf32> to vector<40x128xf32>
      %205 = arith.subf %193, %204 : vector<40x128xf32>
      %206 = arith.mulf %205, %205 : vector<40x128xf32>
      %cst_89 = arith.constant dense<0.000000e+00> : vector<40xf32>
      %207 = vector.multi_reduction <add>, %206, %cst_89 [1] : vector<40x128xf32> to vector<40xf32>
      %208 = vector.shape_cast %207 : vector<40xf32> to vector<40x1xf32>
      %cst_90 = arith.constant 1.280000e+02 : f32
      %209 = vector.broadcast %cst_90 : f32 to vector<40x1xf32>
      %210 = arith.divf %208, %209 : vector<40x1xf32>
      %211 = vector.broadcast %203 : vector<40x1xf32> to vector<40x128xf32>
      %212 = arith.subf %193, %211 : vector<40x128xf32>
      %cst_91 = arith.constant 9.99999974E-6 : f32
      %213 = vector.broadcast %cst_91 : f32 to vector<40x1xf32>
      %214 = arith.addf %210, %213 : vector<40x1xf32>
      %215 = math.rsqrt %214 : vector<40x1xf32>
      %216 = vector.broadcast %215 : vector<40x1xf32> to vector<40x128xf32>
      %217 = arith.mulf %212, %216 : vector<40x128xf32>
      %218 = vector.broadcast %198 : vector<1x128xf32> to vector<40x128xf32>
      %219 = arith.mulf %217, %218 : vector<40x128xf32>
      %220 = vector.broadcast %199 : vector<1x128xf32> to vector<40x128xf32>
      %221 = arith.addf %219, %220 : vector<40x128xf32>
      %222 = arith.truncf %221 : vector<40x128xf32> to vector<40x128xbf16>
      %c0_92 = arith.constant 0 : index
      %c0_93 = arith.constant 0 : index
      %223 = vector.load %arg19[%c0_92, %c0_93] : memref<128x128xbf16, #tpu.memory_space<vmem>>, vector<128x128xbf16>
      %cst_94 = arith.constant dense<0.000000e+00> : vector<40x128xf32>
      %224 = tpu.matmul %222, %223, %cst_94 {dimension_numbers = #tpu.dot_dimension_numbers<[1], [0], [0], [1], [0, 0, 1, 1], [], []>} : vector<40x128xbf16>, vector<128x128xbf16>, vector<40x128xf32> -> vector<40x128xf32>
      %c0_95 = arith.constant 0 : index
      %c0_96 = arith.constant 0 : index
      %225 = vector.load %arg20[%c0_95, %c0_96] : memref<1x128xf32, #tpu.memory_space<vmem>>, vector<1x128xf32>
      %226 = vector.broadcast %225 : vector<1x128xf32> to vector<40x128xf32>
      %227 = arith.addf %224, %226 : vector<40x128xf32>
      %c0_97 = arith.constant 0 : index
      %c0_98 = arith.constant 0 : index
      %c0_99 = arith.constant 0 : index
      %228 = vector.load %arg4[%c0_97, %c0_98, %c0_99] : memref<1x40x1xi32, #tpu.memory_space<vmem>>, vector<1x40x1xi32>
      %229 = vector.shape_cast %228 : vector<1x40x1xi32> to vector<40x1xi32>
      %cst_100 = arith.constant dense<0xFF800000> : vector<40xf32>
      %230 = vector.multi_reduction <maximumf>, %227, %cst_100 [1] : vector<40x128xf32> to vector<40xf32>
      %231 = vector.shape_cast %230 : vector<40xf32> to vector<40x1xf32>
      %232 = vector.broadcast %231 : vector<40x1xf32> to vector<40x128xf32>
      %233 = arith.subf %227, %232 : vector<40x128xf32>
      %234 = math.exp %233 : vector<40x128xf32>
      %cst_101 = arith.constant dense<0.000000e+00> : vector<40xf32>
      %235 = vector.multi_reduction <add>, %234, %cst_101 [1] : vector<40x128xf32> to vector<40xf32>
      %236 = vector.shape_cast %235 : vector<40xf32> to vector<40x1xf32>
      %237 = math.log %236 : vector<40x1xf32>
      %238 = arith.addf %237, %231 : vector<40x1xf32>
      %239 = tpu.iota {dimensions = array<i32: 1>} : vector<40x128xi32>
      %240 = vector.broadcast %229 : vector<40x1xi32> to vector<40x128xi32>
      %241 = arith.cmpi eq, %239, %240 : vector<40x128xi32>
      %242 = arith.extui %241 : vector<40x128xi1> to vector<40x128xi32>
      %243 = arith.sitofp %242 : vector<40x128xi32> to vector<40x128xf32>
      %244 = arith.mulf %243, %227 : vector<40x128xf32>
      %cst_102 = arith.constant dense<0.000000e+00> : vector<40xf32>
      %245 = vector.multi_reduction <add>, %244, %cst_102 [1] : vector<40x128xf32> to vector<40xf32>
      %246 = vector.shape_cast %245 : vector<40xf32> to vector<40x1xf32>
      %c-100_i32 = arith.constant -100 : i32
      %247 = vector.broadcast %c-100_i32 : i32 to vector<40x1xi32>
      %248 = arith.cmpi ne, %229, %247 : vector<40x1xi32>
      %249 = arith.extui %248 : vector<40x1xi1> to vector<40x1xi32>
      %250 = arith.sitofp %249 : vector<40x1xi32> to vector<40x1xf32>
      %251 = arith.subf %238, %246 : vector<40x1xf32>
      %252 = arith.mulf %251, %250 : vector<40x1xf32>
      %253 = vector.shape_cast %252 : vector<40x1xf32> to vector<1x40x1xf32>
      %cst_103 = arith.constant dense<0.000000e+00> : vector<1xf32>
      %254 = vector.multi_reduction <add>, %253, %cst_103 [1, 2] : vector<1x40x1xf32> to vector<1xf32>
      %255 = vector.shape_cast %254 : vector<1xf32> to vector<1x1x1xf32>
      %256 = vector.extract %255[0, 0, 0] : f32 from vector<1x1x1xf32>
      %257 = vector.shape_cast %250 : vector<40x1xf32> to vector<1x40x1xf32>
      %cst_104 = arith.constant dense<0.000000e+00> : vector<1xf32>
      %258 = vector.multi_reduction <add>, %257, %cst_104 [1, 2] : vector<1x40x1xf32> to vector<1xf32>
      %259 = vector.shape_cast %258 : vector<1xf32> to vector<1x1x1xf32>
      %260 = vector.extract %259[0, 0, 0] : f32 from vector<1x1x1xf32>
      %261 = tpu.iota {dimensions = array<i32: 1>} : vector<1x2xi32>
      %c0_i32_105 = arith.constant 0 : i32
      %262 = vector.broadcast %c0_i32_105 : i32 to vector<1x2xi32>
      %263 = arith.cmpi eq, %261, %262 : vector<1x2xi32>
      %264 = vector.broadcast %256 : f32 to vector<1x2xf32>
      %265 = vector.broadcast %260 : f32 to vector<1x2xf32>
      %266 = arith.select %263, %264, %265 : vector<1x2xi1>, vector<1x2xf32>
      %c0_106 = arith.constant 0 : index
      %c0_107 = arith.constant 0 : index
      %c0_108 = arith.constant 0 : index
      %267 = vector.load %arg21[%c0_106, %c0_107, %c0_108] : memref<1x1x2xf32, #tpu.memory_space<vmem>>, vector<1x1x2xf32>
      %268 = vector.shape_cast %267 : vector<1x1x2xf32> to vector<1x2xf32>
      %269 = vector.shape_cast %266 : vector<1x2xf32> to vector<1x1x2xf32>
      tpu.vector_store %arg21[%c0_106, %c0_107, %c0_108], %269 {strides = array<i32>} : memref<1x1x2xf32, #tpu.memory_space<vmem>>, vector<1x1x2xf32>,
    } else {
    }
    return
  }
  func.func @transform_0(%arg0: i32, %arg1: i32) -> (i32, i32, i32) {
    %c0_i32 = arith.constant 0 : i32
    %c0_i32_0 = arith.constant 0 : i32
    %c0_i32_1 = arith.constant 0 : i32
    return %arg0, %c0_i32, %c0_i32_0 : i32, i32, i32
  }
  func.func @transform_1(%arg0: i32, %arg1: i32) -> (i32, i32, i32) {
    %c0_i32 = arith.constant 0 : i32
    %c0_i32_0 = arith.constant 0 : i32
    %c0_i32_1 = arith.constant 0 : i32
    return %arg0, %c0_i32, %c0_i32_0 : i32, i32, i32
  }
  func.func @transform_2(%arg0: i32, %arg1: i32) -> (i32, i32, i32) {
    %c0_i32 = arith.constant 0 : i32
    %c0_i32_0 = arith.constant 0 : i32
    %c0_i32_1 = arith.constant 0 : i32
    return %arg0, %c0_i32, %c0_i32_0 : i32, i32, i32
  }
  func.func @transform_3(%arg0: i32, %arg1: i32) -> (i32, i32, i32) {
    %c0_i32 = arith.constant 0 : i32
    %c0_i32_0 = arith.constant 0 : i32
    %c0_i32_1 = arith.constant 0 : i32
    return %arg1, %c0_i32, %c0_i32_0 : i32, i32, i32
  }
  func.func @transform_4(%arg0: i32, %arg1: i32) -> (i32, i32, i32) {
    %c0_i32 = arith.constant 0 : i32
    %c0_i32_0 = arith.constant 0 : i32
    %c0_i32_1 = arith.constant 0 : i32
    return %arg1, %c0_i32, %c0_i32_0 : i32, i32, i32
  }
  func.func @transform_5(%arg0: i32, %arg1: i32) -> (i32, i32, i32) {
    %c0_i32 = arith.constant 0 : i32
    %c0_i32_0 = arith.constant 0 : i32
    %c0_i32_1 = arith.constant 0 : i32
    return %arg1, %c0_i32, %c0_i32_0 : i32, i32, i32
  }
  func.func @transform_6(%arg0: i32, %arg1: i32) -> (i32, i32, i32) {
    %c0_i32 = arith.constant 0 : i32
    %c0_i32_0 = arith.constant 0 : i32
    %c0_i32_1 = arith.constant 0 : i32
    return %arg1, %c0_i32, %c0_i32_0 : i32, i32, i32
  }
  func.func @transform_7(%arg0: i32, %arg1: i32) -> (i32, i32, i32) {
    %c0_i32 = arith.constant 0 : i32
    %c0_i32_0 = arith.constant 0 : i32
    %c0_i32_1 = arith.constant 0 : i32
    return %arg1, %c0_i32, %c0_i32_0 : i32, i32, i32
  }
  func.func @transform_8(%arg0: i32, %arg1: i32) -> (i32, i32, i32) {
    %c0_i32 = arith.constant 0 : i32
    %c0_i32_0 = arith.constant 0 : i32
    %c0_i32_1 = arith.constant 0 : i32
    return %arg1, %c0_i32, %c0_i32_0 : i32, i32, i32
  }
  func.func @transform_9(%arg0: i32, %arg1: i32) -> (i32, i32, i32) {
    %c0_i32 = arith.constant 0 : i32
    %c0_i32_0 = arith.constant 0 : i32
    %c0_i32_1 = arith.constant 0 : i32
    return %arg1, %c0_i32, %c0_i32_0 : i32, i32, i32
  }
  func.func @transform_10(%arg0: i32, %arg1: i32) -> (i32, i32, i32) {
    %c0_i32 = arith.constant 0 : i32
    %c0_i32_0 = arith.constant 0 : i32
    %c0_i32_1 = arith.constant 0 : i32
    return %arg1, %c0_i32, %c0_i32_0 : i32, i32, i32
  }
  func.func @transform_11(%arg0: i32, %arg1: i32) -> (i32, i32, i32) {
    %c0_i32 = arith.constant 0 : i32
    %c0_i32_0 = arith.constant 0 : i32
    %c0_i32_1 = arith.constant 0 : i32
    return %arg1, %c0_i32, %c0_i32_0 : i32, i32, i32
  }
  func.func @transform_12(%arg0: i32, %arg1: i32) -> (i32, i32, i32) {
    %c0_i32 = arith.constant 0 : i32
    %c0_i32_0 = arith.constant 0 : i32
    %c0_i32_1 = arith.constant 0 : i32
    return %arg1, %c0_i32, %c0_i32_0 : i32, i32, i32
  }
  func.func @transform_13(%arg0: i32, %arg1: i32) -> (i32, i32, i32) {
    %c0_i32 = arith.constant 0 : i32
    %c0_i32_0 = arith.constant 0 : i32
    %c0_i32_1 = arith.constant 0 : i32
    return %arg1, %c0_i32, %c0_i32_0 : i32, i32, i32
  }
  func.func @transform_14(%arg0: i32, %arg1: i32) -> (i32, i32, i32) {
    %c0_i32 = arith.constant 0 : i32
    %c0_i32_0 = arith.constant 0 : i32
    %c0_i32_1 = arith.constant 0 : i32
    return %arg1, %c0_i32, %c0_i32_0 : i32, i32, i32
  }
  func.func @transform_15(%arg0: i32, %arg1: i32) -> (i32, i32) {
    %c0_i32 = arith.constant 0 : i32
    %c0_i32_0 = arith.constant 0 : i32
    %c0_i32_1 = arith.constant 0 : i32
    return %c0_i32, %c0_i32_0 : i32, i32
  }
  func.func @transform_16(%arg0: i32, %arg1: i32) -> (i32, i32) {
    %c0_i32 = arith.constant 0 : i32
    %c0_i32_0 = arith.constant 0 : i32
    %c0_i32_1 = arith.constant 0 : i32
    return %c0_i32, %c0_i32_0 : i32, i32
  }
  func.func @transform_17(%arg0: i32, %arg1: i32) -> (i32, i32) {
    %c0_i32 = arith.constant 0 : i32
    %c0_i32_0 = arith.constant 0 : i32
    %c0_i32_1 = arith.constant 0 : i32
    return %c0_i32, %c0_i32_0 : i32, i32
  }
  func.func @transform_18(%arg0: i32, %arg1: i32) -> (i32, i32) {
    %c0_i32 = arith.constant 0 : i32
    %c0_i32_0 = arith.constant 0 : i32
    %c0_i32_1 = arith.constant 0 : i32
    return %c0_i32, %c0_i32_0 : i32, i32
  }
  func.func @transform_19(%arg0: i32, %arg1: i32) -> (i32, i32, i32) {
    %c0_i32 = arith.constant 0 : i32
    %c0_i32_0 = arith.constant 0 : i32
    %c0_i32_1 = arith.constant 0 : i32
    return %arg0, %c0_i32, %c0_i32_0 : i32, i32, i32
  }
}

</mosaic_0001>

<bundles_post_ra>
// kernel: meshxl_train_one_step.1
= control target key start
LH: loop header
LB: loop body
LE: loop exit
PB: predicated region body
PF: predicated region fallthrough
CT: control target
= control target key end

     0   :  { %s4421_s30 = smov 0   ;;  %s4423_s20 = smov 0   ;;  %s5413_s0 = inlined_call_operand.vmem [shape: f32[2,40,128], index: 0, kind: input, shape index: {}]   ;;  %s5414_s1 = inlined_call_operand.vmem [shape: f32[2,1,40], index: 1, kind: input, shape index: {}]   ;;  %s5415_s2 = inlined_call_operand.vmem [shape: s32[2,40,1], index: 2, kind: input, shape index: {}]   ;;  %s5416_s3 = inlined_call_operand.vmem [shape: f32[2,1,128], index: 3, kind: input, shape index: {}]   ;;  %s5417_s4 = inlined_call_operand.vmem [shape: f32[2,1,128], index: 4, kind: input, shape index: {}]   ;;  %s5418_s5 = inlined_call_operand.vmem [shape: bf16[2,128,384], index: 5, kind: input, shape index: {}]   ;;  %s5419_s6 = inlined_call_operand.vmem [shape: f32[2,1,384], index: 6, kind: input, shape index: {}]   ;;  %s5420_s7 = inlined_call_operand.vmem [shape: bf16[2,128,128], index: 7, kind: input, shape index: {}]   ;;  %s5421_s8 = inlined_call_operand.vmem [shape: f32[2,1,128], index: 8, kind: input, shape index: {}]   ;;  %s5422_s9 = inlined_call_operand.vmem [shape: f32[2,1,128], index: 9, kind: input, shape index: {}]   ;;  %s5423_s10 = inlined_call_operand.vmem [shape: f32[2,1,128], index: 10, kind: input, shape index: {}]   ;;  %s5424_s11 = inlined_call_operand.vmem [shape: bf16[2,128,256], index: 11, kind: input, shape index: {}]   ;;  %s5425_s12 = inlined_call_operand.vmem [shape: f32[2,1,256], index: 12, kind: input, shape index: {}]   ;;  %s5426_s13 = inlined_call_operand.vmem [shape: bf16[2,256,128], index: 13, kind: input, shape index: {}]   ;;  %s5427_s14 = inlined_call_operand.vmem [shape: f32[2,1,128], index: 14, kind: input, shape index: {}]   ;;  %s5428_s15 = inlined_call_operand.vmem [shape: f32[1,128], index: 15, kind: input, shape index: {}]   ;;  %s5429_s16 = inlined_call_operand.vmem [shape: f32[1,128], index: 16, kind: input, shape index: {}]   ;;  %s5430_s17 = inlined_call_operand.vmem [shape: bf16[128,128], index: 17, kind: input, shape index: {}]   ;;  %s5431_s18 = inlined_call_operand.vmem [shape: f32[1,128], index: 18, kind: input, shape index: {}]   ;;  %s5432_s19 = inlined_call_operand.vmem [shape: f32[2,1,2], index: 19, kind: output, shape index: {}]  }
   0x1   :  { %5438 = sst [smem:[#allocation9_spill]] %s5413_s0  ;;  %s4419_s0 = smov 0  }
   0x2   :  { %5439 = sst [smem:[#allocation10_spill]] %s5414_s1  ;;  %s4425_s21 = smov 0  }
   0x3   :  { %5440 = sst [smem:[#allocation11_spill]] %s5415_s2  ;;  %s4427_s1 = smov 0  }
   0x4   :  { %5441 = sst [smem:[#allocation12_spill]] %s5416_s3 }
   0x5   :  { %5442 = sst [smem:[#allocation13_spill]] %s5418_s5 }
   0x6   :  { %5443 = sst [smem:[#allocation14_spill]] %s5419_s6 }
   0x7   :  { %5444 = sst [smem:[#allocation15_spill]] %s5420_s7 }
   0x8   :  { %5445 = sst [smem:[#allocation16_spill]] %s5424_s11 }
   0x9   :  { %5446 = sst [smem:[#allocation17_spill]] %s5426_s13 }
   0xa   :  { %5447 = sst [smem:[#allocation18_spill]] %s5427_s14 }
   0xb   :  { %5448 = sst [smem:[#allocation19_spill]] %s5428_s15 }
   0xc   :  { %5449 = sst [smem:[#allocation20_spill]] %s5429_s16 }
   0xd   :  { %5450 = sst [smem:[#allocation21_spill]] %s5430_s17 }
   0xe   :  { %5451 = sst [smem:[#allocation22_spill]] %s5431_s18 }
   0xf   :  { %5452 = sst [smem:[#allocation23_spill]] %s5432_s19 }
  0x10 LB: > { %5453 = sst [smem:[#allocation3_spill]] %s4292_s0  ;;  %s38_s22 = sadd.s32 1, %s4300_s20  ;;  %s4308_s1 = sphi %s4427_s1, %s29_s1   ;;  %s4304_s21 = sphi %s4425_s21, %s5502_s21   ;;  %s4300_s20 = sphi %s4423_s20, %s5501_s20   ;;  %s4296_s30 = sphi %s4421_s30, %s5500_s30   ;;  %s4292_s0 = sphi %s4419_s0, %s5499_s0  }
  0x11   : > { %5454 = sst [smem:[#allocation4_spill]] %s4300_s20  ;;  %s41_s2 = sadd.s32 1, %s4304_s21 }
  0x12   : > { %5455 = sst [smem:[#allocation5_spill]] %s4304_s21  ;;  %p39_p0 = scmp.ge.s32.totalorder %s38_s22, 2 }
  0x13   : > { %5456 = sst [smem:[#allocation6_spill]] %s4308_s1  ;;  %p3467_p1 = scmp.ge.s32.totalorder %s4308_s1, 1 }
  0x14   : > { %p673_p2 = scmp.lt.s32.totalorder %s4308_s1, 5  ;;  %s5504_s22 = smov (%p39_p0, %s38_s22), 0 }
  0x15   : > { %5457 = sst [smem:[#allocation7_spill]] %s5504_s22  ;;  %s5506_s2 = smov (!%p39_p0, %s41_s2), %s4304_s21 }
  0x16   : > { %p674_p3 = pnand %p3467_p1, %p673_p2  ;;  %p43_p4 = scmp.ge.s32.totalorder %s5506_s2, 2 }
  0x17   : > { %p781_p5 = scmp.lt.s32.totalorder (!%p674_p3), %s4296_s30, 1  ;;  %p794_p6 = scmp.lt.s32.totalorder (!%p674_p3), %s4292_s0, 1 }
  0x18   : > { %s5508_s2 = smov (%p43_p4, %s5506_s2), 0  ;;  %677 = sbr.rel (%p674_p3) target bundleno = 3598 (0xe0e), region = 96 }
  0x19   : > { %5458 = sst [smem:[#allocation8_spill]] %s5508_s2  ;;  %s5461_s15 = sld [smem:[#allocation9_spill]] (!%p674_p3) }
  0x1a   : > { %s5462_s14 = sld [smem:[#allocation11_spill]] (!%p674_p3)  ;;  %s5463_s7 = sld [smem:[#allocation15_spill]] (!%p674_p3) }
  0x1b   : > { %s5464_s5 = sld [smem:[#allocation13_spill]] (!%p674_p3)  ;;  %s5465_s6 = sld [smem:[#allocation14_spill]] (!%p674_p3) }
  0x1c   : > { %s5466_s11 = sld [smem:[#allocation16_spill]] (!%p674_p3)  ;;  %s5467_s1 = sld [smem:[#allocation17_spill]] (!%p674_p3) }
  0x1d   : > { %s5468_s2 = sld [smem:[#allocation18_spill]] (!%p674_p3) }
  0x1f   : > { %s5510_s30 = smov (!%p781_p5, %s4296_s30), 1 }
  0x20   : > { %s4455_s23 = scalar_select %p794_p6, %s4292_s0, 1 }
  0x21   : > { %s3959_s24 = smul.u32 40, %s5510_s30 }
  0x22   : > { %s3960_s25 = smul.u32 192, %s4455_s23  ;;  %s3597_s3 = sshll.u32 %s4455_s23, 6 }
  0x23   : > { %s785_s17 = scalar_lea.vmem %s5461_s15, %s3959_s24  ;;  %s4476_s13 = scalar_lea.vmem %s5462_s14, %s3959_s24 }
  0x24   : > { %s3961_s26 = smul.u32 3, %s4455_s23  ;;  %s4484_s29 = scalar_lea.vmem %s5463_s7, %s3597_s3 }
  0x25   : > { %s4489_s16 = scalar_lea.vmem %s5464_s5, %s3960_s25  ;;  %s3598_s20 = sshll.u32 %s4455_s23, 7 }
  0x26   : > { %s4498_s24 = scalar_lea.vmem %s5465_s6, %s3961_s26  ;;  %s4512_s5 = scalar_lea.vmem %s5466_s11, %s3598_s20 }
  0x27   : > { %s3475_s15 = sshll.u32 %s4455_s23, 1  ;;  %s4523_s27 = scalar_lea.vmem %s5467_s1, %s3598_s20 }
  0x28   : > { %s4518_s26 = scalar_lea.vmem %s5425_s12, %s3475_s15  ;;  %s839_s22 = scalar_lea.vmem %s5468_s2, %s4455_s23 }
  0x29   : > { %s5469_s25 = sld [smem:[#allocation23_spill]]  ;;  %s5470_s11 = sld [smem:[#allocation3_spill]] }
  0x2f   : > { %s842_s21 = scalar_lea.vmem %s5469_s25, %s5510_s30  ;;  %p3478_p7 = scmp.ne.s32.totalorder %s5470_s11, 0 }
  0x30   : > { %v848_v0 = vld [vmem:[%s785_s17] sm:$0xff] (!%p3478_p7)  ;;  %v849_v1 = vld [vmem:[%s785_s17 + $0x8] sm:$0xff] (!%p3478_p7)  ;;  %v850_v2 = vld [vmem:[%s785_s17 + $0x10] sm:$0xff] (!%p3478_p7) }
  0x31   : > { %847 = sbr.rel (%p3478_p7) target bundleno = 56 (0x38), region = 100  ;;  %853 = vst [vmem:[#allocation2] sm:$0xff] (!%p3478_p7), %v848_v0  ;;  %854 = vst [vmem:[#allocation2 + $0x8] sm:$0xff] (!%p3478_p7), %v849_v1  ;;  %v851_v3 = vld [vmem:[%s785_s17 + $0x18] sm:$0xff] (!%p3478_p7)  ;;  %v852_v4 = vld [vmem:[%s785_s17 + $0x20] sm:$0xff] (!%p3478_p7) }
  0x32   : > { %855 = vst [vmem:[#allocation2 + $0x10] sm:$0xff] (!%p3478_p7), %v850_v2  ;;  %856 = vst [vmem:[#allocation2 + $0x18] sm:$0xff] (!%p3478_p7), %v851_v3 }
  0x33   : > { %857 = vst [vmem:[#allocation2 + $0x20] sm:$0xff] (!%p3478_p7), %v852_v4 }
  0x38 PF: > { %v858_v5 = vld [vmem:[#allocation2] sm:$0xff]  ;;  %v859_v7 = vld [vmem:[#allocation2 + $0x8] sm:$0xff]  ;;  %v4310_v12 = vmov 0.0   ;;  %v4055_v38 = vld [vmem:[%s4489_s16 + $0x30] ss:$12 sps:$4 sm:$0xff]   ;;  %v4311_v53 = vmov 0   ;;  %s5473_s28 = scalar_lea.vmem %s5417_s4, %s4455_s23  ;;  %s5488_s2 = scalar_lea.vmem %s5421_s8, %s4455_s23 }
  0x39   : > { %v860_v6 = vld [vmem:[#allocation2 + $0x10] sm:$0xff]  ;;  %865 = vadd.xlane.f32.xlu0 %v858_v5  ;;  %v861_v8 = vld [vmem:[#allocation2 + $0x18] sm:$0xff]  ;;  %v4047_v11 = vld [vmem:[%s4489_s16] ss:$12 sps:$4 sm:$0xff]   ;;  %3715 = vmatprep.subr.bf16.mxu1 %v4310_v12  ;;  %vm4312_vm0 = vmmov 0   ;;  %s5471_s11 = sld [smem:[#allocation12_spill]]  ;;  %s5489_s6 = scalar_lea.vmem %s5422_s9, %s4455_s23 }
  0x3a   : > { %869 = vadd.xlane.f32.xlu1 %v860_v6  ;;  %v862_v9 = vld [vmem:[#allocation2 + $0x20] sm:$0xff]  ;;  %v4048_v13 = vld [vmem:[%s4489_s16 + $0x8] ss:$12 sps:$4 sm:$0xff]   ;;  %v4057_v40 = vld [vmem:[%s4489_s16 + $0x4c] ss:$12 sps:$4 sm:$0xff]   ;;  %1155 = vmatprep.mubr.bf16.mxu0 %v4311_v53  ;;  %vm1275_vm1 = vcmask 261120  }
  0x3b   : > { %v4045_v10 = vld [vmem:[%s4489_s16 + $0x4] ss:$12 sps:$4 sm:$0xff]   ;;  %v4049_v14 = vld [vmem:[%s4489_s16 + $0x1c] ss:$12 sps:$4 sm:$0xff]   ;;  %3716 = vmatpush3.bf16.msra.mxu1 %v4048_v13  ;;  %v4052_v36 = vld [vmem:[%s4489_s16 + $0x20] ss:$12 sps:$4 sm:$0xff]   ;;  %3731 = vmatprep.mubr.msk.bf16.mxu1 %vm4312_vm0, %v4310_v12 }
  0x3c   : > { %1123 = vmatprep.subr.bf16.mxu0 %v4045_v10  ;;  %3717 = vmatprep.subr.bf16.mxu1 %v4310_v12  ;;  %v4051_v35 = vld [vmem:[%s4489_s16 + $0x18] ss:$12 sps:$4 sm:$0xff]   ;;  %v4053_v37 = vld [vmem:[%s4489_s16 + $0x34] ss:$12 sps:$4 sm:$0xff]   ;;  %v4060_v42 = vld [vmem:[%s4489_s16 + $0x50] ss:$12 sps:$4 sm:$0xff]  }
  0x3d   : > { %867 = vadd.xlane.f32.xlu0 %v859_v7  ;;  %1124 = vmatpush1.bf16.msra.mxu0 %v4047_v11  ;;  %v4056_v39 = vld [vmem:[%s4489_s16 + $0x38] ss:$12 sps:$4 sm:$0xff]   ;;  %v4059_v41 = vld [vmem:[%s4489_s16 + $0x48] ss:$12 sps:$4 sm:$0xff]   ;;  %v4063_v44 = vld [vmem:[%s4489_s16 + $0x60] ss:$12 sps:$4 sm:$0xff]  }
  0x3e   : > { %871 = vadd.xlane.f32.xlu1 %v861_v8  ;;  %1125 = vmatprep.subr.bf16.mxu0 %v4049_v14  ;;  %v4061_v43 = vld [vmem:[%s4489_s16 + $0x64] ss:$12 sps:$4 sm:$0xff]   ;;  %v4064_v45 = vld [vmem:[%s4489_s16 + $0x68] ss:$12 sps:$4 sm:$0xff]   ;;  %v4068_v48 = vld [vmem:[%s4489_s16 + $0x80] ss:$12 sps:$4 sm:$0xff]  }
  0x3f   : > { %3718 = vmatpush3.bf16.msra.mxu1 %v4052_v36  ;;  %v4065_v46 = vld [vmem:[%s4489_s16 + $0x7c] ss:$12 sps:$4 sm:$0xff]   ;;  %v4067_v47 = vld [vmem:[%s4489_s16 + $0x78] ss:$12 sps:$4 sm:$0xff]   ;;  %v4069_v49 = vld [vmem:[%s4489_s16 + $0x94] ss:$12 sps:$4 sm:$0xff]   ;;  %s5472_s17 = scalar_lea.vmem %s5471_s11, %s4455_s23 }
  0x40   : > { %3719 = vmatprep.subr.bf16.mxu1 %v4310_v12  ;;  %v4071_v50 = vld [vmem:[%s4489_s16 + $0x90] ss:$12 sps:$4 sm:$0xff]   ;;  %v4072_v51 = vld [vmem:[%s4489_s16 + $0x98] ss:$12 sps:$4 sm:$0xff]   ;;  %v4075_v54 = vld [vmem:[%s4489_s16 + $0xa8] ss:$12 sps:$4 sm:$0xff]  }
  0x41   : > { %873 = vadd.xlane.f32.xlu0 %v862_v9  ;;  %1126 = vmatpush1.bf16.msra.mxu0 %v4051_v35  ;;  %v4073_v52 = vld [vmem:[%s4489_s16 + $0xac] ss:$12 sps:$4 sm:$0xff]   ;;  %v4076_v55 = vld [vmem:[%s4489_s16 + $0xb0] ss:$12 sps:$4 sm:$0xff]   ;;  %s4314_s20 = smov 64   ;;  %s4315_s15 = smov 32  }
  0x42   : > { %1127 = vmatprep.subr.bf16.mxu0 %v4053_v37  ;;  %v978_v37 = vld [vmem:[%s4498_s24] sm:$0x7]  ;;  %s4313_s24 = smov 96   ;;  %vm1418_vm2 = vcmask 1043456   ;;  %s5474_s0 = sld [smem:[#allocation10_spill]]  ;;  %vm1360_vm8 = vcmask 326656  }
  0x43   : > { %3720 = vmatpush3.bf16.msra.mxu1 %v4056_v39 }
  0x44   : > { %3721 = vmatprep.subr.bf16.mxu1 %v4310_v12 }
  0x45   : > { %1128 = vmatpush1.bf16.msra.mxu0 %v4055_v38 }
  0x46   : > { %1129 = vmatprep.subr.bf16.mxu0 %v4057_v40 }
  0x47   : > { %3722 = vmatpush3.bf16.msra.mxu1 %v4060_v42 }
  0x48   : > { %3723 = vmatprep.subr.bf16.mxu1 %v4310_v12  ;;  %s5475_s1 = scalar_lea.vmem %s5474_s0, %s5510_s30 }
  0x49   : > { %1130 = vmatpush1.bf16.msra.mxu0 %v4059_v41 }
  0x4a   : > { %1131 = vmatprep.subr.bf16.mxu0 %v4061_v43 }
  0x4b   : > { %3724 = vmatpush3.bf16.msra.mxu1 %v4064_v45 }
  0x4c   : > { %3725 = vmatprep.subr.bf16.mxu1 %v4310_v12 }
  0x4d   : > { %1132 = vmatpush1.bf16.msra.mxu0 %v4063_v44 }
  0x4e   : > { %1133 = vmatprep.subr.bf16.mxu0 %v4065_v46 }
  0x4f   : > { %3726 = vmatpush3.bf16.msra.mxu1 %v4068_v48 }
  0x50   : > { %3727 = vmatprep.subr.bf16.mxu1 %v4310_v12 }
  0x51   : > { %1134 = vmatpush1.bf16.msra.mxu0 %v4067_v47 }
  0x52   : > { %1135 = vmatprep.subr.bf16.mxu0 %v4069_v49 }
  0x53   : > { %3728 = vmatpush3.bf16.msra.mxu1 %v4072_v51 }
  0x54   : > { %3729 = vmatprep.subr.bf16.mxu1 %v4310_v12 }
  0x55   : > { %1136 = vmatpush1.bf16.msra.mxu0 %v4071_v50 }
  0x56   : > { %1137 = vmatprep.subr.bf16.mxu0 %v4073_v52 }
  0x57   : > { %3730 = vmatpush3.bf16.msra.mxu1 %v4076_v55 }
  0x58   : > { %3743 = vmatprep.subr.bf16.mxu1 %v4310_v12 }
  0x59   : > { %1138 = vmatpush1.bf16.msra.mxu0 %v4075_v54 }
  0x5a   : > { %3779 = vmatprep.subr.bf16.mxu0 %v4310_v12 }
  0xc6   : > { %v866_v15 = vpop.xlane.xlu0 %865 }
  0xc7   : > { %v870_v16 = vpop.xlane.xlu1 %869  ;;  %v876_v17 = vmul.f32 0.0078125, %v866_v15  ;;  %v3480_v15 = vld [vmem:[%s5473_s28] ss:$0 sm:$0xff] }
  0xc8   : > { %v878_v18 = vmul.f32 0.0078125, %v870_v16 }
  0xc9   : > { %v4540_v19 = vsub.f32 %v858_v5, %v876_v17 }
  0xca   : > { %v4542_v20 = vsub.f32 %v860_v6, %v878_v18  ;;  %v868_v21 = vpop.xlane.xlu0 %867 }
  0xcb   : > { %v872_v22 = vpop.xlane.xlu1 %871  ;;  %v877_v23 = vmul.f32 0.0078125, %v868_v21  ;;  %v886_v24 = vmul.f32 %v4540_v19, %v4540_v19 }
  0xcc   : > { %v879_v25 = vmul.f32 0.0078125, %v872_v22  ;;  %v888_v28 = vmul.f32 %v4542_v20, %v4542_v20 }
  0xcd   : > { %v4546_v26 = vsub.f32 %v859_v7, %v877_v23  ;;  %891 = vadd.xlane.f32.xlu1 %v886_v24 }
  0xce   : > { %v4548_v27 = vsub.f32 %v861_v8, %v879_v25  ;;  %v874_v29 = vpop.xlane.xlu0 %873 }
  0xcf   : > { %v880_v30 = vmul.f32 0.0078125, %v874_v29  ;;  %v887_v31 = vmul.f32 %v4546_v26, %v4546_v26 }
  0xd0   : > { %v889_v33 = vmul.f32 %v4548_v27, %v4548_v27 }
  0xd1   : > { %v4554_v32 = vsub.f32 %v862_v9, %v880_v30  ;;  %895 = vadd.xlane.f32.xlu1 %v888_v28  ;;  %893 = vadd.xlane.f32.xlu0 %v887_v31  ;;  %v3479_v9 = vld [vmem:[%s5472_s17] ss:$0 sm:$0xff]  ;;  %s5490_s17 = scalar_lea.vmem %s5423_s10, %s4455_s23 }
  0xd3   : > { %v890_v34 = vmul.f32 %v4554_v32, %v4554_v32 }
  0xd5   : > { %897 = vadd.xlane.f32.xlu0 %v889_v33  ;;  %899 = vadd.xlane.f32.xlu1 %v890_v34 }
 0x15a   : > { %v892_v56 = vpop.xlane.xlu1 %891 }
 0x15b   : > { %v901_v57 = vmul.f32 0.0078125, %v892_v56 }
 0x15d   : > { %v906_v58 = vadd.f32 1e-05, %v901_v57 }
 0x15e   : > { %v896_v59 = vpop.xlane.xlu1 %895  ;;  %v894_v60 = vpop.xlane.xlu0 %893 }
 0x15f   : > { %4125 = vrsqrt.f32 %v906_v58  ;;  %v903_v61 = vmul.f32 0.0078125, %v896_v59  ;;  %v902_v62 = vmul.f32 0.0078125, %v894_v60 }
 0x161   : > { %v907_v63 = vadd.f32 1e-05, %v902_v62  ;;  %v908_v0 = vadd.f32 1e-05, %v903_v61 }
 0x162   : > { %v900_v1 = vpop.xlane.xlu1 %899  ;;  %v898_v2 = vpop.xlane.xlu0 %897 }
 0x163   : > { %v904_v3 = vmul.f32 0.0078125, %v898_v2  ;;  %4127 = vrsqrt.f32 %v907_v63  ;;  %v905_v4 = vmul.f32 0.0078125, %v900_v1 }
 0x164   : > { %4129 = vrsqrt.f32 %v908_v0 }
 0x165   : > { %v909_v5 = vadd.f32 1e-05, %v904_v3  ;;  %v910_v6 = vadd.f32 1e-05, %v905_v4 }
 0x167   : > { %4131 = vrsqrt.f32 %v909_v5 }
 0x168   : > { %4133 = vrsqrt.f32 %v910_v6 }
 0x169   : > { %v4126_v7 = vpop.eup %4125 }
 0x16a   : > { %v916_v8 = vmul.f32 %v4126_v7, %v4540_v19 }
 0x16c   : > { %v927_v13 = vmul.f32 %v3479_v9, %v916_v8 }
 0x16d   : > { %v4128_v10 = vpop.eup %4127 }
 0x16e   : > { %v917_v11 = vmul.f32 %v4128_v10, %v4546_v26  ;;  %v4130_v14 = vpop.eup %4129  ;;  %v938_v18 = vadd.f32 %v3480_v15, %v927_v13 }
 0x16f   : > { %v918_v21 = vmul.f32 %v4130_v14, %v4542_v20 }
 0x170   : > { %v928_v16 = vmul.f32 %v3479_v9, %v917_v11 }
 0x171   : > { %v4132_v17 = vpop.eup %4131  ;;  %v929_v26 = vmul.f32 %v3479_v9, %v918_v21 }
 0x172   : > { %v939_v19 = vadd.f32 %v3480_v15, %v928_v16  ;;  %v919_v22 = vmul.f32 %v4132_v17, %v4548_v27  ;;  %v4134_v25 = vpop.eup %4133 }
 0x173   : > { %v920_v29 = vmul.f32 %v4134_v25, %v4554_v32  ;;  %v940_v30 = vadd.f32 %v3480_v15, %v929_v26  ;;  %v980_v32 = vlaneseq }
 0x174   : > { %v943_v23 = vpack.c.bf16 %v939_v19, %v938_v18  ;;  %v930_v24 = vmul.f32 %v3479_v9, %v919_v22 }
 0x175   : > { %v931_v20 = vmul.f32 %v3479_v9, %v920_v29  ;;  %v4617_v34 = vshrl.u32 %v980_v32, 7 }
 0x176   : > { %1156 = vmatmul.mubr.bf16.vlgmr.msra.gmra.mrb[0].mxu0 %v943_v23  ;;  %3732 = vmatmul.mubr.bf16.vlgmr.msra.gmra.mrb[0].mxu1 %v943_v23  ;;  %v941_v28 = vadd.f32 %v3480_v15, %v930_v24 }
 0x177   : > { %1165 = vmatprep.mubr.bf16.mxu0 %v4311_v53  ;;  %3735 = vmatprep.mubr.msk.bf16.mxu1 %vm4312_vm0, %v4310_v12  ;;  %v942_v27 = vadd.f32 %v3480_v15, %v931_v20  ;;  %v4620_v35 = vsub.s32 0, %v4617_v34  ;;  %v990_v36 = vsub.s32 2, %v4617_v34  ;;  %v986_v38 = vsub.s32 1, %v4617_v34 }
 0x178   : > { %v944_v31 = vpack.c.bf16 %v941_v28, %v940_v30 }
 0x179   : > { %v945_v33 = vpack.c.bf16 %v942_v27, %v942_v27  ;;  %v4626_v39 = vrot.slane %v978_v37, %v4620_v35  ;;  %v4628_v40 = vrot.slane %v978_v37, %v990_v36  ;;  %v987_v43 = vrot.slane %v978_v37, %v986_v38 }
 0x17e   : > { %1166 = vmatmul.mubr.bf16.gmra.mrb[4].mxu0 %v944_v31  ;;  %3736 = vmatmul.mubr.bf16.gmra.mrb[4].mxu1 %v944_v31 }
 0x17f   : > { %1175 = vmatprep.mubr.bf16.mxu0 %v4311_v53  ;;  %3739 = vmatprep.mubr.msk.bf16.mxu1 %vm4312_vm0, %v4310_v12 }
 0x186   : > { %1176 = vmatmul.mubr.bf16.gmra.mrb[8].mxu0 %v945_v33  ;;  %3740 = vmatmul.mubr.bf16.gmra.mrb[8].mxu1 %v945_v33 }
 0x187   : > { %3749 = vmatprep.mubr.msk.bf16.mxu1 %vm4312_vm0, %v4310_v12  ;;  %3785 = vmatprep.mubr.msk.bf16.mxu0 %vm4312_vm0, %v4310_v12 }
 0x249   : > { %v1157_v41 = vpop.f32.mrb[0].mxu0  ;;  %v1218_v42 = vpop.f32.mrb[0].mxu1 }
 0x24a   : > { %v1159_v44 = vpop.f32.mrb[1].mxu0  ;;  %v3733_v45 = vpop.f32.mrb[1].mxu1  ;;  %v1158_v48 = vadd.f32 %v1157_v41, %v4626_v39  ;;  %v1219_v49 = vadd.f32 %v1218_v42, %v4628_v40 }
 0x24b   : > { %v1161_v46 = vpop.f32.mrb[2].mxu0  ;;  %v1221_v47 = vpop.f32.mrb[2].mxu1  ;;  %v1160_v55 = vadd.f32 %v1159_v44, %v987_v43 }
 0x24c   : > { %v1162_v50 = vadd.f32 %v1161_v46, %v4626_v39  ;;  %v1222_v51 = vadd.f32 %v1221_v47, %v4628_v40  ;;  %v1163_v52 = vpop.f32.mrb[3].mxu0  ;;  %v3734_v54 = vpop.f32.mrb[3].mxu1 }
 0x24d   : > { %v1164_v56 = vadd.f32 %v1163_v52, %v987_v43 }
 0x24e   : > { %v4636_v57 = vpack.c.bf16 %v1162_v50, %v1158_v48  ;;  %v4638_v58 = vpack.c.bf16 %v1222_v51, %v1219_v49 }
 0x24f   : > { %v1269_v59 = vpack.c.bf16 %v1164_v56, %v1160_v55 }
 0x251   : > { %1500 = vrot.lane.b32.xlu0 %v1269_v59, %s4313_s24  ;;  %v1167_v60 = vpop.f32.mrb[4].mxu0  ;;  %v1226_v61 = vpop.f32.mrb[4].mxu1  ;;  %v1286_v62 = vsel %vm1275_vm1, %v1269_v59, 0 }
 0x252   : > { %v1169_v63 = vpop.f32.mrb[5].mxu0  ;;  %v3737_v0 = vpop.f32.mrb[5].mxu1  ;;  %3744 = vmatpush3.bf16.xpose.msra.mxu1 %v1286_v62  ;;  %v1168_v3 = vadd.f32 %v1167_v60, %v4626_v39  ;;  %v1227_v4 = vadd.f32 %v1226_v61, %v4628_v40 }
 0x253   : > { %v1171_v1 = vpop.f32.mrb[6].mxu0  ;;  %v1229_v2 = vpop.f32.mrb[6].mxu1  ;;  %3745 = vmatprep.subr.bf16.mxu1 %v4310_v12  ;;  %v1170_v9 = vadd.f32 %v1169_v63, %v987_v43 }
 0x254   : > { %v1172_v5 = vadd.f32 %v1171_v1, %v4626_v39  ;;  %v1230_v6 = vadd.f32 %v1229_v2, %v4628_v40  ;;  %v1173_v7 = vpop.f32.mrb[7].mxu0  ;;  %v3738_v8 = vpop.f32.mrb[7].mxu1  ;;  %v1248_v1 = vld [vmem:[%s5475_s1] sm:$0x1] }
 0x255   : > { %v1174_v10 = vadd.f32 %v1173_v7, %v987_v43  ;;  %1733 = vrot.lane.b32.xlu0 %v1269_v59, %s4314_s20  ;;  %vm1249_vm3 = vcmp.gt.f32.partialorder %v1248_v1, 0.0 }
 0x256   : > { %v1267_v11 = vpack.c.bf16 %v1172_v5, %v1168_v3  ;;  %v4648_v13 = vpack.c.bf16 %v1230_v6, %v1227_v4  ;;  %v1255_v2 = vsel %vm1249_vm3, 1, %v4311_v53  ;;  %v4754_v3 = vand.u32 127, %v980_v32 }
 0x257   : > { %v1270_v14 = vpack.c.bf16 %v1174_v10, %v1170_v9  ;;  %v1259_v4 = vrot.slane %v1255_v2, %v4620_v35  ;;  %v1242_v5 = vadd.s32 8, %v4617_v34  ;;  %v1243_v10 = vadd.s32 16, %v4617_v34 }
 0x258   : > { %vm1250_vm4 = vcmp.le.s32.totalorder %v4754_v3, %v4617_v34  ;;  %vm2258_vm3 = vcmask 785408  }
 0x259   : > { %v1177_v15 = vpop.f32.mrb[8].mxu0  ;;  %v1234_v16 = vpop.f32.mrb[8].mxu1  ;;  %1735 = vrot.lane.b32.xlu0 %v1270_v14, %s4314_s20  ;;  %1502 = vrot.lane.b32.xlu1 %v1270_v14, %s4313_s24  ;;  %v1289_v17 = vsel %vm1275_vm1, %v1270_v14, 0  ;;  %vm4760_vm5 = vcmp.eq.s32.totalorder %v1259_v4, 1  ;;  %vm1251_vm6 = vcmp.le.s32.totalorder %v4754_v3, %v1242_v5  ;;  %vm1252_vm10 = vcmp.le.s32.totalorder %v4754_v3, %v1243_v10 }
 0x25a   : > { %v1179_v18 = vpop.f32.mrb[9].mxu0  ;;  %v3741_v19 = vpop.f32.mrb[9].mxu1  ;;  %3746 = vmatpush3.bf16.xpose.msra.mxu1 %v1289_v17  ;;  %v1178_v29 = vadd.f32 %v1177_v15, %v4626_v39  ;;  %v1235_v31 = vadd.f32 %v1234_v16, %v4628_v40  ;;  %vm4767_vm7 = vmand %vm1250_vm4, %vm4760_vm5 }
 0x25b   : > { %v1180_v21 = vadd.f32 %v1179_v18, %v987_v43  ;;  %v1181_v22 = vpop.f32.mrb[10].mxu0  ;;  %v1237_v23 = vpop.f32.mrb[10].mxu1  ;;  %3747 = vmatprep.subr.bf16.mxu1 %v4310_v12  ;;  %vm4774_vm9 = vmand %vm1251_vm6, %vm4760_vm5  ;;  %v1244_v18 = vadd.s32 24, %v4617_v34 }
 0x25c   : > { %v1182_v24 = vpop.f32.mrb[11].mxu0  ;;  %v3742_v25 = vpop.f32.mrb[11].mxu1  ;;  %v1268_v30 = vpack.c.bf16 %v1178_v29, %v1178_v29  ;;  %v4673_v20 = vpack.c.bf16 %v1235_v31, %v1235_v31  ;;  %vm4795_vm12 = vmand %vm1252_vm10, %vm4760_vm5 }
 0x25d   : > { %v1271_v26 = vpack.c.bf16 %v1180_v21, %v1180_v21  ;;  %vm1253_vm11 = vcmp.le.s32.totalorder %v4754_v3, %v1244_v18 }
 0x25e   : > { %v1420_v27 = vsel %vm1418_vm2, %v4673_v20, 0  ;;  %vm4802_vm13 = vmand %vm1253_vm11, %vm4760_vm5 }
 0x25f   : > { %1737 = vrot.lane.b32.xlu0 %v1271_v26, %s4314_s20  ;;  %1504 = vrot.lane.b32.xlu1 %v1271_v26, %s4313_s24  ;;  %v1292_v28 = vsel %vm1275_vm1, %v1271_v26, 0 }
 0x262   : > { %3748 = vmatpush3.bf16.xpose.msra.mxu1 %v1292_v28  ;;  %v1245_v28 = vadd.s32 32, %v4617_v34 }
 0x263   : > { %1963 = vrot.lane.b32.xlu0 %v1269_v59, %s4315_s15  ;;  %1491 = vrot.lane.b32.xlu1 %v4636_v57, %s4313_s24 }
 0x264   : > { %3761 = vmatprep.subr.bf16.mxu1 %v4310_v12  ;;  %vm1254_vm14 = vcmp.le.s32.totalorder %v4754_v3, %v1245_v28 }
 0x265   : > { %vm4821_vm15 = vmand %vm1254_vm14, %vm4760_vm5 }
 0x267   : > { %1965 = vrot.lane.b32.xlu0 %v1270_v14, %s4315_s15  ;;  %1493 = vrot.lane.b32.xlu1 %v1267_v11, %s4313_s24 }
 0x269   : > { %3750 = vmatmul.mubr.msk.bf16.vlgmr.msra.gmra.mrb[12].mxu1 %vm1275_vm1, %v4636_v57 }
 0x26a   : > { %3762 = vmatpush3.bf16.msra.mxu1 %v4638_v58  ;;  %3753 = vmatprep.mubr.msk.bf16.mxu1 %vm4312_vm0, %v4310_v12 }
 0x26b   : > { %1967 = vrot.lane.b32.xlu0 %v1271_v26, %s4315_s15  ;;  %1495 = vrot.lane.b32.xlu1 %v1268_v30, %s4313_s24 }
 0x26c   : > { %3763 = vmatprep.subr.bf16.mxu1 %v4310_v12 }
 0x26e   : > { %3764 = vmatpush3.bf16.msra.mxu1 %v4648_v13 }
 0x26f   : > { %1959 = vrot.lane.b32.xlu0 %v1267_v11, %s4315_s15  ;;  %1727 = vrot.lane.b32.xlu1 %v4636_v57, %s4314_s20 }
 0x270   : > { %3765 = vmatprep.subr.bf16.mxu1 %v4310_v12 }
 0x271   : > { %3754 = vmatmul.mubr.msk.bf16.gmra.mrb[16].mxu1 %vm1275_vm1, %v1267_v11 }
 0x272   : > { %3766 = vmatpush3.bf16.msra.mxu1 %v1420_v27  ;;  %3757 = vmatprep.mubr.msk.bf16.mxu1 %vm4312_vm0, %v4310_v12 }
 0x273   : > { %1641 = vrot.lane.b32.xlu0 %v4638_v58, %s4313_s24  ;;  %1729 = vrot.lane.b32.xlu1 %v1267_v11, %s4314_s20 }
 0x274   : > { %3797 = vmatprep.subr.bf16.mxu1 %v4310_v12 }
 0x277   : > { %1645 = vrot.lane.b32.xlu0 %v4673_v20, %s4313_s24  ;;  %1731 = vrot.lane.b32.xlu1 %v1268_v30, %s4314_s20 }
 0x279   : > { %3758 = vmatmul.mubr.msk.bf16.gmra.mrb[20].mxu1 %vm1275_vm1, %v1268_v30 }
 0x27a   : > { %3767 = vmatprep.mubr.msk.bf16.mxu1 %vm4312_vm0, %v4310_v12 }
 0x27b   : > { %1957 = vrot.lane.b32.xlu1 %v4636_v57, %s4315_s15 }
 0x27f   : > { %1961 = vrot.lane.b32.xlu1 %v1268_v30, %s4315_s15 }
 0x283   : > { %1643 = vrot.lane.b32.xlu1 %v4648_v13, %s4313_s24 }
 0x287   : > { %1871 = vrot.lane.b32.xlu1 %v4638_v58, %s4314_s20 }
 0x2c3   : > { %v1501_v33 = vpop.permute.xlu0 %1500 }
 0x2c4   : > { %v1516_v36 = vsel %vm1275_vm1, %v1501_v33, 0 }
 0x2c5   : > { %3780 = vmatpush3.bf16.xpose.msra.mxu0 %v1516_v36 }
 0x2c6   : > { %3781 = vmatprep.subr.bf16.mxu0 %v4310_v12 }
 0x2c7   : > { %v1734_v42 = vpop.permute.xlu0 %1733 }
 0x2c8   : > { %v1749_v44 = vsel %vm1275_vm1, %v1734_v42, 0 }
 0x2cb   : > { %v1503_v37 = vpop.permute.xlu1 %1502  ;;  %v1736_v45 = vpop.permute.xlu0 %1735 }
 0x2cc   : > { %v1519_v39 = vsel %vm1275_vm1, %v1503_v37, 0  ;;  %v1752_v47 = vsel %vm1275_vm1, %v1736_v45, 0 }
 0x2cd   : > { %3782 = vmatpush3.bf16.xpose.msra.mxu0 %v1519_v39 }
 0x2ce   : > { %3783 = vmatprep.subr.bf16.mxu0 %v4310_v12 }
 0x2d1   : > { %v1505_v40 = vpop.permute.xlu1 %1504  ;;  %v1738_v48 = vpop.permute.xlu0 %1737 }
 0x2d2   : > { %v1522_v41 = vsel %vm1275_vm1, %v1505_v40, 0  ;;  %v1755_v50 = vsel %vm1275_vm1, %v1738_v48, 0 }
 0x2d5   : > { %3784 = vmatpush3.bf16.xpose.msra.mxu0 %v1522_v41  ;;  %v1492_v43 = vpop.permute.xlu1 %1491  ;;  %v1964_v51 = vpop.permute.xlu0 %1963 }
 0x2d6   : > { %3815 = vmatprep.subr.bf16.mxu0 %v4310_v12  ;;  %v1979_v54 = vsel %vm1275_vm1, %v1964_v51, 0 }
 0x2d9   : > { %v1494_v46 = vpop.permute.xlu1 %1493  ;;  %v1966_v55 = vpop.permute.xlu0 %1965 }
 0x2da   : > { %v1982_v57 = vsel %vm1275_vm1, %v1966_v55, 0 }
 0x2dc   : > { %3786 = vmatmul.mubr.msk.bf16.vlgmr.msra.gmra.mrb[12].mxu0 %vm1275_vm1, %v1492_v43 }
 0x2dd   : > { %3816 = vmatpush3.bf16.xpose.msra.mxu0 %v1749_v44  ;;  %3789 = vmatprep.mubr.msk.bf16.mxu0 %vm4312_vm0, %v4310_v12  ;;  %v1496_v49 = vpop.permute.xlu1 %1495  ;;  %v1968_v59 = vpop.permute.xlu0 %1967 }
 0x2de   : > { %3817 = vmatprep.subr.bf16.mxu0 %v4310_v12  ;;  %v1985_v61 = vsel %vm1275_vm1, %v1968_v59, 0 }
 0x2e1   : > { %v1728_v52 = vpop.permute.xlu1 %1727  ;;  %v1960_v63 = vpop.permute.xlu0 %1959 }
 0x2e4   : > { %3790 = vmatmul.mubr.msk.bf16.gmra.mrb[16].mxu0 %vm1275_vm1, %v1494_v46 }
 0x2e5   : > { %3818 = vmatpush3.bf16.xpose.msra.mxu0 %v1752_v47  ;;  %3793 = vmatprep.mubr.msk.bf16.mxu0 %vm4312_vm0, %v4310_v12  ;;  %v1730_v56 = vpop.permute.xlu1 %1729  ;;  %v1642_v18 = vpop.permute.xlu0 %1641 }
 0x2e6   : > { %3819 = vmatprep.subr.bf16.mxu0 %v4310_v12 }
 0x2e9   : > { %v1732_v60 = vpop.permute.xlu1 %1731  ;;  %v4863_v28 = vpop.permute.xlu0 %1645 }
 0x2ec   : > { %3794 = vmatmul.mubr.msk.bf16.gmra.mrb[20].mxu0 %vm1275_vm1, %v1496_v49 }
 0x2ed   : > { %3820 = vmatpush3.bf16.xpose.msra.mxu0 %v1755_v50  ;;  %3821 = vmatprep.mubr.msk.bf16.mxu0 %vm4312_vm0, %v4310_v12  ;;  %v1958_v62 = vpop.permute.xlu1 %1957 }
 0x2ee   : > { %3851 = vmatprep.subr.bf16.mxu0 %v4310_v12 }
 0x2f1   : > { %v1962_v0 = vpop.permute.xlu1 %1961 }
 0x2f4   : > { %3822 = vmatmul.mubr.msk.bf16.vlgmr.msra.gmra.mrb[24].mxu0 %vm1275_vm1, %v1728_v52 }
 0x2f5   : > { %3852 = vmatpush3.bf16.xpose.msra.mxu0 %v1979_v54  ;;  %3825 = vmatprep.mubr.msk.bf16.mxu0 %vm4312_vm0, %v4310_v12 }
 0x2f6   : > { %3853 = vmatprep.subr.bf16.mxu0 %v4310_v12 }
 0x2fc   : > { %3826 = vmatmul.mubr.msk.bf16.gmra.mrb[28].mxu0 %vm1275_vm1, %v1730_v56 }
 0x2fd   : > { %3854 = vmatpush3.bf16.xpose.msra.mxu0 %v1982_v57  ;;  %3829 = vmatprep.mubr.msk.bf16.mxu0 %vm4312_vm0, %v4310_v12 }
 0x2fe   : > { %3855 = vmatprep.subr.bf16.mxu0 %v4310_v12 }
 0x304   : > { %3830 = vmatmul.mubr.msk.bf16.gmra.mrb[32].mxu0 %vm1275_vm1, %v1732_v60 }
 0x305   : > { %3856 = vmatpush3.bf16.xpose.msra.mxu0 %v1985_v61  ;;  %3857 = vmatprep.mubr.msk.bf16.mxu0 %vm4312_vm0, %v4310_v12 }
 0x306   : > { %3887 = vmatprep.subr.bf16.mxu0 %v4310_v12 }
 0x30c   : > { %3858 = vmatmul.mubr.msk.bf16.vlgmr.msra.gmra.mrb[36].mxu0 %vm1275_vm1, %v1958_v62 }
 0x30d   : > { %3861 = vmatprep.mubr.msk.bf16.mxu0 %vm4312_vm0, %v4310_v12 }
 0x314   : > { %3862 = vmatmul.mubr.msk.bf16.gmra.mrb[40].mxu0 %vm1275_vm1, %v1960_v63 }
 0x315   : > { %3865 = vmatprep.mubr.msk.bf16.mxu0 %vm4312_vm0, %v4310_v12 }
 0x31c   : > { %3866 = vmatmul.mubr.msk.bf16.gmra.mrb[44].mxu0 %vm1275_vm1, %v1962_v0 }
 0x31d   : > { %3903 = vmatprep.mubr.msk.bf16.mxu0 %vm4312_vm0, %v4310_v12 }
 0x33c   : > { %v1328_v7 = vpop.f32.mrb[12].mxu1 }
 0x33d   : > { %v1350_v32 = vmul.f32 0.17677669, %v1328_v7  ;;  %v3751_v9 = vpop.f32.mrb[13].mxu1 }
 0x33e   : > { %v1331_v11 = vpop.f32.mrb[14].mxu1 }
 0x33f   : > { %v1351_v15 = vmul.f32 0.17677669, %v1331_v11  ;;  %v3752_v16 = vpop.f32.mrb[15].mxu1  ;;  %v4780_v17 = vsel %vm4767_vm7, %v1350_v32, -1e+30 }
 0x340   : > { %v1361_v19 = vsel %vm1360_vm8, %v4780_v17, -inf }
 0x341   : > { %1362 = vmax.xlane.f32.xlu0 %v1361_v19  ;;  %v4787_v21 = vsel %vm4774_vm9, %v1351_v15, -1e+30  ;;  %v1644_v19 = vpop.permute.xlu1 %1643 }
 0x342   : > { %v1364_v22 = vsel %vm1360_vm8, %v4787_v21, -inf }
 0x343   : > { %1365 = vmax.xlane.f32.xlu1 %v1364_v22 }
 0x344   : > { %v1336_v23 = vpop.f32.mrb[16].mxu1 }
 0x345   : > { %v1352_v25 = vmul.f32 0.17677669, %v1336_v23  ;;  %v3755_v26 = vpop.f32.mrb[17].mxu1 }
 0x346   : > { %v1339_v29 = vpop.f32.mrb[18].mxu1 }
 0x347   : > { %v1353_v31 = vmul.f32 0.17677669, %v1339_v29  ;;  %v3756_v27 = vpop.f32.mrb[19].mxu1  ;;  %v4808_v33 = vsel %vm4795_vm12, %v1352_v25, -1e+30 }
 0x348   : > { %v1367_v36 = vsel %vm1360_vm8, %v4808_v33, -inf }
 0x349   : > { %1368 = vmax.xlane.f32.xlu0 %v1367_v36  ;;  %v4814_v37 = vsel %vm4802_vm13, %v1353_v31, -1e+30  ;;  %v4871_v36 = vpop.permute.xlu1 %1871 }
 0x34a   : > { %v1370_v40 = vsel %vm1360_vm8, %v4814_v37, -inf }
 0x34c   : > { %v1344_v39 = vpop.f32.mrb[20].mxu1 }
 0x34d   : > { %v1354_v42 = vmul.f32 0.17677669, %v1344_v39  ;;  %1371 = vmax.xlane.f32.xlu0 %v1370_v40  ;;  %v3759_v43 = vpop.f32.mrb[21].mxu1 }
 0x34e   : > { %v1347_v44 = vpop.f32.mrb[22].mxu1 }
 0x34f   : > { %v3760_v45 = vpop.f32.mrb[23].mxu1  ;;  %v4827_v46 = vsel %vm4821_vm15, %v1354_v42, -1e+30 }
 0x350   : > { %v1373_v47 = vsel %vm1360_vm8, %v4827_v46, -inf }
 0x351   : > { %1374 = vmax.xlane.f32.xlu0 %v1373_v47 }
 0x3af   : > { %v1558_v48 = vpop.f32.mrb[12].mxu0 }
 0x3b0   : > { %v1580_v49 = vmul.f32 0.17677669, %v1558_v48  ;;  %v3787_v50 = vpop.f32.mrb[13].mxu0 }
 0x3b1   : > { %v1561_v51 = vpop.f32.mrb[14].mxu0 }
 0x3b2   : > { %v1581_v52 = vmul.f32 0.17677669, %v1561_v51  ;;  %v3788_v54 = vpop.f32.mrb[15].mxu0  ;;  %v4833_v55 = vsel %vm4767_vm7, %v1580_v49, -1e+30 }
 0x3b3   : > { %v1590_v56 = vsel %vm1360_vm8, %v4833_v55, -inf }
 0x3b4   : > { %1591 = vmax.xlane.f32.xlu1 %v1590_v56  ;;  %v4839_v57 = vsel %vm4774_vm9, %v1581_v52, -1e+30 }
 0x3b5   : > { %v1593_v59 = vsel %vm1360_vm8, %v4839_v57, -inf }
 0x3b6   : > { %1594 = vmax.xlane.f32.xlu0 %v1593_v59 }
 0x3b7   : > { %v1566_v60 = vpop.f32.mrb[16].mxu0 }
 0x3b8   : > { %v1582_v61 = vmul.f32 0.17677669, %v1566_v60  ;;  %v3791_v62 = vpop.f32.mrb[17].mxu0 }
 0x3b9   : > { %v1569_v63 = vpop.f32.mrb[18].mxu0 }
 0x3ba   : > { %v1583_v0 = vmul.f32 0.17677669, %v1569_v63  ;;  %v3792_v1 = vpop.f32.mrb[19].mxu0  ;;  %v4845_v2 = vsel %vm4795_vm12, %v1582_v61, -1e+30 }
 0x3bb   : > { %v1596_v4 = vsel %vm1360_vm8, %v4845_v2, -inf }
 0x3bc   : > { %1597 = vmax.xlane.f32.xlu1 %v1596_v4  ;;  %v4851_v5 = vsel %vm4802_vm13, %v1583_v0, -1e+30 }
 0x3bd   : > { %v1599_v6 = vsel %vm1360_vm8, %v4851_v5, -inf }
 0x3be   : > { %1600 = vmax.xlane.f32.xlu0 %v1599_v6 }
 0x3bf   : > { %v1574_v7 = vpop.f32.mrb[20].mxu0 }
 0x3c0   : > { %v1584_v32 = vmul.f32 0.17677669, %v1574_v7  ;;  %v3795_v9 = vpop.f32.mrb[21].mxu0 }
 0x3c1   : > { %v1577_v10 = vpop.f32.mrb[22].mxu0 }
 0x3c2   : > { %v3796_v11 = vpop.f32.mrb[23].mxu0  ;;  %v4857_v15 = vsel %vm4821_vm15, %v1584_v32, -1e+30 }
 0x3c3   : > { %v1602_v16 = vsel %vm1360_vm8, %v4857_v15, -inf }
 0x3c4   : > { %1603 = vmax.xlane.f32.xlu1 %v1602_v16 }
 0x3c7   : > { %v1791_v22 = vpop.f32.mrb[24].mxu0 }
 0x3c8   : > { %v1813_v23 = vmul.f32 0.17677669, %v1791_v22  ;;  %v3823_v25 = vpop.f32.mrb[25].mxu0 }
 0x3c9   : > { %v4861_v26 = vpop.f32.mrb[26].mxu0 }
 0x3ca   : > { %v3824_v29 = vpop.f32.mrb[27].mxu0  ;;  %v4867_v31 = vsel %vm4767_vm7, %v1813_v23, -1e+30 }
 0x3cb   : > { %v1823_v27 = vsel %vm1360_vm8, %v4867_v31, -inf }
 0x3cc   : > { %1824 = vmax.xlane.f32.xlu1 %v1823_v27 }
 0x3ce   : > { %v1363_v39 = vpop.xlane.xlu0 %1362 }
 0x3cf   : > { %v1376_v40 = vsub.f32 %v4780_v17, %v1363_v39  ;;  %v1799_v42 = vpop.f32.mrb[28].mxu0 }
 0x3d0   : > { %v1815_v43 = vmul.f32 0.17677669, %v1799_v42  ;;  %v1366_v44 = vpop.xlane.xlu1 %1365  ;;  %v3827_v45 = vpop.f32.mrb[29].mxu0 }
 0x3d1   : > { %v1381_v47 = vmul.f32 1.442695, %v1376_v40  ;;  %v1377_v48 = vsub.f32 %v4787_v21, %v1366_v44  ;;  %v1802_v49 = vpop.f32.mrb[30].mxu0  ;;  %v1659_v45 = vsel %vm1418_vm2, %v4863_v28, 0 }
 0x3d2   : > { %v1816_v50 = vmul.f32 0.17677669, %v1802_v49  ;;  %v3828_v51 = vpop.f32.mrb[31].mxu0  ;;  %v4877_v52 = vsel %vm4795_vm12, %v1815_v43, -1e+30 }
 0x3d3   : > { %v1383_v54 = vmul.f32 1.442695, %v1377_v48  ;;  %v1829_v56 = vsel %vm1360_vm8, %v4877_v52, -inf  ;;  %4135 = vpow2.f32 %v1381_v47  ;;  %v1814_v48 = vmul.f32 0.17677669, %v4861_v26 }
 0x3d4   : > { %1873 = vrot.lane.b32.xlu0 %v4648_v13, %s4314_s20  ;;  %1830 = vmax.xlane.f32.xlu1 %v1829_v56  ;;  %v4885_v17 = vsel %vm4802_vm13, %v1816_v50, -1e+30 }
 0x3d5   : > { %4137 = vpow2.f32 %v1383_v54  ;;  %v1832_v61 = vsel %vm1360_vm8, %v4885_v17, -inf  ;;  %v4928_v50 = vsel %vm4774_vm9, %v1814_v48, -1e+30 }
 0x3d6   : > { %v1369_v21 = vpop.xlane.xlu0 %1368  ;;  %v1826_v56 = vsel %vm1360_vm8, %v4928_v50, -inf }
 0x3d7   : > { %v1378_v59 = vsub.f32 %v4808_v33, %v1369_v21  ;;  %v1807_v60 = vpop.f32.mrb[32].mxu0 }
 0x3d8   : > { %v1817_v62 = vmul.f32 0.17677669, %v1807_v60  ;;  %1833 = vmax.xlane.f32.xlu1 %v1832_v61  ;;  %v3831_v63 = vpop.f32.mrb[33].mxu0 }
 0x3d9   : > { %v1810_v0 = vpop.f32.mrb[34].mxu0  ;;  %v1385_v1 = vmul.f32 1.442695, %v1378_v59 }
 0x3da   : > { %v3832_v4 = vpop.f32.mrb[35].mxu0  ;;  %v1372_v6 = vpop.xlane.xlu0 %1371  ;;  %v4892_v7 = vsel %vm4821_vm15, %v1817_v62, -1e+30 }
 0x3db   : > { %v1379_v32 = vsub.f32 %v4814_v37, %v1372_v6  ;;  %v1835_v33 = vsel %vm1360_vm8, %v4892_v7, -inf  ;;  %4139 = vpow2.f32 %v1385_v1 }
 0x3dc   : > { %1836 = vmax.xlane.f32.xlu1 %v1835_v33 }
 0x3dd   : > { %v1387_v9 = vmul.f32 1.442695, %v1379_v32  ;;  %v4897_v10 = vpop.eup %4135 }
 0x3de   : > { %v1375_v11 = vpop.xlane.xlu0 %1374 }
 0x3df   : > { %v4899_v16 = vpop.eup %4137  ;;  %4141 = vpow2.f32 %v1387_v9  ;;  %v1380_v22 = vsub.f32 %v4827_v46, %v1375_v11  ;;  %v2021_v23 = vpop.f32.mrb[36].mxu0 }
 0x3e0   : > { %v1406_v25 = vpack.c.bf16 %v4899_v16, %v4897_v10  ;;  %v3859_v29 = vpop.f32.mrb[37].mxu0  ;;  %v2043_v28 = vmul.f32 0.17677669, %v2021_v23 }
 0x3e1   : > { %v1389_v37 = vmul.f32 1.442695, %v1380_v22  ;;  %v2024_v27 = vpop.f32.mrb[38].mxu0 }
 0x3e2   : > { %3768 = vmatmul.mubr.msk.bf16.vlgmr.msra.gmra.mrb[24].mxu1 %vm1360_vm8, %v1406_v25  ;;  %v3860_v39 = vpop.f32.mrb[39].mxu0  ;;  %v4936_v21 = vsel %vm4767_vm7, %v2043_v28, -1e+30  ;;  %v2044_v60 = vmul.f32 0.17677669, %v2024_v27 }
 0x3e3   : > { %3798 = vmatpush3.bf16.msra.mxu1 %v1642_v18  ;;  %3771 = vmatprep.mubr.msk.bf16.mxu1 %vm4312_vm0, %v4310_v12  ;;  %4143 = vpow2.f32 %v1389_v37  ;;  %v2053_v59 = vsel %vm1360_vm8, %v4936_v21, -inf }
 0x3e4   : > { %3799 = vmatprep.subr.bf16.mxu1 %v4310_v12  ;;  %v4947_v62 = vsel %vm4774_vm9, %v2044_v60, -1e+30 }
 0x3e5   : > { %v4908_v46 = vpop.eup %4139  ;;  %v2056_v8 = vsel %vm1360_vm8, %v4947_v62, -inf }
 0x3e7   : > { %3800 = vmatpush3.bf16.msra.mxu1 %v1644_v19  ;;  %v2029_v40 = vpop.f32.mrb[40].mxu0 }
 0x3e8   : > { %v3863_v42 = vpop.f32.mrb[41].mxu0  ;;  %3801 = vmatprep.subr.bf16.mxu1 %v4310_v12  ;;  %v2045_v61 = vmul.f32 0.17677669, %v2029_v40 }
 0x3e9   : > { %v4911_v43 = vpop.eup %4141  ;;  %v2032_v44 = vpop.f32.mrb[42].mxu0 }
 0x3ea   : > { %v3864_v18 = vpop.f32.mrb[43].mxu0  ;;  %v1407_v47 = vpack.c.bf16 %v4911_v43, %v4908_v46  ;;  %v2046_v63 = vmul.f32 0.17677669, %v2032_v44  ;;  %v4953_v0 = vsel %vm4795_vm12, %v2045_v61, -1e+30 }
 0x3eb   : > { %3802 = vmatpush3.bf16.msra.mxu1 %v1659_v45  ;;  %v2059_v1 = vsel %vm1360_vm8, %v4953_v0, -inf }
 0x3ec   : > { %3772 = vmatmul.mubr.msk.bf16.gmra.mrb[28].mxu1 %vm1360_vm8, %v1407_v47  ;;  %3833 = vmatprep.subr.bf16.mxu1 %v4310_v12  ;;  %v4959_v4 = vsel %vm4802_vm13, %v2046_v63, -1e+30 }
 0x3ed   : > { %2101 = vrot.lane.b32.xlu1 %v4638_v58, %s4315_s15  ;;  %3775 = vmatprep.mubr.msk.bf16.mxu1 %vm4312_vm0, %v4310_v12  ;;  %v4924_v19 = vpop.eup %4143  ;;  %v2062_v14 = vsel %vm1360_vm8, %v4959_v4, -inf }
 0x3ee   : > { %v1408_v58 = vpack.c.bf16 %v4924_v19, %v4924_v19 }
 0x3ef   : > { %v2037_v49 = vpop.f32.mrb[44].mxu0 }
 0x3f0   : > { %v3867_v26 = vpop.f32.mrb[45].mxu0  ;;  %v2047_v6 = vmul.f32 0.17677669, %v2037_v49 }
 0x3f1   : > { %v2040_v51 = vpop.f32.mrb[46].mxu0 }
 0x3f2   : > { %v3868_v54 = vpop.f32.mrb[47].mxu0  ;;  %v4965_v32 = vsel %vm4821_vm15, %v2047_v6, -1e+30 }
 0x3f3   : > { %1827 = vmax.xlane.f32.xlu0 %v1826_v56  ;;  %v2065_v24 = vsel %vm1360_vm8, %v4965_v32, -inf }
 0x3f4   : > { %3776 = vmatmul.mubr.msk.bf16.gmra.mrb[32].mxu1 %vm1360_vm8, %v1408_v58 }
 0x3f5   : > { %3803 = vmatprep.mubr.msk.bf16.mxu1 %vm4312_vm0, %v4310_v12 }
 0x3f7   : > { %2054 = vmax.xlane.f32.xlu0 %v2053_v59 }
 0x40d   : > { %1875 = vrot.lane.b32.xlu0 %v4673_v20, %s4314_s20 }
 0x411   : > { %2057 = vmax.xlane.f32.xlu1 %v2056_v8 }
 0x415   : > { %2060 = vmax.xlane.f32.xlu1 %v2059_v1 }
 0x419   : > { %2063 = vmax.xlane.f32.xlu1 %v2062_v14 }
 0x42a   : > { %2103 = vrot.lane.b32.xlu1 %v4648_v13, %s4315_s15 }
 0x42c   : > { %2066 = vmax.xlane.f32.xlu0 %v2065_v24 }
 0x42e   : > { %2105 = vrot.lane.b32.xlu1 %v4673_v20, %s4315_s15 }
 0x441   : > { %v1592_v30 = vpop.xlane.xlu1 %1591 }
 0x442   : > { %v1605_v33 = vsub.f32 %v4833_v55, %v1592_v30 }
 0x443   : > { %v1595_v9 = vpop.xlane.xlu0 %1594 }
 0x444   : > { %v1610_v11 = vmul.f32 1.442695, %v1605_v33  ;;  %v1606_v22 = vsub.f32 %v4839_v57, %v1595_v9 }
 0x446   : > { %4145 = vpow2.f32 %v1610_v11  ;;  %v1612_v41 = vmul.f32 1.442695, %v1606_v22 }
 0x448   : > { %4147 = vpow2.f32 %v1612_v41 }
 0x449   : > { %v1598_v23 = vpop.xlane.xlu1 %1597 }
 0x44a   : > { %v1607_v13 = vsub.f32 %v4845_v2, %v1598_v23 }
 0x44b   : > { %v1601_v25 = vpop.xlane.xlu0 %1600 }
 0x44c   : > { %v1614_v29 = vmul.f32 1.442695, %v1607_v13  ;;  %v1608_v37 = vsub.f32 %v4851_v5, %v1601_v25 }
 0x44e   : > { %4149 = vpow2.f32 %v1614_v29  ;;  %v1616_v27 = vmul.f32 1.442695, %v1608_v37 }
 0x44f   : > { %v1874_v5 = vpop.permute.xlu0 %1873 }
 0x450   : > { %v4146_v20 = vpop.eup %4145  ;;  %4151 = vpow2.f32 %v1616_v27 }
 0x451   : > { %v1604_v39 = vpop.xlane.xlu1 %1603  ;;  %v1620_v55 = vsel %vm1360_vm8, %v4146_v20, 0.0 }
 0x452   : > { %v4148_v40 = vpop.eup %4147  ;;  %v1609_v57 = vsub.f32 %v4857_v15, %v1604_v39  ;;  %1621 = vadd.xlane.f32.xlu1 %v1620_v55 }
 0x453   : > { %v1635_v42 = vpack.c.bf16 %v4148_v40, %v4146_v20  ;;  %v1623_v44 = vsel %vm1360_vm8, %v4148_v40, 0.0 }
 0x454   : > { %v1618_v45 = vmul.f32 1.442695, %v1609_v57  ;;  %1624 = vadd.xlane.f32.xlu0 %v1623_v44 }
 0x455   : > { %3804 = vmatmul.mubr.msk.bf16.vlgmr.msra.gmra.mrb[36].mxu1 %vm1360_vm8, %v1635_v42 }
 0x456   : > { %4153 = vpow2.f32 %v1618_v45  ;;  %3834 = vmatpush3.bf16.msra.mxu1 %v4871_v36  ;;  %3807 = vmatprep.mubr.msk.bf16.mxu1 %vm4312_vm0, %v4310_v12 }
 0x457   : > { %3835 = vmatprep.subr.bf16.mxu1 %v4310_v12 }
 0x458   : > { %v4150_v2 = vpop.eup %4149 }
 0x459   : > { %v1825_v18 = vpop.xlane.xlu1 %1824  ;;  %v1626_v15 = vsel %vm1360_vm8, %v4150_v2, 0.0 }
 0x45a   : > { %v4152_v47 = vpop.eup %4151  ;;  %v1838_v48 = vsub.f32 %v4867_v31, %v1825_v18  ;;  %3836 = vmatpush3.bf16.msra.mxu1 %v1874_v5  ;;  %1627 = vadd.xlane.f32.xlu0 %v1626_v15 }
 0x45b   : > { %v1636_v28 = vpack.c.bf16 %v4152_v47, %v4150_v2  ;;  %3837 = vmatprep.subr.bf16.mxu1 %v4310_v12  ;;  %v1629_v36 = vsel %vm1360_vm8, %v4152_v47, 0.0 }
 0x45c   : > { %v1843_v49 = vmul.f32 1.442695, %v1838_v48 }
 0x45d   : > { %3808 = vmatmul.mubr.msk.bf16.gmra.mrb[40].mxu1 %vm1360_vm8, %v1636_v28 }
 0x45e   : > { %4155 = vpow2.f32 %v1843_v49  ;;  %1630 = vadd.xlane.f32.xlu0 %v1629_v36  ;;  %3811 = vmatprep.mubr.msk.bf16.mxu1 %vm4312_vm0, %v4310_v12 }
 0x460   : > { %v4992_v26 = vpop.eup %4153 }
 0x461   : > { %v1831_v51 = vpop.xlane.xlu1 %1830  ;;  %v1637_v54 = vpack.c.bf16 %v4992_v26, %v4992_v26 }
 0x462   : > { %v1840_v31 = vsub.f32 %v4877_v52, %v1831_v51 }
 0x464   : > { %v1847_v56 = vmul.f32 1.442695, %v1840_v31 }
 0x465   : > { %3812 = vmatmul.mubr.msk.bf16.gmra.mrb[44].mxu1 %vm1360_vm8, %v1637_v54  ;;  %v1834_v8 = vpop.xlane.xlu1 %1833  ;;  %v1632_v54 = vsel %vm1360_vm8, %v4992_v26, 0.0  ;;  %v1391_v26 = vsel %vm1360_vm8, %v4897_v10, 0.0 }
 0x466   : > { %4157 = vpow2.f32 %v1847_v56  ;;  %3839 = vmatprep.mubr.msk.bf16.mxu1 %vm4312_vm0, %v4310_v12  ;;  %v1841_v1 = vsub.f32 %v4885_v17, %v1834_v8 }
 0x468   : > { %v4156_v58 = vpop.eup %4155  ;;  %v1849_v30 = vmul.f32 1.442695, %v1841_v1 }
 0x469   : > { %v1853_v59 = vsel %vm1360_vm8, %v4156_v58, 0.0  ;;  %v1837_v9 = vpop.xlane.xlu1 %1836 }
 0x46a   : > { %1854 = vadd.xlane.f32.xlu0 %v1853_v59  ;;  %v1842_v41 = vsub.f32 %v4892_v7, %v1837_v9 }
 0x46c   : > { %v1851_v17 = vmul.f32 1.442695, %v1842_v41 }
 0x470   : > { %v4158_v60 = vpop.eup %4157 }
 0x471   : > { %v1859_v61 = vsel %vm1360_vm8, %v4158_v60, 0.0 }
 0x472   : > { %1860 = vadd.xlane.f32.xlu1 %v1859_v61 }
 0x480   : > { %v1828_v52 = vpop.xlane.xlu0 %1827 }
 0x481   : > { %v1839_v63 = vsub.f32 %v4928_v50, %v1828_v52 }
 0x483   : > { %v1845_v14 = vmul.f32 1.442695, %v1839_v63 }
 0x484   : > { %v2055_v6 = vpop.xlane.xlu0 %2054 }
 0x485   : > { %4159 = vpow2.f32 %v1845_v14  ;;  %v2068_v24 = vsub.f32 %v4936_v21, %v2055_v6  ;;  %v2102_v21 = vpop.permute.xlu1 %2101 }
 0x487   : > { %v2073_v33 = vmul.f32 1.442695, %v2068_v24  ;;  %v1397_v24 = vsel %vm1360_vm8, %v4908_v46, 0.0  ;;  %v1394_v46 = vsel %vm1360_vm8, %v4899_v16, 0.0 }
 0x488   : > { %v1876_v11 = vpop.permute.xlu0 %1875 }
 0x489   : > { %4161 = vpow2.f32 %v2073_v33  ;;  %v1889_v22 = vsel %vm1418_vm2, %v1876_v11, 0 }
 0x48a   : > { %3838 = vmatpush3.bf16.msra.mxu1 %v1889_v22  ;;  %4163 = vpow2.f32 %v1849_v30  ;;  %v1403_v30 = vsel %vm1360_vm8, %v4924_v19, 0.0  ;;  %v1400_v19 = vsel %vm1360_vm8, %v4911_v43, 0.0 }
 0x48b   : > { %3869 = vmatprep.subr.bf16.mxu1 %v4310_v12  ;;  %4165 = vpow2.f32 %v1851_v17 }
 0x48f   : > { %v4160_v50 = vpop.eup %4159 }
 0x490   : > { %v1868_v23 = vpack.c.bf16 %v4160_v50, %v4156_v58  ;;  %v1856_v13 = vsel %vm1360_vm8, %v4160_v50, 0.0 }
 0x491   : > { %1857 = vadd.xlane.f32.xlu0 %v1856_v13 }
 0x492   : > { %3840 = vmatmul.mubr.msk.bf16.vlgmr.msra.gmra.mrb[48].mxu1 %vm1360_vm8, %v1868_v23 }
 0x493   : > { %v4162_v25 = vpop.eup %4161  ;;  %3870 = vmatpush3.bf16.msra.mxu1 %v2102_v21  ;;  %3843 = vmatprep.mubr.msk.bf16.mxu1 %vm4312_vm0, %v4310_v12 }
 0x494   : > { %v2083_v29 = vsel %vm1360_vm8, %v4162_v25, 0.0  ;;  %3871 = vmatprep.subr.bf16.mxu1 %v4310_v12  ;;  %v4164_v7 = vpop.eup %4163 }
 0x495   : > { %2084 = vadd.xlane.f32.xlu0 %v2083_v29  ;;  %v1869_v37 = vpack.c.bf16 %v4164_v7, %v4158_v60  ;;  %v4166_v27 = vpop.eup %4165 }
 0x496   : > { %v1870_v55 = vpack.c.bf16 %v4166_v27, %v4166_v27  ;;  %v1865_v8 = vsel %vm1360_vm8, %v4166_v27, 0.0 }
 0x49a   : > { %3844 = vmatmul.mubr.msk.bf16.gmra.mrb[52].mxu1 %vm1360_vm8, %v1869_v37 }
 0x49b   : > { %3847 = vmatprep.mubr.msk.bf16.mxu1 %vm4312_vm0, %v4310_v12 }
 0x49e   : > { %v2058_v20 = vpop.xlane.xlu1 %2057 }
 0x49f   : > { %v2069_v39 = vsub.f32 %v4947_v62, %v2058_v20 }
 0x4a1   : > { %v2075_v40 = vmul.f32 1.442695, %v2069_v39 }
 0x4a2   : > { %v2061_v57 = vpop.xlane.xlu1 %2060  ;;  %3848 = vmatmul.mubr.msk.bf16.gmra.mrb[56].mxu1 %vm1360_vm8, %v1870_v55 }
 0x4a3   : > { %4167 = vpow2.f32 %v2075_v40  ;;  %v2070_v42 = vsub.f32 %v4953_v0, %v2061_v57  ;;  %3875 = vmatprep.mubr.msk.bf16.mxu1 %vm4312_vm0, %v4310_v12 }
 0x4a5   : > { %v2077_v44 = vmul.f32 1.442695, %v2070_v42 }
 0x4a6   : > { %v2064_v45 = vpop.xlane.xlu1 %2063 }
 0x4a7   : > { %4169 = vpow2.f32 %v2077_v44  ;;  %v2071_v2 = vsub.f32 %v4959_v4, %v2064_v45  ;;  %v1862_v4 = vsel %vm1360_vm8, %v4164_v7, 0.0 }
 0x4a9   : > { %v2079_v5 = vmul.f32 1.442695, %v2071_v2 }
 0x4aa   : > { %v2104_v18 = vpop.permute.xlu1 %2103 }
 0x4ab   : > { %4171 = vpow2.f32 %v2079_v5  ;;  %3872 = vmatpush3.bf16.msra.mxu1 %v2104_v18 }
 0x4ac   : > { %3873 = vmatprep.subr.bf16.mxu1 %v4310_v12 }
 0x4ad   : > { %v4168_v62 = vpop.eup %4167 }
 0x4ae   : > { %v2106_v15 = vpop.permute.xlu1 %2105  ;;  %v2086_v47 = vsel %vm1360_vm8, %v4168_v62, 0.0  ;;  %v2098_v28 = vpack.c.bf16 %v4168_v62, %v4162_v25 }
 0x4af   : > { %v2119_v0 = vsel %vm1418_vm2, %v2106_v15, 0  ;;  %2087 = vadd.xlane.f32.xlu0 %v2086_v47  ;;  %vm2252_vm2 = vcmask 523264  }
 0x4b0   : > { %3874 = vmatpush3.bf16.msra.mxu1 %v2119_v0 }
 0x4b1   : > { %v4170_v48 = vpop.eup %4169 }
 0x4b2   : > { %v2089_v49 = vsel %vm1360_vm8, %v4170_v48, 0.0 }
 0x4b3   : > { %2090 = vadd.xlane.f32.xlu1 %v2089_v49  ;;  %1863 = vadd.xlane.f32.xlu0 %v1862_v4 }
 0x4b4   : > { %3876 = vmatmul.mubr.msk.bf16.vlgmr.msra.gmra.mrb[60].mxu1 %vm1360_vm8, %v2098_v28 }
 0x4b5   : > { %v4172_v36 = vpop.eup %4171  ;;  %v5029_v51 = vpop.f32.mrb[24].mxu1  ;;  %3879 = vmatprep.mubr.msk.bf16.mxu1 %vm4312_vm0, %v4310_v12 }
 0x4b6   : > { %v3769_v31 = vpop.f32.mrb[25].mxu1  ;;  %v2092_v56 = vsel %vm1360_vm8, %v4172_v36, 0.0  ;;  %v2099_v52 = vpack.c.bf16 %v4172_v36, %v4170_v48 }
 0x4b7   : > { %1633 = vadd.xlane.f32.xlu1 %v1632_v54  ;;  %v5036_v58 = vpop.f32.mrb[26].mxu1  ;;  %2093 = vadd.xlane.f32.xlu0 %v2092_v56  ;;  %v4077_v31 = vld [vmem:[%s4484_s29] sm:$0xff]   ;;  %v4078_v56 = vld [vmem:[%s4484_s29 + $0x8] sm:$0xff]  }
 0x4b8   : > { %v3770_v59 = vpop.f32.mrb[27].mxu1  ;;  %3888 = vmatpush3.bf16.msra.mxu0 %v4077_v31 }
 0x4b9   : > { %v2067_v60 = vpop.xlane.xlu0 %2066  ;;  %3889 = vmatprep.subr.bf16.mxu0 %v4310_v12 }
 0x4ba   : > { %v2072_v61 = vsub.f32 %v4965_v32, %v2067_v60 }
 0x4bb   : > { %1866 = vadd.xlane.f32.xlu0 %v1865_v8 }
 0x4bc   : > { %v2081_v63 = vmul.f32 1.442695, %v2072_v61  ;;  %3880 = vmatmul.mubr.msk.bf16.gmra.mrb[64].mxu1 %vm1360_vm8, %v2099_v52  ;;  %3890 = vmatpush3.bf16.msra.mxu0 %v4078_v56 }
 0x4bd   : > { %3883 = vmatprep.mubr.msk.bf16.mxu1 %vm4312_vm0, %v4310_v12  ;;  %3891 = vmatprep.subr.bf16.mxu0 %v4310_v12 }
 0x4be   : > { %4173 = vpow2.f32 %v2081_v63  ;;  %v4079_v63 = vld [vmem:[%s4484_s29 + $0x10] sm:$0xff]  }
 0x4bf   : > { %v5045_v1 = vpop.f32.mrb[28].mxu1  ;;  %1392 = vadd.xlane.f32.xlu0 %v1391_v26 }
 0x4c0   : > { %v3773_v14 = vpop.f32.mrb[29].mxu1  ;;  %3892 = vmatpush3.bf16.msra.mxu0 %v4079_v63 }
 0x4c1   : > { %v5047_v6 = vpop.f32.mrb[30].mxu1  ;;  %3893 = vmatprep.subr.bf16.mxu0 %v4310_v12 }
 0x4c2   : > { %v3774_v32 = vpop.f32.mrb[31].mxu1 }
 0x4c3   : > { %1398 = vadd.xlane.f32.xlu0 %v1397_v24 }
 0x4c7   : > { %v5053_v33 = vpop.f32.mrb[32].mxu1  ;;  %1404 = vadd.xlane.f32.xlu0 %v1403_v30  ;;  %v4080_v30 = vld [vmem:[%s4484_s29 + $0x18] sm:$0xff]  }
 0x4c8   : > { %v4174_v9 = vpop.eup %4173  ;;  %v3777_v11 = vpop.f32.mrb[33].mxu1  ;;  %3894 = vmatpush3.bf16.msra.mxu0 %v4080_v30 }
 0x4c9   : > { %v1475_v10 = vpop.f32.mrb[34].mxu1  ;;  %v2095_v22 = vsel %vm1360_vm8, %v4174_v9, 0.0  ;;  %v2100_v41 = vpack.c.bf16 %v4174_v9, %v4174_v9  ;;  %3895 = vmatprep.subr.bf16.mxu0 %v4310_v12 }
 0x4ca   : > { %v3778_v50 = vpop.f32.mrb[35].mxu1  ;;  %2096 = vadd.xlane.f32.xlu1 %v2095_v22 }
 0x4cb   : > { %3884 = vmatmul.mubr.msk.bf16.gmra.mrb[68].mxu1 %vm1360_vm8, %v2100_v41  ;;  %v4081_v50 = vld [vmem:[%s4484_s29 + $0x20] sm:$0xff]  }
 0x4cc   : > { %2626 = vmatprep.mubr.bf16.mxu1 %v4311_v53  ;;  %3896 = vmatpush3.bf16.msra.mxu0 %v4081_v50 }
 0x4cd   : > { %3897 = vmatprep.subr.bf16.mxu0 %v4310_v12 }
 0x4ce   : > { %1395 = vadd.xlane.f32.xlu1 %v1394_v46 }
 0x4d2   : > { %1401 = vadd.xlane.f32.xlu1 %v1400_v19 }
 0x4df   : > { %v1622_v23 = vpop.xlane.xlu1 %1621 }
 0x4e0   : > { %4175 = vrcp.f32 %v1622_v23 }
 0x4e1   : > { %v1625_v17 = vpop.xlane.xlu0 %1624 }
 0x4e2   : > { %4177 = vrcp.f32 %v1625_v17 }
 0x4e7   : > { %v1628_v13 = vpop.xlane.xlu0 %1627 }
 0x4e8   : > { %4179 = vrcp.f32 %v1628_v13  ;;  %v4082_v13 = vld [vmem:[%s4484_s29 + $0x28] sm:$0xff]  }
 0x4e9   : > { %3898 = vmatpush3.bf16.msra.mxu0 %v4082_v13 }
 0x4ea   : > { %v4176_v29 = vpop.eup %4175  ;;  %3899 = vmatprep.subr.bf16.mxu0 %v4310_v12 }
 0x4eb   : > { %v1631_v21 = vpop.xlane.xlu0 %1630 }
 0x4ec   : > { %4181 = vrcp.f32 %v1631_v21  ;;  %v4178_v37 = vpop.eup %4177 }
 0x4f2   : > { %v4180_v40 = vpop.eup %4179 }
 0x4f6   : > { %v4182_v42 = vpop.eup %4181 }
 0x4f7   : > { %v1855_v48 = vpop.xlane.xlu0 %1854 }
 0x4f8   : > { %4183 = vrcp.f32 %v1855_v48 }
 0x4ff   : > { %v1861_v36 = vpop.xlane.xlu1 %1860 }
 0x502   : > { %v4184_v60 = vpop.eup %4183 }
 0x51e   : > { %v1858_v28 = vpop.xlane.xlu0 %1857 }
 0x51f   : > { %4185 = vrcp.f32 %v1858_v28 }
 0x520   : > { %4187 = vrcp.f32 %v1861_v36 }
 0x522   : > { %v2085_v49 = vpop.xlane.xlu0 %2084 }
 0x528   : > { %v1695_v25 = vpop.f32.mrb[36].mxu1 }
 0x529   : > { %v3805_v7 = vpop.f32.mrb[37].mxu1  ;;  %v1722_v20 = vmul.f32 %v4176_v29, %v1695_v25  ;;  %v4186_v8 = vpop.eup %4185 }
 0x52a   : > { %v1698_v27 = vpop.f32.mrb[38].mxu1  ;;  %v4188_v11 = vpop.eup %4187  ;;  %v4083_v7 = vld [vmem:[%s4484_s29 + $0x30] sm:$0xff]  }
 0x52b   : > { %v1723_v16 = vmul.f32 %v4178_v37, %v1698_v27  ;;  %v3806_v39 = vpop.f32.mrb[39].mxu1  ;;  %3900 = vmatpush3.bf16.msra.mxu0 %v4083_v7  ;;  %v4084_v27 = vld [vmem:[%s4484_s29 + $0x38] sm:$0xff]  }
 0x52c   : > { %3901 = vmatprep.subr.bf16.mxu0 %v4310_v12 }
 0x52d   : > { %v4015_v55 = vpack.i.bf16 %v1723_v16, %v1722_v20 }
 0x52f   : > { %4016 = vrot.lane.b32.xlu1 %v4015_v55, %s4315_s15  ;;  %3902 = vmatpush3.bf16.msra.mxu0 %v4084_v27 }
 0x530   : > { %v1703_v43 = vpop.f32.mrb[40].mxu1 }
 0x531   : > { %v3809_v57 = vpop.f32.mrb[41].mxu1  ;;  %v5063_v45 = vmul.f32 %v4180_v40, %v1703_v43 }
 0x532   : > { %v1706_v44 = vpop.f32.mrb[42].mxu1 }
 0x533   : > { %v5065_v2 = vmul.f32 %v4182_v42, %v1706_v44  ;;  %v3810_v5 = vpop.f32.mrb[43].mxu1 }
 0x535   : > { %v4030_v18 = vpack.i.bf16 %v5065_v2, %v5063_v45 }
 0x538   : > { %v5069_v62 = vpop.f32.mrb[44].mxu1 }
 0x539   : > { %v3813_v15 = vpop.f32.mrb[45].mxu1 }
 0x53a   : > { %v1714_v47 = vpop.f32.mrb[46].mxu1 }
 0x53b   : > { %v3814_v0 = vpop.f32.mrb[47].mxu1 }
 0x53c   : > { %v2088_v4 = vpop.xlane.xlu0 %2087 }
 0x540   : > { %v1864_v54 = vpop.xlane.xlu0 %1863  ;;  %v2091_v20 = vpop.xlane.xlu1 %2090 }
 0x541   : > { %4189 = vrcp.f32 %v1864_v54 }
 0x542   : > { %4191 = vrcp.f32 %v2085_v49 }
 0x543   : > { %4193 = vrcp.f32 %v2088_v4 }
 0x544   : > { %v2094_v16 = vpop.xlane.xlu0 %2093  ;;  %4195 = vrcp.f32 %v2091_v20  ;;  %v1634_v43 = vpop.xlane.xlu1 %1633 }
 0x545   : > { %4197 = vrcp.f32 %v2094_v16 }
 0x546   : > { %4199 = vrcp.f32 %v1634_v43 }
 0x548   : > { %v1867_v44 = vpop.xlane.xlu0 %1866 }
 0x549   : > { %4201 = vrcp.f32 %v1867_v44 }
 0x54b   : > { %v4190_v22 = vpop.eup %4189 }
 0x54c   : > { %v4192_v55 = vpop.eup %4191 }
 0x54d   : > { %v4194_v57 = vpop.eup %4193 }
 0x54e   : > { %v4196_v28 = vpop.eup %4195 }
 0x54f   : > { %v4198_v4 = vpop.eup %4197 }
 0x557   : > { %v2097_v36 = vpop.xlane.xlu1 %2096 }
 0x558   : > { %4203 = vrcp.f32 %v2097_v36 }
 0x55b   : > { %v1396_v30 = vpop.xlane.xlu1 %1395 }
 0x565   : > { %v1925_v59 = vpop.f32.mrb[48].mxu1 }
 0x566   : > { %v3841_v61 = vpop.f32.mrb[49].mxu1  ;;  %v1952_v26 = vmul.f32 %v4184_v60, %v1925_v59 }
 0x567   : > { %v1928_v52 = vpop.f32.mrb[50].mxu1  ;;  %v4200_v61 = vpop.eup %4199 }
 0x568   : > { %v1953_v14 = vmul.f32 %v4186_v8, %v1928_v52  ;;  %v3842_v32 = vpop.f32.mrb[51].mxu1  ;;  %v4202_v8 = vpop.eup %4201  ;;  %v1726_v63 = vmul.f32 %v4200_v61, %v5069_v62 }
 0x56a   : > { %v4020_v24 = vpack.i.bf16 %v1953_v14, %v1952_v26  ;;  %v4204_v26 = vpop.eup %4203 }
 0x56c   : > { %4021 = vrot.lane.b32.xlu0 %v4020_v24, %s4314_s20  ;;  %v1393_v24 = vpop.xlane.xlu0 %1392 }
 0x56d   : > { %v1933_v9 = vpop.f32.mrb[52].mxu1  ;;  %4205 = vrcp.f32 %v1393_v24 }
 0x56e   : > { %v3845_v10 = vpop.f32.mrb[53].mxu1  ;;  %v1954_v46 = vmul.f32 %v4188_v11, %v1933_v9  ;;  %4207 = vrcp.f32 %v1396_v30  ;;  %v1402_v11 = vpop.xlane.xlu1 %1401 }
 0x56f   : > { %v1936_v41 = vpop.f32.mrb[54].mxu1 }
 0x570   : > { %v1955_v19 = vmul.f32 %v4190_v22, %v1936_v41  ;;  %v3846_v17 = vpop.f32.mrb[55].mxu1  ;;  %v1399_v9 = vpop.xlane.xlu0 %1398 }
 0x571   : > { %4209 = vrcp.f32 %v1399_v9 }
 0x572   : > { %v4035_v23 = vpack.i.bf16 %v1955_v19, %v1954_v46  ;;  %4211 = vrcp.f32 %v1402_v11 }
 0x574   : > { %v1405_v10 = vpop.xlane.xlu0 %1404 }
 0x575   : > { %v1941_v21 = vpop.f32.mrb[56].mxu1  ;;  %4213 = vrcp.f32 %v1405_v10 }
 0x576   : > { %v3849_v25 = vpop.f32.mrb[57].mxu1  ;;  %v1956_v52 = vmul.f32 %v4202_v8, %v1941_v21 }
 0x577   : > { %v1944_v29 = vpop.f32.mrb[58].mxu1  ;;  %v4206_v22 = vpop.eup %4205 }
 0x578   : > { %v3850_v37 = vpop.f32.mrb[59].mxu1  ;;  %v4208_v50 = vpop.eup %4207  ;;  %v1483_v21 = vmul.f32 %v4206_v22, %v5029_v51 }
 0x579   : > { %v1484_v13 = vmul.f32 %v4208_v50, %v5036_v58 }
 0x587   : > { %v2155_v39 = vpop.f32.mrb[60].mxu1 }
 0x588   : > { %v3877_v40 = vpop.f32.mrb[61].mxu1  ;;  %v2182_v5 = vmul.f32 %v4192_v55, %v2155_v39  ;;  %v4210_v55 = vpop.eup %4209 }
 0x589   : > { %v2158_v42 = vpop.f32.mrb[62].mxu1  ;;  %v4212_v40 = vpop.eup %4211 }
 0x58a   : > { %v2183_v15 = vmul.f32 %v4194_v57, %v2158_v42  ;;  %v3878_v47 = vpop.f32.mrb[63].mxu1  ;;  %v1486_v44 = vmul.f32 %v4212_v40, %v5047_v6 }
 0x58c   : > { %v4025_v0 = vpack.i.bf16 %v2183_v15, %v2182_v5  ;;  %v1485_v5 = vmul.f32 %v4210_v55, %v5045_v1  ;;  %v4087_v55 = vld [vmem:[%s4512_s5 + $0x4] ss:$8 sps:$4 sm:$0xff]  }
 0x58d   : > { %2594 = vmatprep.subr.bf16.mxu1 %v4087_v55 }
 0x58e   : > { %4026 = vrot.lane.b32.xlu1 %v4025_v0, %s4313_s24 }
 0x58f   : > { %v2163_v48 = vpop.f32.mrb[64].mxu1 }
 0x590   : > { %v3881_v49 = vpop.f32.mrb[65].mxu1  ;;  %v2184_v54 = vmul.f32 %v4196_v28, %v2163_v48 }
 0x591   : > { %v2166_v31 = vpop.f32.mrb[66].mxu1 }
 0x592   : > { %v2185_v56 = vmul.f32 %v4198_v4, %v2166_v31  ;;  %v3882_v59 = vpop.f32.mrb[67].mxu1  ;;  %4031 = vrot.lane.b32.xlu1 %v4030_v18, %s4315_s15  ;;  %v4214_v4 = vpop.eup %4213 }
 0x593   : > { %v1487_v61 = vmul.f32 %v4214_v4, %v5053_v33  ;;  %v3537_v33 = vld [vmem:[%s5488_s2] ss:$0 sm:$0xff] }
 0x594   : > { %v4040_v60 = vpack.i.bf16 %v2185_v56, %v2184_v54 }
 0x596   : > { %4036 = vrot.lane.b32.xlu1 %v4035_v23, %s4314_s20  ;;  %4041 = vrot.lane.b32.xlu0 %v4040_v60, %s4313_s24 }
 0x59a   : > { %2200 = vrot.lane.b32.xlu1 %v1726_v63, %s4315_s15  ;;  %2220 = vrot.lane.b32.xlu0 %v1956_v52, %s4314_s20 }
 0x59e   : > { %v2171_v14 = vpop.f32.mrb[68].mxu1 }
 0x59f   : > { %v2186_v32 = vmul.f32 %v4204_v26, %v2171_v14  ;;  %v3885_v45 = vpop.f32.mrb[69].mxu1 }
 0x5a0   : > { %v2174_v2 = vpop.f32.mrb[70].mxu1 }
 0x5a1   : > { %v3886_v18 = vpop.f32.mrb[71].mxu1  ;;  %2240 = vrot.lane.b32.xlu1 %v2186_v32, %s4313_s24  ;;  %v4017_v62 = vpop.permute.xlu1 %4016  ;;  %v4225_v2 = vld [vmem:[#allocation2] sm:$0xff] }
 0x5a2   : > { %v4019_v46 = vunpack.i.h.bf16 %v4017_v62  ;;  %v4018_v19 = vunpack.i.l.bf16 %v4017_v62 }
 0x5a4   : > { %v2248_v29 = vsel %vm1275_vm1, %v1484_v13, %v4019_v46  ;;  %v2247_v7 = vsel %vm1275_vm1, %v1483_v21, %v4018_v19 }
 0x5de   : > { %v4022_v41 = vpop.permute.xlu0 %4021 }
 0x5df   : > { %v4024_v17 = vunpack.i.h.bf16 %v4022_v41  ;;  %v4023_v23 = vunpack.i.l.bf16 %v4022_v41  ;;  %v4227_v41 = vld [vmem:[#allocation2 + $0x10] sm:$0xff] }
 0x5e1   : > { %v2254_v20 = vsel %vm2252_vm2, %v2248_v29, %v4024_v17  ;;  %v2253_v16 = vsel %vm2252_vm2, %v2247_v7, %v4023_v23  ;;  %v4228_v23 = vld [vmem:[#allocation2 + $0x18] sm:$0xff]  ;;  %v4229_v7 = vld [vmem:[#allocation2 + $0x20] sm:$0xff] }
 0x600   : > { %v4027_v25 = vpop.permute.xlu1 %4026 }
 0x601   : > { %v4029_v37 = vunpack.i.h.bf16 %v4027_v25  ;;  %v4028_v27 = vunpack.i.l.bf16 %v4027_v25 }
 0x603   : > { %v2259_v39 = vsel %vm2258_vm3, %v2253_v16, %v4028_v27  ;;  %v2260_v58 = vsel %vm2258_vm3, %v2254_v20, %v4029_v37 }
 0x604   : > { %v2264_v51 = vpack.c.bf16 %v2260_v58, %v2259_v39  ;;  %v4032_v43 = vpop.permute.xlu1 %4031  ;;  %v4085_v58 = vld [vmem:[%s4512_s5] ss:$8 sps:$4 sm:$0xff]  }
 0x605   : > { %v4034_v57 = vunpack.i.h.bf16 %v4032_v43  ;;  %v4033_v42 = vunpack.i.l.bf16 %v4032_v43  ;;  %2595 = vmatpush1.bf16.msra.mxu1 %v4085_v58  ;;  %v4088_v43 = vld [vmem:[%s4512_s5 + $0x10] ss:$8 sps:$4 sm:$0xff]  }
 0x606   : > { %3904 = vmatmul.mubr.bf16.vlgmr.msra.gmra.mrb[48].mxu0 %v2264_v51  ;;  %v4090_v51 = vld [vmem:[%s4512_s5 + $0x14] ss:$8 sps:$4 sm:$0xff]  }
 0x607   : > { %3907 = vmatprep.mubr.msk.bf16.mxu0 %vm4312_vm0, %v4310_v12  ;;  %v2250_v36 = vsel %vm1275_vm1, %v1486_v44, %v4034_v57  ;;  %v2249_v31 = vsel %vm1275_vm1, %v1485_v5, %v4033_v42  ;;  %2596 = vmatprep.subr.bf16.mxu1 %v4090_v51 }
 0x608   : > { %v4037_v15 = vpop.permute.xlu1 %4036  ;;  %v4042_v47 = vpop.permute.xlu0 %4041 }
 0x609   : > { %v4039_v0 = vunpack.i.h.bf16 %v4037_v15  ;;  %v4038_v48 = vunpack.i.l.bf16 %v4037_v15  ;;  %v4044_v28 = vunpack.i.h.bf16 %v4042_v47  ;;  %v4043_v49 = vunpack.i.l.bf16 %v4042_v47  ;;  %2597 = vmatpush1.bf16.msra.mxu1 %v4088_v43 }
 0x60b   : > { %v2256_v54 = vsel %vm2252_vm2, %v2250_v36, %v4039_v0  ;;  %v2255_v56 = vsel %vm2252_vm2, %v2249_v31, %v4038_v48 }
 0x60c   : > { %v2261_v6 = vsel %vm2258_vm3, %v2255_v56, %v4043_v49  ;;  %v2262_v1 = vsel %vm2258_vm3, %v2256_v54, %v4044_v28  ;;  %v2201_v59 = vpop.permute.xlu1 %2200  ;;  %v2221_v52 = vpop.permute.xlu0 %2220 }
 0x60d   : > { %v2265_v60 = vpack.c.bf16 %v2262_v1, %v2261_v6  ;;  %v2251_v8 = vsel %vm1275_vm1, %v1487_v61, %v2201_v59  ;;  %v4091_v61 = vld [vmem:[%s4512_s5 + $0x20] ss:$8 sps:$4 sm:$0xff]  }
 0x60e   : > { %v2257_v63 = vsel %vm2252_vm2, %v2251_v8, %v2221_v52  ;;  %v4096_v52 = vld [vmem:[%s4512_s5 + $0x34] ss:$8 sps:$4 sm:$0xff]  }
 0x60f   : > { %3908 = vmatmul.mubr.bf16.gmra.mrb[52].mxu0 %v2265_v60  ;;  %v4093_v60 = vld [vmem:[%s4512_s5 + $0x24] ss:$8 sps:$4 sm:$0xff]  }
 0x610   : > { %3911 = vmatprep.mubr.msk.bf16.mxu0 %vm4312_vm0, %v4310_v12  ;;  %v4226_v12 = vld [vmem:[#allocation2 + $0x8] sm:$0xff]  ;;  %2598 = vmatprep.subr.bf16.mxu1 %v4093_v60 }
 0x611   : > { %2599 = vmatpush1.bf16.msra.mxu1 %v4091_v61 }
 0x612   : > { %2600 = vmatprep.subr.bf16.mxu1 %v4096_v52 }
 0x613   : > { %v2241_v26 = vpop.permute.xlu1 %2240 }
 0x614   : > { %v2263_v14 = vsel %vm2258_vm3, %v2257_v63, %v2241_v26  ;;  %v4094_v63 = vld [vmem:[%s4512_s5 + $0x30] ss:$8 sps:$4 sm:$0xff]   ;;  %v4099_v26 = vld [vmem:[%s4512_s5 + $0x44] ss:$8 sps:$4 sm:$0xff]  }
 0x615   : > { %v2266_v32 = vpack.c.bf16 %v2263_v14, %v2263_v14  ;;  %2601 = vmatpush1.bf16.msra.mxu1 %v4094_v63  ;;  %v4097_v14 = vld [vmem:[%s4512_s5 + $0x40] ss:$8 sps:$4 sm:$0xff]  }
 0x616   : > { %2602 = vmatprep.subr.bf16.mxu1 %v4099_v26 }
 0x617   : > { %3912 = vmatmul.mubr.bf16.gmra.mrb[56].mxu0 %v2266_v32  ;;  %v4102_v32 = vld [vmem:[%s4512_s5 + $0x54] ss:$8 sps:$4 sm:$0xff]  }
 0x619   : > { %2603 = vmatpush1.bf16.msra.mxu1 %v4097_v14 }
 0x61a   : > { %2604 = vmatprep.subr.bf16.mxu1 %v4102_v32 }
 0x6d9   : > { %v2365_v45 = vpop.f32.mrb[48].mxu0 }
 0x6da   : > { %v2387_v18 = vadd.f32 %v4225_v2, %v2365_v45  ;;  %v3905_v24 = vpop.f32.mrb[49].mxu0  ;;  %v4100_v45 = vld [vmem:[%s4512_s5 + $0x50] ss:$8 sps:$4 sm:$0xff]   ;;  %v4103_v2 = vld [vmem:[%s4512_s5 + $0x60] ss:$8 sps:$4 sm:$0xff]  }
 0x6db   : > { %v2368_v30 = vpop.f32.mrb[50].mxu0  ;;  %2605 = vmatpush1.bf16.msra.mxu1 %v4100_v45  ;;  %v4106_v24 = vld [vmem:[%s4512_s5 + $0x70] ss:$8 sps:$4 sm:$0xff]  }
 0x6dc   : > { %v5127_v9 = vadd.f32 %v3537_v33, %v2387_v18  ;;  %v2388_v11 = vadd.f32 %v4226_v12, %v2368_v30  ;;  %v3906_v10 = vpop.f32.mrb[51].mxu0  ;;  %v4108_v18 = vld [vmem:[%s4512_s5 + $0x74] ss:$8 sps:$4 sm:$0xff]   ;;  %v4109_v30 = vld [vmem:[%s4523_s27 + $0x40] sm:$0xff]  }
 0x6dd   : > { %v4110_v12 = vld [vmem:[%s4523_s27] sm:$0xff]   ;;  %3670 = vmatprep.subr.bf16.mxu0 %v4109_v30  ;;  %v4112_v10 = vld [vmem:[%s4523_s27 + $0x8] sm:$0xff]   ;;  %v4122_v30 = vld [vmem:[%s4523_s27 + $0x30] sm:$0xff]  }
 0x6de   : > { %v5129_v62 = vadd.f32 %v3537_v33, %v2388_v11  ;;  %2406 = vadd.xlane.f32.xlu0 %v5127_v9  ;;  %v4111_v11 = vld [vmem:[%s4523_s27 + $0x48] sm:$0xff]   ;;  %3671 = vmatpush3.bf16.msra.mxu0 %v4110_v12  ;;  %v4123_v12 = vld [vmem:[%s4523_s27 + $0x78] sm:$0xff]  }
 0x6df   : > { %3672 = vmatprep.subr.bf16.mxu0 %v4111_v11  ;;  %v4124_v11 = vld [vmem:[%s4523_s27 + $0x38] sm:$0xff]  }
 0x6e0   : > { %2408 = vadd.xlane.f32.xlu1 %v5129_v62 }
 0x6e2   : > { %v2373_v22 = vpop.f32.mrb[52].mxu0  ;;  %3673 = vmatpush3.bf16.msra.mxu0 %v4112_v10 }
 0x6e3   : > { %v2389_v50 = vadd.f32 %v4227_v41, %v2373_v22  ;;  %v3909_v46 = vpop.f32.mrb[53].mxu0  ;;  %v4113_v22 = vld [vmem:[%s4523_s27 + $0x50] sm:$0xff]  }
 0x6e4   : > { %v2376_v19 = vpop.f32.mrb[54].mxu0  ;;  %v4114_v41 = vld [vmem:[%s4523_s27 + $0x10] sm:$0xff]   ;;  %3674 = vmatprep.subr.bf16.mxu0 %v4113_v22  ;;  %v4116_v46 = vld [vmem:[%s4523_s27 + $0x18] sm:$0xff]  }
 0x6e5   : > { %v5133_v17 = vadd.f32 %v3537_v33, %v2389_v50  ;;  %v2390_v13 = vadd.f32 %v4228_v23, %v2376_v19  ;;  %v3910_v21 = vpop.f32.mrb[55].mxu0  ;;  %v4115_v50 = vld [vmem:[%s4523_s27 + $0x58] sm:$0xff]   ;;  %v4117_v19 = vld [vmem:[%s4523_s27 + $0x60] sm:$0xff]  }
 0x6e6   : > { %3675 = vmatpush3.bf16.msra.mxu0 %v4114_v41  ;;  %v4118_v23 = vld [vmem:[%s4523_s27 + $0x20] sm:$0xff]  }
 0x6e7   : > { %2410 = vadd.xlane.f32.xlu0 %v5133_v17  ;;  %v5136_v25 = vadd.f32 %v3537_v33, %v2390_v13  ;;  %3676 = vmatprep.subr.bf16.mxu0 %v4115_v50  ;;  %v4119_v13 = vld [vmem:[%s4523_s27 + $0x68] sm:$0xff]  }
 0x6ea   : > { %v2381_v29 = vpop.f32.mrb[56].mxu0  ;;  %3677 = vmatpush3.bf16.msra.mxu0 %v4116_v46 }
 0x6eb   : > { %2412 = vadd.xlane.f32.xlu0 %v5136_v25  ;;  %v2391_v37 = vadd.f32 %v4229_v7, %v2381_v29  ;;  %v3913_v27 = vpop.f32.mrb[57].mxu0  ;;  %3678 = vmatprep.subr.bf16.mxu0 %v4117_v19 }
 0x6ec   : > { %v2384_v20 = vpop.f32.mrb[58].mxu0 }
 0x6ed   : > { %v5139_v16 = vadd.f32 %v3537_v33, %v2391_v37  ;;  %v3914_v39 = vpop.f32.mrb[59].mxu0  ;;  %v4105_v33 = vld [vmem:[%s4512_s5 + $0x64] ss:$8 sps:$4 sm:$0xff]  }
 0x6ee   : > { %2606 = vmatprep.subr.bf16.mxu1 %v4105_v33  ;;  %3679 = vmatpush3.bf16.msra.mxu0 %v4118_v23 }
 0x6ef   : > { %2414 = vadd.xlane.f32.xlu0 %v5139_v16  ;;  %2607 = vmatpush1.bf16.msra.mxu1 %v4103_v2 }
 0x6f0   : > { %2608 = vmatprep.subr.bf16.mxu1 %v4108_v18  ;;  %3680 = vmatprep.subr.bf16.mxu0 %v4119_v13 }
 0x6f3   : > { %2609 = vmatpush1.bf16.msra.mxu1 %v4106_v24  ;;  %v4121_v24 = vld [vmem:[%s4523_s27 + $0x70] sm:$0xff]  }
 0x76b   : > { %v2407_v40 = vpop.xlane.xlu0 %2406 }
 0x76c   : > { %v2416_v57 = vmul.f32 0.0078125, %v2407_v40 }
 0x76d   : > { %v2409_v42 = vpop.xlane.xlu1 %2408 }
 0x76e   : > { %v5147_v44 = vsub.f32 %v5127_v9, %v2416_v57  ;;  %v2417_v5 = vmul.f32 0.0078125, %v2409_v42  ;;  %v3538_v57 = vld [vmem:[%s5489_s6] ss:$0 sm:$0xff] }
 0x770   : > { %v5150_v15 = vsub.f32 %v5129_v62, %v2417_v5  ;;  %v2426_v47 = vmul.f32 %v5147_v44, %v5147_v44 }
 0x772   : > { %2431 = vadd.xlane.f32.xlu1 %v2426_v47  ;;  %v2427_v0 = vmul.f32 %v5150_v15, %v5150_v15 }
 0x774   : > { %v2411_v48 = vpop.xlane.xlu0 %2410  ;;  %2433 = vadd.xlane.f32.xlu0 %v2427_v0 }
 0x775   : > { %v2418_v28 = vmul.f32 0.0078125, %v2411_v48 }
 0x777   : > { %v5157_v49 = vsub.f32 %v5133_v17, %v2418_v28 }
 0x778   : > { %v2413_v4 = vpop.xlane.xlu0 %2412 }
 0x779   : > { %v2419_v36 = vmul.f32 0.0078125, %v2413_v4  ;;  %v2428_v31 = vmul.f32 %v5157_v49, %v5157_v49 }
 0x77b   : > { %v5162_v54 = vsub.f32 %v5136_v25, %v2419_v36  ;;  %2435 = vadd.xlane.f32.xlu1 %v2428_v31  ;;  %v3539_v36 = vld [vmem:[%s5490_s17] ss:$0 sm:$0xff] }
 0x77c   : > { %v2415_v56 = vpop.xlane.xlu0 %2414 }
 0x77d   : > { %v2420_v6 = vmul.f32 0.0078125, %v2415_v56  ;;  %v2429_v1 = vmul.f32 %v5162_v54, %v5162_v54 }
 0x77f   : > { %v5167_v59 = vsub.f32 %v5139_v16, %v2420_v6  ;;  %2437 = vadd.xlane.f32.xlu0 %v2429_v1 }
 0x781   : > { %v2430_v8 = vmul.f32 %v5167_v59, %v5167_v59 }
 0x783   : > { %2439 = vadd.xlane.f32.xlu1 %v2430_v8 }
 0x7ff   : > { %v2432_v21 = vpop.xlane.xlu1 %2431 }
 0x800   : > { %v2441_v29 = vmul.f32 0.0078125, %v2432_v21 }
 0x801   : > { %v2434_v7 = vpop.xlane.xlu0 %2433 }
 0x802   : > { %v2446_v37 = vadd.f32 1e-05, %v2441_v29  ;;  %v2442_v27 = vmul.f32 0.0078125, %v2434_v7 }
 0x804   : > { %4215 = vrsqrt.f32 %v2446_v37  ;;  %v2447_v20 = vadd.f32 1e-05, %v2442_v27 }
 0x806   : > { %4217 = vrsqrt.f32 %v2447_v20 }
 0x808   : > { %v2436_v39 = vpop.xlane.xlu1 %2435 }
 0x809   : > { %v2443_v58 = vmul.f32 0.0078125, %v2436_v39 }
 0x80b   : > { %v2448_v55 = vadd.f32 1e-05, %v2443_v58 }
 0x80c   : > { %v2438_v51 = vpop.xlane.xlu0 %2437 }
 0x80d   : > { %4219 = vrsqrt.f32 %v2448_v55  ;;  %v2444_v43 = vmul.f32 0.0078125, %v2438_v51 }
 0x80e   : > { %v4216_v40 = vpop.eup %4215 }
 0x80f   : > { %v2456_v42 = vmul.f32 %v4216_v40, %v5147_v44  ;;  %v2449_v5 = vadd.f32 1e-05, %v2444_v43 }
 0x810   : > { %v4218_v47 = vpop.eup %4217  ;;  %v2440_v0 = vpop.xlane.xlu1 %2439 }
 0x811   : > { %v2467_v48 = vmul.f32 %v3538_v57, %v2456_v42  ;;  %v2457_v28 = vmul.f32 %v4218_v47, %v5150_v15  ;;  %4221 = vrsqrt.f32 %v2449_v5  ;;  %v2445_v4 = vmul.f32 0.0078125, %v2440_v0 }
 0x813   : > { %v2468_v31 = vmul.f32 %v3538_v57, %v2457_v28  ;;  %v2450_v56 = vadd.f32 1e-05, %v2445_v4  ;;  %v2478_v6 = vadd.f32 %v3539_v36, %v2467_v48 }
 0x815   : > { %4223 = vrsqrt.f32 %v2450_v56  ;;  %v2479_v1 = vadd.f32 %v3539_v36, %v2468_v31 }
 0x817   : > { %v4220_v60 = vpop.eup %4219  ;;  %v2483_v44 = vpack.c.bf16 %v2479_v1, %v2478_v6 }
 0x818   : > { %v2458_v61 = vmul.f32 %v4220_v60, %v5157_v49 }
 0x819   : > { %2627 = vmatmul.mubr.bf16.vlgmr.msra.gmra.mrb[72].mxu1 %v2483_v44 }
 0x81a   : > { %2636 = vmatprep.mubr.bf16.mxu1 %v4311_v53  ;;  %v2469_v52 = vmul.f32 %v3538_v57, %v2458_v61 }
 0x81b   : > { %v4222_v15 = vpop.eup %4221 }
 0x81c   : > { %v2459_v8 = vmul.f32 %v4222_v15, %v5162_v54  ;;  %v2480_v14 = vadd.f32 %v3539_v36, %v2469_v52  ;;  %v4120_v54 = vld [vmem:[%s4523_s27 + $0x28] sm:$0xff]  }
 0x81d   : > { %3681 = vmatpush3.bf16.msra.mxu0 %v4120_v54 }
 0x81e   : > { %v2470_v63 = vmul.f32 %v3538_v57, %v2459_v8  ;;  %3682 = vmatprep.subr.bf16.mxu0 %v4121_v24 }
 0x81f   : > { %v4224_v26 = vpop.eup %4223 }
 0x820   : > { %v2481_v32 = vadd.f32 %v3539_v36, %v2470_v63  ;;  %v2460_v45 = vmul.f32 %v4224_v26, %v5167_v59  ;;  %v2502_v59 = vld [vmem:[%s4518_s26] sm:$0x3] }
 0x821   : > { %3683 = vmatpush3.bf16.msra.mxu0 %v4122_v30  ;;  %v2507_v10 = vrot.slane %v2502_v59, %v4620_v35  ;;  %v2511_v22 = vrot.slane %v2502_v59, %v986_v38  ;;  %v3572_v26 = vld [vmem:[%s839_s22] ss:$0 sm:$0xff]  ;;  %s5492_s22 = sld [smem:[#allocation3_spill]] }
 0x822   : > { %v2484_v33 = vpack.c.bf16 %v2481_v32, %v2480_v14  ;;  %v2471_v49 = vmul.f32 %v3538_v57, %v2460_v45  ;;  %3684 = vmatprep.subr.bf16.mxu0 %v4123_v12 }
 0x824   : > { %2637 = vmatmul.mubr.bf16.gmra.mrb[76].mxu1 %v2484_v33  ;;  %v2482_v2 = vadd.f32 %v3539_v36, %v2471_v49 }
 0x825   : > { %2646 = vmatprep.mubr.bf16.mxu1 %v4311_v53  ;;  %3685 = vmatpush3.bf16.msra.mxu0 %v4124_v11 }
 0x826   : > { %v2485_v18 = vpack.c.bf16 %v2482_v2, %v2482_v2 }
 0x827   : > { %p3573_p8 = scmp.ne.s32.totalorder %s5492_s22, 1 }
 0x828   : > { %s5493_s28 = sld [smem:[#allocation21_spill]] (!%p3573_p8)  ;;  %vm4317_vm0 = vmmov (!%p3573_p8), 0   ;;  %s5494_s26 = sld [smem:[#allocation19_spill]] (!%p3573_p8)  ;;  %vm3215_vm11 = vcmask (!%p3573_p8), 7168   ;;  %vm3252_vm14 = vcmp.eq.s32.totalorder (!%p3573_p8), %v4754_v3, 0  ;;  %vm3256_vm15 = vcmask (!%p3573_p8), 8192  }
 0x829   : > { %s5495_s22 = sld [smem:[#allocation20_spill]] (!%p3573_p8)  ;;  %s5496_s24 = sld [smem:[#allocation22_spill]] (!%p3573_p8) }
 0x82c   : > { %2647 = vmatmul.mubr.bf16.gmra.mrb[80].mxu1 %v2485_v18 }
 0x8ec   : > { %v2628_v53 = vpop.f32.mrb[72].mxu1 }
 0x8ed   : > { %v2629_v41 = vadd.f32 %v2628_v53, %v2507_v10  ;;  %v2630_v50 = vpop.f32.mrb[73].mxu1 }
 0x8ee   : > { %v2631_v46 = vadd.f32 %v2630_v50, %v2511_v22  ;;  %v2632_v19 = vpop.f32.mrb[74].mxu1 }
 0x8ef   : > { %v2633_v23 = vadd.f32 %v2632_v19, %v2507_v10  ;;  %v2634_v13 = vpop.f32.mrb[75].mxu1  ;;  %v2655_v29 = vmax.f32 %v2629_v41, 0.0 }
 0x8f0   : > { %v2635_v21 = vadd.f32 %v2634_v13, %v2511_v22  ;;  %v2656_v37 = vmax.f32 %v2631_v46, 0.0 }
 0x8f1   : > { %v2657_v7 = vmax.f32 %v2633_v23, 0.0 }
 0x8f2   : > { %v2658_v27 = vmax.f32 %v2635_v21, 0.0 }
 0x8f3   : > { %v2665_v20 = vpack.c.bf16 %v2657_v7, %v2655_v29 }
 0x8f4   : > { %v2666_v39 = vpack.c.bf16 %v2658_v27, %v2656_v37 }
 0x8f6   : > { %2831 = vmatprep.mubr.bf16.mxu0 %v2666_v39 }
 0x8f7   : > { %v2638_v58 = vpop.f32.mrb[76].mxu1  ;;  %2832 = vmatmul.mubr.bf16.vlgmr.msra.gmra.mrb[60].mxu0 %v2665_v20 }
 0x8f8   : > { %v2639_v35 = vadd.f32 %v2638_v58, %v2507_v10  ;;  %v2640_v34 = vpop.f32.mrb[77].mxu1 }
 0x8f9   : > { %v2641_v38 = vadd.f32 %v2640_v34, %v2511_v22  ;;  %v2642_v55 = vpop.f32.mrb[78].mxu1 }
 0x8fa   : > { %v2643_v51 = vadd.f32 %v2642_v55, %v2507_v10  ;;  %v2644_v43 = vpop.f32.mrb[79].mxu1  ;;  %v2659_v57 = vmax.f32 %v2639_v35, 0.0 }
 0x8fb   : > { %v2645_v40 = vadd.f32 %v2644_v43, %v2511_v22  ;;  %v2660_v5 = vmax.f32 %v2641_v38, 0.0 }
 0x8fc   : > { %v2661_v42 = vmax.f32 %v2643_v51, 0.0 }
 0x8fd   : > { %v2662_v47 = vmax.f32 %v2645_v40, 0.0 }
 0x8fe   : > { %v2667_v0 = vpack.c.bf16 %v2661_v42, %v2659_v57 }
 0x8ff   : > { %v2668_v48 = vpack.c.bf16 %v2662_v47, %v2660_v5  ;;  %v2648_v28 = vpop.f32.mrb[80].mxu1  ;;  %v4233_v47 = vld [vmem:[%s5493_s28 + $0x8] sm:$0xff] (!%p3573_p8)  }
 0x900   : > { %v2649_v4 = vadd.f32 %v2648_v28, %v2507_v10  ;;  %v2650_v36 = vpop.f32.mrb[81].mxu1  ;;  %v4236_v28 = vld [vmem:[%s5493_s28 + $0x20] sm:$0xff] (!%p3573_p8)  }
 0x901   : > { %v2651_v31 = vadd.f32 %v2650_v36, %v2511_v22  ;;  %v2652_v56 = vpop.f32.mrb[82].mxu1  ;;  %2839 = vmatprep.mubr.bf16.mxu0 %v2668_v48  ;;  %v4235_v48 = vld [vmem:[%s5493_s28 + $0x18] sm:$0xff] (!%p3573_p8)   ;;  %v4238_v36 = vld [vmem:[%s5493_s28 + $0x30] sm:$0xff] (!%p3573_p8)  }
 0x902   : > { %v2653_v6 = vpop.f32.mrb[83].mxu1  ;;  %2840 = vmatmul.mubr.bf16.gmra.mrb[64].mxu0 %v2667_v0  ;;  %v2663_v60 = vmax.f32 %v2649_v4, 0.0  ;;  %v4234_v0 = vld [vmem:[%s5493_s28 + $0x10] sm:$0xff] (!%p3573_p8)   ;;  %v4237_v4 = vld [vmem:[%s5493_s28 + $0x28] sm:$0xff] (!%p3573_p8)   ;;  %v5296_v56 = vld [vmem:[%s4476_s13] sm:$0xff] (!%p3573_p8) }
 0x903   : > { %v2664_v1 = vmax.f32 %v2651_v31, 0.0  ;;  %v4239_v31 = vld [vmem:[%s5493_s28 + $0x38] sm:$0xff] (!%p3573_p8)   ;;  %v4318_v6 = vmov (!%p3573_p8), 0   ;;  %vm3190_vm8 = vcmp.ne.s32.totalorder (!%p3573_p8), %v5296_v56, 4294967196 }
 0x904   : > { %v2669_v61 = vpack.c.bf16 %v2663_v60, %v2663_v60  ;;  %4230 = vset.pattern.permute.xlu1 (!%p3573_p8), %v4318_v6  ;;  %4231 = vset.pattern.permute.xlu0 (!%p3573_p8), %v4318_v6  ;;  %v5333_v6 = vld [vmem:[%s4476_s13 + $0x20] sm:$0xff] (!%p3573_p8) }
 0x905   : > { %v2670_v44 = vpack.c.bf16 %v2664_v1, %v2664_v1  ;;  %vm3194_vm13 = vcmp.ne.s32.totalorder (!%p3573_p8), %v5333_v6, 4294967196 }
 0x907   : > { %2847 = vmatprep.mubr.bf16.mxu0 %v2670_v44 }
 0x90a   : > { %2848 = vmatmul.mubr.bf16.gmra.mrb[68].mxu0 %v2669_v61 }
 0x9ca   : > { %v3686_v15 = vpop.f32.mrb[60].mxu0 }
 0x9cb   : > { %v3687_v8 = vpop.f32.mrb[61].mxu0 }
 0x9cc   : > { %v3688_v52 = vadd.f32 %v3687_v8, %v3686_v15  ;;  %v3689_v63 = vpop.f32.mrb[62].mxu0 }
 0x9cd   : > { %v3690_v14 = vpop.f32.mrb[63].mxu0 }
 0x9ce   : > { %v2855_v32 = vadd.f32 %v3688_v52, %v5127_v9  ;;  %v3691_v45 = vadd.f32 %v3690_v14, %v3689_v63 }
 0x9d0   : > { %v2867_v33 = vadd.f32 %v3572_v26, %v2855_v32  ;;  %v2856_v49 = vadd.f32 %v3691_v45, %v5129_v62 }
 0x9d2   : > { %2872 = vst [vmem:[#allocation2] sm:$0xff] %v2867_v33  ;;  %v2868_v2 = vadd.f32 %v3572_v26, %v2856_v49  ;;  %2883 = vadd.xlane.f32.xlu0 (!%p3573_p8), %v2867_v33 }
 0x9d4   : > { %2873 = vst [vmem:[#allocation2 + $0x8] sm:$0xff] %v2868_v2 }
 0x9d5   : > { %v3692_v18 = vpop.f32.mrb[64].mxu0 }
 0x9d6   : > { %v3693_v54 = vpop.f32.mrb[65].mxu0  ;;  %2885 = vadd.xlane.f32.xlu0 (!%p3573_p8), %v2868_v2 }
 0x9d7   : > { %v3694_v24 = vadd.f32 %v3693_v54, %v3692_v18  ;;  %v3695_v30 = vpop.f32.mrb[66].mxu0 }
 0x9d8   : > { %v3696_v12 = vpop.f32.mrb[67].mxu0 }
 0x9d9   : > { %v2857_v11 = vadd.f32 %v3694_v24, %v5133_v17  ;;  %v3697_v59 = vadd.f32 %v3696_v12, %v3695_v30  ;;  %v4232_v17 = vld [vmem:[%s5493_s28] sm:$0xff] (!%p3573_p8)  }
 0x9da   : > { %v3574_v24 = vld [vmem:[%s5494_s26] ss:$0 sm:$0xff] (!%p3573_p8) }
 0x9db   : > { %v2869_v10 = vadd.f32 %v3572_v26, %v2857_v11  ;;  %v2858_v22 = vadd.f32 %v3697_v59, %v5136_v25  ;;  %v4316_v25 = vmov (!%p3573_p8), 0.0  }
 0x9dc   : > { %3915 = vmatprep.subr.bf16.mxu0 (!%p3573_p8), %v4316_v25  ;;  %3943 = vmatprep.subr.bf16.mxu1 (!%p3573_p8), %v4316_v25 }
 0x9dd   : > { %2874 = vst [vmem:[#allocation2 + $0x10] sm:$0xff] %v2869_v10  ;;  %v2870_v9 = vadd.f32 %v3572_v26, %v2858_v22  ;;  %v3698_v53 = vpop.f32.mrb[68].mxu0  ;;  %2887 = vadd.xlane.f32.xlu1 (!%p3573_p8), %v2869_v10  ;;  %3916 = vmatpush3.bf16.msra.mxu0 (!%p3573_p8), %v4232_v17  ;;  %v3575_v22 = vld [vmem:[%s5495_s22] ss:$0 sm:$0xff] (!%p3573_p8) }
 0x9de   : > { %v3699_v41 = vpop.f32.mrb[69].mxu0  ;;  %3951 = vmatpush3.bf16.msra.mxu1 (!%p3573_p8), %v4232_v17  ;;  %3917 = vmatprep.subr.bf16.mxu0 (!%p3573_p8), %v4316_v25 }
 0x9df   : > { %2875 = vst [vmem:[#allocation2 + $0x18] sm:$0xff] %v2870_v9  ;;  %v3700_v62 = vadd.f32 %v3699_v41, %v3698_v53  ;;  %v3701_v50 = vpop.f32.mrb[70].mxu0  ;;  %2880 = sbr.rel (%p3573_p8) target bundleno = 3598 (0xe0e), region = 104  ;;  %3944 = vmatprep.subr.bf16.mxu1 (!%p3573_p8), %v4316_v25  ;;  %3931 = vmatprep.mubr.msk.bf16.mxu0 (!%p3573_p8), %vm4317_vm0, %v4316_v25 }
 0x9e0   : > { %v3702_v46 = vpop.f32.mrb[71].mxu0  ;;  %3935 = vmatprep.mubr.msk.bf16.mxu1 (!%p3573_p8), %vm4317_vm0, %v4316_v25 }
 0x9e1   : > { %v2859_v19 = vadd.f32 %v3700_v62, %v5139_v16  ;;  %2889 = vadd.xlane.f32.xlu1 (!%p3573_p8), %v2870_v9  ;;  %3918 = vmatpush3.bf16.msra.mxu0 (!%p3573_p8), %v4233_v47 }
 0x9e2   : > { %3952 = vmatpush3.bf16.msra.mxu1 (!%p3573_p8), %v4233_v47  ;;  %3919 = vmatprep.subr.bf16.mxu0 (!%p3573_p8), %v4316_v25 }
 0x9e3   : > { %v2871_v23 = vadd.f32 %v3572_v26, %v2859_v19  ;;  %3945 = vmatprep.subr.bf16.mxu1 (!%p3573_p8), %v4316_v25 }
 0x9e5   : > { %2876 = vst [vmem:[#allocation2 + $0x20] sm:$0xff] %v2871_v23  ;;  %2891 = vadd.xlane.f32.xlu0 (!%p3573_p8), %v2871_v23  ;;  %3920 = vmatpush3.bf16.msra.mxu0 (!%p3573_p8), %v4234_v0 }
 0x9e6   : > { %3953 = vmatpush3.bf16.msra.mxu1 %v4234_v0  ;;  %3921 = vmatprep.subr.bf16.mxu0 %v4316_v25 }
 0x9e7   : > { %3946 = vmatprep.subr.bf16.mxu1 %v4316_v25 }
 0x9e9   : > { %3922 = vmatpush3.bf16.msra.mxu0 %v4235_v48 }
 0x9ea   : > { %3954 = vmatpush3.bf16.msra.mxu1 %v4235_v48  ;;  %3923 = vmatprep.subr.bf16.mxu0 %v4316_v25 }
 0x9eb   : > { %3947 = vmatprep.subr.bf16.mxu1 %v4316_v25 }
 0x9ed   : > { %3924 = vmatpush3.bf16.msra.mxu0 %v4236_v28 }
 0x9ee   : > { %3955 = vmatpush3.bf16.msra.mxu1 %v4236_v28  ;;  %3925 = vmatprep.subr.bf16.mxu0 %v4316_v25 }
 0x9ef   : > { %3948 = vmatprep.subr.bf16.mxu1 %v4316_v25 }
 0x9f1   : > { %3926 = vmatpush3.bf16.msra.mxu0 %v4237_v4 }
 0x9f2   : > { %3956 = vmatpush3.bf16.msra.mxu1 %v4237_v4  ;;  %3927 = vmatprep.subr.bf16.mxu0 %v4316_v25 }
 0x9f3   : > { %3949 = vmatprep.subr.bf16.mxu1 %v4316_v25 }
 0x9f5   : > { %3928 = vmatpush3.bf16.msra.mxu0 %v4238_v36 }
 0x9f6   : > { %3957 = vmatpush3.bf16.msra.mxu1 %v4238_v36  ;;  %3929 = vmatprep.subr.bf16.mxu0 %v4316_v25  ;;  %v5325_v36 = vld [vmem:[%s4476_s13 + $0x10] sm:$0xff] }
 0x9f7   : > { %3950 = vmatprep.subr.bf16.mxu1 %v4316_v25  ;;  %vm3192_vm10 = vcmp.ne.s32.totalorder %v5325_v36, 4294967196 }
 0x9f9   : > { %3930 = vmatpush3.bf16.msra.mxu0 %v4239_v31 }
 0x9fa   : > { %3958 = vmatpush3.bf16.msra.mxu1 %v4239_v31  ;;  %v5329_v31 = vld [vmem:[%s4476_s13 + $0x18] sm:$0xff] }
 0x9fb   : > { %vm3193_vm12 = vcmp.ne.s32.totalorder %v5329_v31, 4294967196 }
 0xa5f   : > { %v2884_v16 = vpop.xlane.xlu0 %2883 }
 0xa60   : > { %v2893_v21 = vmul.f32 0.0078125, %v2884_v16 }
 0xa62   : > { %v5238_v7 = vsub.f32 %v2867_v33, %v2893_v21 }
 0xa63   : > { %v2886_v27 = vpop.xlane.xlu0 %2885 }
 0xa64   : > { %v2894_v39 = vmul.f32 0.0078125, %v2886_v27  ;;  %v2903_v58 = vmul.f32 %v5238_v7, %v5238_v7 }
 0xa66   : > { %v5244_v34 = vsub.f32 %v2868_v2, %v2894_v39  ;;  %2908 = vadd.xlane.f32.xlu1 %v2903_v58 }
 0xa68   : > { %v2904_v40 = vmul.f32 %v5244_v34, %v5244_v34 }
 0xa6a   : > { %v2888_v13 = vpop.xlane.xlu1 %2887  ;;  %2910 = vadd.xlane.f32.xlu0 %v2904_v40 }
 0xa6b   : > { %v2895_v29 = vmul.f32 0.0078125, %v2888_v13 }
 0xa6d   : > { %v5240_v37 = vsub.f32 %v2869_v10, %v2895_v29 }
 0xa6e   : > { %v2890_v20 = vpop.xlane.xlu1 %2889 }
 0xa6f   : > { %v2896_v35 = vmul.f32 0.0078125, %v2890_v20  ;;  %v2905_v55 = vmul.f32 %v5240_v37, %v5240_v37  ;;  %v3576_v20 = vld [vmem:[%s5496_s24] ss:$0 sm:$0xff] }
 0xa71   : > { %v5246_v38 = vsub.f32 %v2870_v9, %v2896_v35  ;;  %2912 = vadd.xlane.f32.xlu1 %v2905_v55 }
 0xa72   : > { %v2892_v51 = vpop.xlane.xlu0 %2891 }
 0xa73   : > { %v2897_v43 = vmul.f32 0.0078125, %v2892_v51  ;;  %v2906_v42 = vmul.f32 %v5246_v38, %v5246_v38 }
 0xa75   : > { %v5252_v57 = vsub.f32 %v2871_v23, %v2897_v43  ;;  %2914 = vadd.xlane.f32.xlu0 %v2906_v42 }
 0xa77   : > { %v2907_v5 = vmul.f32 %v5252_v57, %v5252_v57 }
 0xa79   : > { %2916 = vadd.xlane.f32.xlu1 %v2907_v5 }
 0xa8a   : > { %3146 = vperm.xlu1 %4230, %v5296_v56  }
 0xaf3   : > { %v2909_v1 = vpop.xlane.xlu1 %2908 }
 0xaf4   : > { %v2918_v60 = vmul.f32 0.0078125, %v2909_v1  ;;  %v3091_v1 = vld [vmem:[%s4476_s13 + $0x8] sm:$0xff] }
 0xaf5   : > { %vm3191_vm9 = vcmp.ne.s32.totalorder %v3091_v1, 4294967196 }
 0xaf6   : > { %v2923_v44 = vadd.f32 1e-05, %v2918_v60 }
 0xaf7   : > { %v2911_v15 = vpop.xlane.xlu0 %2910 }
 0xaf8   : > { %4240 = vrsqrt.f32 %v2923_v44  ;;  %v2919_v52 = vmul.f32 0.0078125, %v2911_v15 }
 0xafa   : > { %v2924_v26 = vadd.f32 1e-05, %v2919_v52 }
 0xafe   : > { %v2913_v61 = vpop.xlane.xlu1 %2912 }
 0xaff   : > { %v2920_v8 = vmul.f32 0.0078125, %v2913_v61 }
 0xb01   : > { %v2925_v63 = vadd.f32 1e-05, %v2920_v8 }
 0xb02   : > { %v2915_v32 = vpop.xlane.xlu0 %2914  ;;  %v4241_v18 = vpop.eup %4240 }
 0xb03   : > { %4242 = vrsqrt.f32 %v2925_v63  ;;  %v2921_v33 = vmul.f32 0.0078125, %v2915_v32  ;;  %v2933_v54 = vmul.f32 %v4241_v18, %v5238_v7 }
 0xb04   : > { %4244 = vrsqrt.f32 %v2924_v26 }
 0xb05   : > { %v2926_v2 = vadd.f32 1e-05, %v2921_v33  ;;  %v2944_v59 = vmul.f32 %v3574_v24, %v2933_v54 }
 0xb06   : > { %v2917_v14 = vpop.xlane.xlu1 %2916 }
 0xb07   : > { %v2922_v45 = vmul.f32 0.0078125, %v2917_v14  ;;  %v2955_v62 = vadd.f32 %v3575_v22, %v2944_v59 }
 0xb09   : > { %v2927_v49 = vadd.f32 1e-05, %v2922_v45 }
 0xb0a   : > { %v3147_v60 = vpop.permute.xlu1 %3146 }
 0xb0b   : > { %4246 = vrsqrt.f32 %v2927_v49  ;;  %vm3160_vm5 = vcmp.eq.s32.totalorder %v4754_v3, %v3147_v60 }
 0xb0c   : > { %4248 = vrsqrt.f32 %v2926_v2 }
 0xb0d   : > { %v4243_v30 = vpop.eup %4242 }
 0xb0e   : > { %v4245_v12 = vpop.eup %4244  ;;  %v2935_v10 = vmul.f32 %v4243_v30, %v5240_v37 }
 0xb0f   : > { %v2934_v11 = vmul.f32 %v4245_v12, %v5244_v34 }
 0xb10   : > { %v2946_v19 = vmul.f32 %v3574_v24, %v2935_v10 }
 0xb11   : > { %v2945_v53 = vmul.f32 %v3574_v24, %v2934_v11 }
 0xb12   : > { %v2957_v13 = vadd.f32 %v3575_v22, %v2946_v19 }
 0xb13   : > { %v2956_v50 = vadd.f32 %v3575_v22, %v2945_v53 }
 0xb15   : > { %v4247_v9 = vpop.eup %4246  ;;  %v2960_v23 = vpack.c.bf16 %v2956_v50, %v2955_v62  ;;  %v3585_v50 = vsel %vm3160_vm5, 1.0, %v4316_v25 }
 0xb16   : > { %v4249_v41 = vpop.eup %4248  ;;  %v2937_v16 = vmul.f32 %v4247_v9, %v5252_v57 }
 0xb17   : > { %v2936_v46 = vmul.f32 %v4249_v41, %v5246_v38  ;;  %3932 = vmatmul.mubr.bf16.vlgmr.msra.gmra.mrb[0].mxu0 %v2960_v23 }
 0xb18   : > { %v2948_v7 = vmul.f32 %v3574_v24, %v2937_v16 }
 0xb19   : > { %v2947_v17 = vmul.f32 %v3574_v24, %v2936_v46 }
 0xb1a   : > { %v2959_v37 = vadd.f32 %v3575_v22, %v2948_v7  ;;  %v3591_v7 = vsel %vm3191_vm9, 1.0, %v4316_v25 }
 0xb1b   : > { %v2958_v21 = vadd.f32 %v3575_v22, %v2947_v17 }
 0xb1c   : > { %v2962_v27 = vpack.c.bf16 %v2959_v37, %v2959_v37  ;;  %v3235_v37 = vsel %vm3215_vm11, %v3591_v7, 0.0 }
 0xb1d   : > { %v2961_v29 = vpack.c.bf16 %v2958_v21, %v2957_v13 }
 0xb1f   : > { %3936 = vmatmul.mubr.bf16.vlgmr.msra.gmra.mrb[0].mxu1 %v2961_v29  ;;  %v3590_v29 = vsel %vm3190_vm8, 1.0, %v4316_v25 }
 0xb20   : > { %3939 = vmatprep.mubr.msk.bf16.mxu1 %vm4317_vm0, %v4316_v25 }
 0xb27   : > { %3940 = vmatmul.mubr.bf16.gmra.mrb[4].mxu1 %v2962_v27  ;;  %v3234_v27 = vsel %vm3215_vm11, %v3590_v29, 0.0 }
 0xbea   : > { %v3068_v39 = vpop.f32.mrb[0].mxu0 }
 0xbeb   : > { %v5315_v58 = vadd.f32 %v3576_v20, %v3068_v39  ;;  %v3933_v35 = vpop.f32.mrb[1].mxu0  ;;  %v3592_v39 = vsel %vm3192_vm10, 1.0, %v4316_v25 }
 0xbec   : > { %v3071_v34 = vpop.f32.mrb[2].mxu0  ;;  %v3237_v56 = vsel %vm3215_vm11, %v3592_v39, 0.0 }
 0xbed   : > { %v3072_v38 = vadd.f32 %v3576_v20, %v3071_v34  ;;  %3095 = vmax.xlane.f32.xlu0 %v5315_v58  ;;  %v3934_v55 = vpop.f32.mrb[3].mxu0  ;;  %v3175_v23 = vmul.f32 %v3585_v50, %v5315_v58 }
 0xbef   : > { %3097 = vmax.xlane.f32.xlu1 %v3072_v38 }
 0xbf2   : > { %v3076_v51 = vpop.f32.mrb[0].mxu1 }
 0xbf3   : > { %v5318_v43 = vadd.f32 %v3576_v20, %v3076_v51  ;;  %v3937_v40 = vpop.f32.mrb[1].mxu1 }
 0xbf4   : > { %v3079_v57 = vpop.f32.mrb[2].mxu1 }
 0xbf5   : > { %v3080_v42 = vadd.f32 %v3576_v20, %v3079_v57  ;;  %v3938_v5 = vpop.f32.mrb[3].mxu1  ;;  %3099 = vmax.xlane.f32.xlu0 %v5318_v43 }
 0xbf7   : > { %3101 = vmax.xlane.f32.xlu1 %v3080_v42 }
 0xbfa   : > { %v3084_v47 = vpop.f32.mrb[4].mxu1 }
 0xbfb   : > { %v5321_v0 = vadd.f32 %v3576_v20, %v3084_v47  ;;  %v3941_v48 = vpop.f32.mrb[5].mxu1  ;;  %v3236_v20 = vadd.f32 %v3235_v37, %v3234_v27 }
 0xbfc   : > { %v3087_v28 = vpop.f32.mrb[6].mxu1 }
 0xbfd   : > { %v3942_v4 = vpop.f32.mrb[7].mxu1  ;;  %3103 = vmax.xlane.f32.xlu0 %v5321_v0  ;;  %v3238_v35 = vadd.f32 %v3237_v56, %v3236_v20 }
 0xc08   : > { %3152 = vperm.xlu1 %4230, %v5325_v36  }
 0xc0c   : > { %3155 = vperm.xlu1 %4230, %v5329_v31  }
 0xc10   : > { %3158 = vperm.xlu1 %4230, %v5333_v6  }
 0xc13   : > { %3149 = vperm.xlu0 %4231, %v3091_v1  }
 0xc7a   : > { %v5337_v44 = vpop.xlane.xlu0 %3095 }
 0xc7b   : > { %v3105_v61 = vsub.f32 %v5315_v58, %v5337_v44  ;;  %v3593_v58 = vsel %vm3193_vm12, 1.0, %v4316_v25 }
 0xc7c   : > { %v5341_v15 = vpop.xlane.xlu1 %3097  ;;  %v3239_v34 = vsel %vm3215_vm11, %v3593_v58, 0.0 }
 0xc7d   : > { %v3110_v8 = vmul.f32 1.442695, %v3105_v61  ;;  %v3106_v52 = vsub.f32 %v3072_v38, %v5341_v15  ;;  %v3240_v55 = vadd.f32 %v3239_v34, %v3238_v35 }
 0xc7f   : > { %4250 = vpow2.f32 %v3110_v8  ;;  %v3112_v26 = vmul.f32 1.442695, %v3106_v52 }
 0xc81   : > { %4252 = vpow2.f32 %v3112_v26 }
 0xc82   : > { %v5344_v63 = vpop.xlane.xlu0 %3099 }
 0xc83   : > { %v3107_v14 = vsub.f32 %v5318_v43, %v5344_v63 }
 0xc84   : > { %v5348_v32 = vpop.xlane.xlu1 %3101 }
 0xc85   : > { %v3114_v45 = vmul.f32 1.442695, %v3107_v14  ;;  %v3108_v33 = vsub.f32 %v3080_v42, %v5348_v32 }
 0xc87   : > { %4254 = vpow2.f32 %v3114_v45  ;;  %v3116_v49 = vmul.f32 1.442695, %v3108_v33 }
 0xc88   : > { %v3153_v2 = vpop.permute.xlu1 %3152 }
 0xc89   : > { %4256 = vpow2.f32 %v3116_v49  ;;  %v4251_v24 = vpop.eup %4250  ;;  %vm3162_vm6 = vcmp.eq.s32.totalorder %v4754_v3, %v3153_v2 }
 0xc8a   : > { %v5351_v18 = vpop.xlane.xlu0 %3103  ;;  %3120 = vadd.xlane.f32.xlu1 %v4251_v24  ;;  %v3587_v17 = vsel %vm3162_vm6, 1.0, %v4316_v25 }
 0xc8b   : > { %v3109_v54 = vsub.f32 %v5321_v0, %v5351_v18  ;;  %v4253_v12 = vpop.eup %4252  ;;  %v3177_v16 = vmul.f32 %v3587_v17, %v5318_v43 }
 0xc8c   : > { %v3156_v11 = vpop.permute.xlu1 %3155  ;;  %3122 = vadd.xlane.f32.xlu0 %v4253_v12 }
 0xc8d   : > { %v3118_v30 = vmul.f32 1.442695, %v3109_v54  ;;  %vm3163_vm1 = vcmp.eq.s32.totalorder %v4754_v3, %v3156_v11 }
 0xc8e   : > { %v3588_v41 = vsel %vm3163_vm1, 1.0, %v4316_v25 }
 0xc8f   : > { %4258 = vpow2.f32 %v3118_v30  ;;  %v3178_v46 = vmul.f32 %v3588_v41, %v3080_v42 }
 0xc90   : > { %v3159_v19 = vpop.permute.xlu1 %3158 }
 0xc91   : > { %v4255_v59 = vpop.eup %4254  ;;  %vm3164_vm7 = vcmp.eq.s32.totalorder %v4754_v3, %v3159_v19 }
 0xc92   : > { %v3150_v10 = vpop.permute.xlu0 %3149  ;;  %3124 = vadd.xlane.f32.xlu1 %v4255_v59  ;;  %v3589_v13 = vsel %vm3164_vm7, 1.0, %v4316_v25 }
 0xc93   : > { %vm3161_vm4 = vcmp.eq.s32.totalorder %v4754_v3, %v3150_v10  ;;  %v4257_v9 = vpop.eup %4256  ;;  %v3179_v21 = vmul.f32 %v3589_v13, %v5321_v0 }
 0xc94   : > { %v3586_v22 = vsel %vm3161_vm4, 1.0, %v4316_v25 }
 0xc95   : > { %v3176_v53 = vmul.f32 %v3586_v22, %v3072_v38  ;;  %v3594_v38 = vsel %vm3194_vm13, 1.0, %v4316_v25 }
 0xc96   : > { %3126 = vadd.xlane.f32.xlu1 %v4257_v9  ;;  %v3241_v51 = vsel %vm3215_vm11, %v3594_v38, 0.0 }
 0xc97   : > { %3182 = vadd.xlane.f32.xlu0 %v3176_v53  ;;  %v3242_v43 = vadd.f32 %v3241_v51, %v3240_v55 }
 0xc99   : > { %v4259_v62 = vpop.eup %4258 }
 0xc9a   : > { %3128 = vadd.xlane.f32.xlu1 %v4259_v62 }
 0xc9b   : > { %3186 = vadd.xlane.f32.xlu0 %v3178_v46 }
 0xc9e   : > { %3180 = vadd.xlane.f32.xlu1 %v3175_v23 }
 0xca2   : > { %3184 = vadd.xlane.f32.xlu1 %v3177_v16 }
 0xca6   : > { %3188 = vadd.xlane.f32.xlu1 %v3179_v21 }
 0xcaa   : > { %3243 = vadd.xlane.f32.xlu1 %v3242_v43 }
 0xd17   : > { %v3121_v40 = vpop.xlane.xlu1 %3120 }
 0xd18   : > { %4260 = vlog2.f32 %v3121_v40 }
 0xd19   : > { %v3123_v57 = vpop.xlane.xlu0 %3122 }
 0xd1a   : > { %4262 = vlog2.f32 %v3123_v57 }
 0xd1f   : > { %v3125_v42 = vpop.xlane.xlu1 %3124 }
 0xd20   : > { %4264 = vlog2.f32 %v3125_v42 }
 0xd22   : > { %v4261_v47 = vpop.eup %4260 }
 0xd23   : > { %v3127_v5 = vpop.xlane.xlu1 %3126  ;;  %v3131_v0 = vmul.f32 0.6931472, %v4261_v47 }
 0xd24   : > { %4266 = vlog2.f32 %v3127_v5  ;;  %v4263_v28 = vpop.eup %4262  ;;  %v3183_v60 = vpop.xlane.xlu0 %3182 }
 0xd25   : > { %v3133_v4 = vmul.f32 0.6931472, %v4263_v28  ;;  %v3140_v25 = vadd.f32 %v3131_v0, %v5337_v44 }
 0xd27   : > { %v3129_v48 = vpop.xlane.xlu1 %3128  ;;  %v3141_v6 = vadd.f32 %v3133_v4, %v5341_v15 }
 0xd28   : > { %4268 = vlog2.f32 %v3129_v48  ;;  %v3187_v15 = vpop.xlane.xlu0 %3186 }
 0xd29   : > { %v3206_v8 = vsub.f32 %v3141_v6, %v3183_v60 }
 0xd2a   : > { %v4265_v36 = vpop.eup %4264 }
 0xd2b   : > { %v3135_v31 = vmul.f32 0.6931472, %v4265_v36  ;;  %v3181_v1 = vpop.xlane.xlu1 %3180  ;;  %v3211_v33 = vmul.f32 %v3591_v7, %v3206_v8 }
 0xd2c   : > { %v3205_v61 = vsub.f32 %v3140_v25, %v3181_v1 }
 0xd2d   : > { %v3142_v52 = vadd.f32 %v3135_v31, %v5344_v63  ;;  %v3217_v44 = vsel %vm3215_vm11, %v3211_v33, 0.0 }
 0xd2e   : > { %v4267_v26 = vpop.eup %4266  ;;  %v3210_v14 = vmul.f32 %v3590_v29, %v3205_v61 }
 0xd2f   : > { %v3137_v45 = vmul.f32 0.6931472, %v4267_v26  ;;  %v3185_v49 = vpop.xlane.xlu1 %3184 }
 0xd30   : > { %v3216_v2 = vsel %vm3215_vm11, %v3210_v14, 0.0  ;;  %v3207_v54 = vsub.f32 %v3142_v52, %v3185_v49 }
 0xd31   : > { %v3143_v24 = vadd.f32 %v3137_v45, %v5348_v32  ;;  %v3218_v12 = vadd.f32 %v3217_v44, %v3216_v2 }
 0xd32   : > { %v4269_v30 = vpop.eup %4268  ;;  %v3212_v11 = vmul.f32 %v3592_v39, %v3207_v54 }
 0xd33   : > { %v3139_v59 = vmul.f32 0.6931472, %v4269_v30  ;;  %v3208_v10 = vsub.f32 %v3143_v24, %v3187_v15  ;;  %v3189_v53 = vpop.xlane.xlu1 %3188 }
 0xd34   : > { %v3219_v63 = vsel %vm3215_vm11, %v3212_v11, 0.0 }
 0xd35   : > { %v3213_v22 = vmul.f32 %v3593_v58, %v3208_v10  ;;  %v3144_v9 = vadd.f32 %v3139_v59, %v5351_v18  ;;  %v3220_v41 = vadd.f32 %v3219_v63, %v3218_v12 }
 0xd37   : > { %v3209_v62 = vsub.f32 %v3144_v9, %v3189_v53  ;;  %v3221_v50 = vsel %vm3215_vm11, %v3213_v22, 0.0  ;;  %v3244_v17 = vpop.xlane.xlu1 %3243 }
 0xd38   : > { %v3222_v19 = vadd.f32 %v3221_v50, %v3220_v41  ;;  %v3245_v16 = vrot.slane %v3244_v17, 4 }
 0xd39   : > { %v3214_v46 = vmul.f32 %v3594_v38, %v3209_v62 }
 0xd3a   : > { %v3246_v13 = vadd.f32 %v3245_v16, %v3244_v17 }
 0xd3b   : > { %v3223_v32 = vsel %vm3215_vm11, %v3214_v46, 0.0 }
 0xd3c   : > { %v3224_v23 = vadd.f32 %v3223_v32, %v3222_v19  ;;  %v3247_v21 = vrot.slane %v3246_v13, 2 }
 0xd3e   : > { %3225 = vadd.xlane.f32.xlu0 %v3224_v23  ;;  %v3248_v27 = vadd.f32 %v3247_v21, %v3246_v13 }
 0xd40   : > { %v3249_v39 = vrot.slane %v3248_v27, 1 }
 0xd42   : > { %v3250_v35 = vadd.f32 %v3249_v39, %v3248_v27 }
 0xdcb   : > { %v3226_v29 = vpop.xlane.xlu0 %3225 }
 0xdcc   : > { %v3227_v7 = vrot.slane %v3226_v29, 4 }
 0xdce   : > { %v3228_v37 = vadd.f32 %v3227_v7, %v3226_v29 }
 0xdd0   : > { %v3229_v18 = vrot.slane %v3228_v37, 2 }
 0xdd2   : > { %v3230_v20 = vadd.f32 %v3229_v18, %v3228_v37 }
 0xdd4   : > { %v3231_v56 = vrot.slane %v3230_v20, 1 }
 0xdd6   : > { %v3232_v58 = vadd.f32 %v3231_v56, %v3230_v20 }
 0xdd8   : > { %3962 = vpush %v3232_v58 }
 0xdd9   : > { %3964 = vpush %v3250_v35 }
 0xe09   : > { %s3963_s13 = spop %3962 }
 0xe0a   : > { %v3253_v34 = vstv %s3963_s13  ;;  %s3965_s20 = spop %3964 }
 0xe0b   : > { %v3254_v38 = vstv %s3965_s20 }
 0xe0c   : > { %v3255_v55 = vsel %vm3252_vm14, %v3253_v34, %v3254_v38 }
 0xe0d   : > { %3257 = vst.msk [vmem:[%s842_s21] sm:$0x1] %vm3256_vm15, %v3255_v55 }
 0xe0e PF: > { %s5498_s0 = sld [smem:[#allocation6_spill]]  ;;  %s5500_s30 = sld [smem:[#allocation5_spill]] }
 0xe0f   : > { %s5501_s20 = sld [smem:[#allocation7_spill]]  ;;  %s5502_s21 = sld [smem:[#allocation8_spill]] }
 0xe14   : > { %s29_s1 = sadd.s32 1, %s5498_s0   ;;  %s5499_s0 = sld [smem:[#allocation4_spill]] }
 0xe15   : > { %p26_p9 = scmp.ge.s32.totalorder %s29_s1, 6  }
 0xe17   :  { %28 = sbr.rel (!%p26_p9) target bundleno = 16 (0x10), region = 176 }

</bundles_post_ra>
